<compile_context>
chip_gen: v7x
topology: tpu7x:2x2x1
jax: 0.10.0
libtpu: 0.0.40
codegen_flags: <defaults>
</compile_context>

<pallas_src>
import functools

import numpy as np
import jax
import jax.numpy as jnp
from jax.experimental import pallas as pl
from jax.experimental.pallas import tpu as pltpu


# --------------------------- fused Pallas kernel ----------------------------

def _net_kernel(x_ref,
                t1_ref, w1b_ref, b1_ref,
                p1e_ref, p1o_ref, q1e_ref, q1o_ref,
                r2_ref, w2b_ref, b2_ref,
                p2e_ref, p2o_ref, q2e_ref, q2o_ref,
                s3_ref, wf1_ref, bf1_ref,
                wf2_ref, bf2_ref,
                o_ref):
    """One batch tile (TB images).  Activations layout: rows=(image,row),
    cols=(col*channels + channel) -> everything is a 2-D matmul."""
    f32, bf16 = jnp.float32, jnp.bfloat16
    x = x_ref[...]                                                   # (TB*28, 28)

    # ---- conv1 + bias: banded-weight matmuls, one per kernel row ki --------
    acc = None
    for ki in range(5):
        rows = jnp.dot(t1_ref[ki], x, preferred_element_type=f32)    # (TB*24, 28)
        part = jnp.dot(rows.astype(bf16), w1b_ref[ki],
                       preferred_element_type=f32)                   # (TB*24, 240)
        acc = part if acc is None else acc + part
    c1 = acc + b1_ref[...]                                           # (TB*24, 240)

    # ---- 2x2 max-pool + ReLU (row/col 0-1 selection matmuls + max) ---------
    ry = jnp.maximum(jnp.dot(p1e_ref[...], c1, preferred_element_type=f32),
                     jnp.dot(p1o_ref[...], c1, preferred_element_type=f32))
    a1 = jnp.maximum(
        jnp.maximum(jnp.dot(ry, q1e_ref[...], preferred_element_type=f32),
                    jnp.dot(ry, q1o_ref[...], preferred_element_type=f32)),
        0.0)                                                         # (TB*12, 120)

    # ---- conv2 + bias -------------------------------------------------------
    # TODO(synk): Dropout2d (conv2_drop) is identity in eval mode; training-mode
    # channel dropout is not implemented.
    acc = None
    for ki in range(5):
        rows = jnp.dot(r2_ref[ki], a1, preferred_element_type=f32)   # (TB*8, 120)
        part = jnp.dot(rows.astype(bf16), w2b_ref[ki],
                       preferred_element_type=f32)                   # (TB*8, 160)
        acc = part if acc is None else acc + part
    c2 = acc + b2_ref[...]                                           # (TB*8, 160)

    # ---- 2x2 max-pool + ReLU ------------------------------------------------
    ry2 = jnp.maximum(jnp.dot(p2e_ref[...], c2, preferred_element_type=f32),
                      jnp.dot(p2o_ref[...], c2, preferred_element_type=f32))
    a2 = jnp.maximum(
        jnp.maximum(jnp.dot(ry2, q2e_ref[...], preferred_element_type=f32),
                    jnp.dot(ry2, q2o_ref[...], preferred_element_type=f32)),
        0.0)                                                         # (TB*4, 80)

    # ---- fc1 + ReLU (PyTorch (C,H,W) flatten order folded into wf1) --------
    acc = None
    for y3 in range(4):
        z = jnp.dot(s3_ref[y3], a2, preferred_element_type=f32)      # (TB, 80)
        part = jnp.dot(z.astype(bf16), wf1_ref[y3],
                       preferred_element_type=f32)                   # (TB, 50)
        acc = part if acc is None else acc + part
    h = jnp.maximum(acc + bf1_ref[...], 0.0)                         # (TB, 50)
    # TODO(synk): F.dropout is identity in eval mode only.

    # ---- fc2 + fused log_softmax epilogue -----------------------------------
    logits = jnp.dot(h.astype(bf16), wf2_ref[...],
                     preferred_element_type=f32) + bf2_ref[...]      # (TB, 10)
    m = jnp.max(logits, axis=-1, keepdims=True)
    s = logits - m
    lse = jnp.log(jnp.sum(jnp.exp(s), axis=-1, keepdims=True))
    o_ref[...] = s - lse


# ------------------- one-time (init) constant preprocessing -----------------

def build_constants(params, batch_tile):
    """Fold all weight reshapes, im2col, pool taps and the NCHW flatten order
    into constant matrices.  Called once, outside the hot path."""
    TB = batch_tile
    w1 = np.asarray(params["conv1_w"], np.float32)   # (10, 1, 5, 5)
    b1 = np.asarray(params["conv1_b"], np.float32)
    w2 = np.asarray(params["conv2_w"], np.float32)   # (20, 10, 5, 5)
    b2 = np.asarray(params["conv2_b"], np.float32)
    fw1 = np.asarray(params["fc1_w"], np.float32)    # (50, 320)
    fb1 = np.asarray(params["fc1_b"], np.float32)
    fw2 = np.asarray(params["fc2_w"], np.float32)    # (10, 50)
    fb2 = np.asarray(params["fc2_b"], np.float32)

    # Banded conv1 weights: (5, 28, 24*10); [ki, x+kj, x*10+c] = w1[c,0,ki,kj]
    w1b = np.zeros((5, 28, 24 * 10), np.float32)
    for ki in range(5):
        for x in range(24):
            for kj in range(5):
                w1b[ki, x + kj, x * 10:(x + 1) * 10] = w1[:, 0, ki, kj]

    # Banded conv2 weights: (5, 12*10, 8*20)
    w2b = np.zeros((5, 12 * 10, 8 * 20), np.float32)
    for ki in range(5):
        for x in range(8):
            for kj in range(5):
                j = x + kj
                w2b[ki, j * 10:(j + 1) * 10, x * 20:(x + 1) * 20] = w2[:, :, ki, kj].T

    # fc1 weights permuted so they consume (x3*20+co) lanes, one slab per y3.
    wf1 = np.zeros((4, 4 * 20, 50), np.float32)
    for y3 in range(4):
        for x3 in range(4):
            for co in range(20):
                wf1[y3, x3 * 20 + co, :] = fw1[:, co * 16 + y3 * 4 + x3]

    # Row-shift selectors (pick rows y+shift of every image in the tile).
    def shift_sel(rows_out, rows_in, shifts):
        S = np.zeros((len(shifts), TB * rows_out, TB * rows_in), np.float32)
        for si, sh in enumerate(shifts):
            for n in range(TB):
                for y in range(rows_out):
                    S[si, n * rows_out + y, n * rows_in + y + sh] = 1.0
        return S

    t1 = shift_sel(24, 28, range(5))     # conv1 row taps
    r2 = shift_sel(8, 12, range(5))      # conv2 row taps
    s3 = shift_sel(1, 4, range(4))       # fc1 row gather (one per y3)

    # 2x2 pool row selectors (even / odd row of each window, per image).
    def pool_row_sel(rows_out, rows_in, offset):
        S = np.zeros((TB * rows_out, TB * rows_in), np.float32)
        for n in range(TB):
            for i in range(rows_out):
                S[n * rows_out + i, n * rows_in + 2 * i + offset] = 1.0
        return S

    p1e, p1o = pool_row_sel(12, 24, 0), pool_row_sel(12, 24, 1)
    p2e, p2o = pool_row_sel(4, 8, 0), pool_row_sel(4, 8, 1)

    # 2x2 pool column selectors on the interleaved (x, channel) lane layout.
    def pool_col_sel(w_in, C, offset):
        S = np.zeros((w_in * C, (w_in // 2) * C), np.float32)
        for j in range(w_in // 2):
            for c in range(C):
                S[(2 * j + offset) * C + c, j * C + c] = 1.0
        return S

    q1e, q1o = pool_col_sel(24, 10, 0), pool_col_sel(24, 10, 1)
    q2e, q2o = pool_col_sel(8, 20, 0), pool_col_sel(8, 20, 1)

    bf16 = jnp.bfloat16
    return dict(
        t1=jnp.asarray(t1), w1b=jnp.asarray(w1b, bf16),
        b1=jnp.asarray(np.tile(b1, 24)[None, :]),
        p1e=jnp.asarray(p1e), p1o=jnp.asarray(p1o),
        q1e=jnp.asarray(q1e), q1o=jnp.asarray(q1o),
        r2=jnp.asarray(r2), w2b=jnp.asarray(w2b, bf16),
        b2=jnp.asarray(np.tile(b2, 8)[None, :]),
        p2e=jnp.asarray(p2e), p2o=jnp.asarray(p2o),
        q2e=jnp.asarray(q2e), q2o=jnp.asarray(q2o),
        s3=jnp.asarray(s3), wf1=jnp.asarray(wf1, bf16),
        bf1=jnp.asarray(fb1[None, :]),
        wf2=jnp.asarray(fw2.T, bf16),          # (50, 10)
        bf2=jnp.asarray(fb2[None, :]),
    )


_CONST_ORDER = ["t1", "w1b", "b1", "p1e", "p1o", "q1e", "q1o",
                "r2", "w2b", "b2", "p2e", "p2o", "q2e", "q2o",
                "s3", "wf1", "bf1", "wf2", "bf2"]


def net_forward(consts, x_nchw, *, batch_tile=8):
    N = x_nchw.shape[0]
    TB = batch_tile
    assert consts["p1e"].shape[0] == TB * 12, "consts built for a different batch_tile"

    pad = (-N) % TB
    Np = N + pad
    x = x_nchw.astype(jnp.float32).reshape(N, 28 * 28)
    if pad:
        x = jnp.concatenate([x, jnp.zeros((pad, 28 * 28), jnp.float32)], axis=0)
    x2d = x.reshape(Np * 28, 28)

    const_args = [consts[k] for k in _CONST_ORDER]

    def full_spec(a):
        nd = a.ndim
        return pl.BlockSpec(a.shape, lambda i, _nd=nd: (0,) * _nd)

    in_specs = [pl.BlockSpec((TB * 28, 28), lambda i: (i, 0))]
    in_specs += [full_spec(a) for a in const_args]

    out = pl.pallas_call(
        _net_kernel,
        out_shape=jax.ShapeDtypeStruct((Np, 10), jnp.float32),
        grid=(Np // TB,),
        in_specs=in_specs,
        out_specs=pl.BlockSpec((TB, 10), lambda i: (i, 0)),
        compiler_params=pltpu.CompilerParams(
            dimension_semantics=("parallel",)),       # shards batch tiles on v7x
    )(x2d, *const_args)
    return out[:N]


# --------------------------- pure-JAX reference -----------------------------

def net_reference(params, x_nchw):
    dn = ("NCHW", "OIHW", "NCHW")
    x = jax.lax.conv_general_dilated(x_nchw, params["conv1_w"], (1, 1), "VALID",
                                     dimension_numbers=dn)
    x = x + params["conv1_b"][None, :, None, None]
    x = jax.nn.relu(jax.lax.reduce_window(x, -jnp.inf, jax.lax.max,
                                          (1, 1, 2, 2), (1, 1, 2, 2), "VALID"))
    x = jax.lax.conv_general_dilated(x, params["conv2_w"], (1, 1), "VALID",
                                     dimension_numbers=dn)
    x = x + params["conv2_b"][None, :, None, None]
    x = jax.nn.relu(jax.lax.reduce_window(x, -jnp.inf, jax.lax.max,
                                          (1, 1, 2, 2), (1, 1, 2, 2), "VALID"))
    x = x.reshape(x.shape[0], 320)
    x = jax.nn.relu(x @ params["fc1_w"].T + params["fc1_b"])
    x = x @ params["fc2_w"].T + params["fc2_b"]
    return jax.nn.log_softmax(x, axis=1)


def init_params(key):
    ks = jax.random.split(key, 8)
    return {
        "conv1_w": jax.random.normal(ks[0], (10, 1, 5, 5), jnp.float32) * 0.1,
        "conv1_b": jax.random.normal(ks[1], (10,), jnp.float32) * 0.1,
        "conv2_w": jax.random.normal(ks[2], (20, 10, 5, 5), jnp.float32) * 0.05,
        "conv2_b": jax.random.normal(ks[3], (20,), jnp.float32) * 0.05,
        "fc1_w":   jax.random.normal(ks[4], (50, 320), jnp.float32) * 0.05,
        "fc1_b":   jax.random.normal(ks[5], (50,), jnp.float32) * 0.05,
        "fc2_w":   jax.random.normal(ks[6], (10, 50), jnp.float32) * 0.1,
        "fc2_b":   jax.random.normal(ks[7], (10,), jnp.float32) * 0.1,
    }


if __name__ == "__main__":
    key = jax.random.PRNGKey(0)
    k_x, k_p = jax.random.split(key)
    N, TB = 16, 8
    # fc1's 320 = 20*4*4 input implies 1x28x28 (MNIST) images.
    x = jax.random.normal(k_x, (N, 1, 28, 28), jnp.float32)
    params = init_params(k_p)

    consts = build_constants(params, TB)          # one-time weight preprocessing
    fwd = jax.jit(functools.partial(net_forward, batch_tile=TB))
    out = jax.block_until_ready(fwd(consts, x))
    assert out.shape == (N, 10) and out.dtype == jnp.float32

    ref = jax.block_until_ready(jax.jit(net_reference)(params, x))
    err = jnp.max(jnp.abs(out - ref))
    # Tolerance accounts for bf16 MXU operands (f32 accumulation).
    assert jnp.allclose(out, ref, rtol=2e-2, atol=2e-2), f"max abs err = {err}"
    # log_softmax rows should exponentiate-sum to ~1
    assert jnp.allclose(jnp.sum(jnp.exp(out), axis=1), 1.0, atol=1e-3)

    print("KERNEL_OK")
</pallas_src>

<mosaic_0001>
module attributes {stable_mosaic.version = 11 : i64} {
  func.func @_net_kernel(%arg0: i32, %arg1: memref<224x28xf32, #tpu.memory_space<vmem>>, %arg2: memref<5x192x224xf32, #tpu.memory_space<vmem>>, %arg3: memref<5x28x240xbf16, #tpu.memory_space<vmem>>, %arg4: memref<1x240xf32, #tpu.memory_space<vmem>>, %arg5: memref<96x192xf32, #tpu.memory_space<vmem>>, %arg6: memref<96x192xf32, #tpu.memory_space<vmem>>, %arg7: memref<240x120xf32, #tpu.memory_space<vmem>>, %arg8: memref<240x120xf32, #tpu.memory_space<vmem>>, %arg9: memref<5x64x96xf32, #tpu.memory_space<vmem>>, %arg10: memref<5x120x160xbf16, #tpu.memory_space<vmem>>, %arg11: memref<1x160xf32, #tpu.memory_space<vmem>>, %arg12: memref<32x64xf32, #tpu.memory_space<vmem>>, %arg13: memref<32x64xf32, #tpu.memory_space<vmem>>, %arg14: memref<160x80xf32, #tpu.memory_space<vmem>>, %arg15: memref<160x80xf32, #tpu.memory_space<vmem>>, %arg16: memref<4x8x32xf32, #tpu.memory_space<vmem>>, %arg17: memref<4x80x50xbf16, #tpu.memory_space<vmem>>, %arg18: memref<1x50xf32, #tpu.memory_space<vmem>>, %arg19: memref<50x10xbf16, #tpu.memory_space<vmem>>, %arg20: memref<1x10xf32, #tpu.memory_space<vmem>>, %arg21: memref<8x10xf32, #tpu.memory_space<vmem>>) attributes {dimension_semantics = [#tpu.dimension_semantics<parallel>], iteration_bounds = array<i64: 2>, scalar_prefetch = 0 : i64, scratch_operands = 0 : i64, tpu.core_type = #tpu.core_type<tc>, window_params = [{transform_indices = @transform_0, window_bounds = array<i64: 224, 28>}, {pipeline_mode = #tpu.pipeline_mode<synchronous>, transform_indices = @transform_1, window_bounds = array<i64: 5, 192, 224>}, {pipeline_mode = #tpu.pipeline_mode<synchronous>, transform_indices = @transform_2, window_bounds = array<i64: 5, 28, 240>}, {pipeline_mode = #tpu.pipeline_mode<synchronous>, transform_indices = @transform_3, window_bounds = array<i64: 1, 240>}, {pipeline_mode = #tpu.pipeline_mode<synchronous>, transform_indices = @transform_4, window_bounds = array<i64: 96, 192>}, {pipeline_mode = #tpu.pipeline_mode<synchronous>, transform_indices = @transform_5, window_bounds = array<i64: 96, 192>}, {pipeline_mode = #tpu.pipeline_mode<synchronous>, transform_indices = @transform_6, window_bounds = array<i64: 240, 120>}, {pipeline_mode = #tpu.pipeline_mode<synchronous>, transform_indices = @transform_7, window_bounds = array<i64: 240, 120>}, {pipeline_mode = #tpu.pipeline_mode<synchronous>, transform_indices = @transform_8, window_bounds = array<i64: 5, 64, 96>}, {pipeline_mode = #tpu.pipeline_mode<synchronous>, transform_indices = @transform_9, window_bounds = array<i64: 5, 120, 160>}, {pipeline_mode = #tpu.pipeline_mode<synchronous>, transform_indices = @transform_10, window_bounds = array<i64: 1, 160>}, {pipeline_mode = #tpu.pipeline_mode<synchronous>, transform_indices = @transform_11, window_bounds = array<i64: 32, 64>}, {pipeline_mode = #tpu.pipeline_mode<synchronous>, transform_indices = @transform_12, window_bounds = array<i64: 32, 64>}, {pipeline_mode = #tpu.pipeline_mode<synchronous>, transform_indices = @transform_13, window_bounds = array<i64: 160, 80>}, {pipeline_mode = #tpu.pipeline_mode<synchronous>, transform_indices = @transform_14, window_bounds = array<i64: 160, 80>}, {pipeline_mode = #tpu.pipeline_mode<synchronous>, transform_indices = @transform_15, window_bounds = array<i64: 4, 8, 32>}, {pipeline_mode = #tpu.pipeline_mode<synchronous>, transform_indices = @transform_16, window_bounds = array<i64: 4, 80, 50>}, {pipeline_mode = #tpu.pipeline_mode<synchronous>, transform_indices = @transform_17, window_bounds = array<i64: 1, 50>}, {pipeline_mode = #tpu.pipeline_mode<synchronous>, transform_indices = @transform_18, window_bounds = array<i64: 50, 10>}, {pipeline_mode = #tpu.pipeline_mode<synchronous>, transform_indices = @transform_19, window_bounds = array<i64: 1, 10>}, {transform_indices = @transform_20, window_bounds = array<i64: 8, 10>}]} {
    %c0 = arith.constant 0 : index
    %c0_0 = arith.constant 0 : index
    %0 = vector.load %arg1[%c0, %c0_0] : memref<224x28xf32, #tpu.memory_space<vmem>>, vector<224x28xf32>
    %c0_1 = arith.constant 0 : index
    %c0_2 = arith.constant 0 : index
    %c0_3 = arith.constant 0 : index
    %1 = vector.load %arg2[%c0_1, %c0_2, %c0_3] : memref<5x192x224xf32, #tpu.memory_space<vmem>>, vector<1x192x224xf32>
    %2 = vector.shape_cast %1 : vector<1x192x224xf32> to vector<192x224xf32>
    %cst = arith.constant dense<0.000000e+00> : vector<192x28xf32>
    %3 = tpu.matmul %2, %0, %cst {dimension_numbers = #tpu.dot_dimension_numbers<[1], [0], [0], [1], [0, 0, 1, 1], [], []>} : vector<192x224xf32>, vector<224x28xf32>, vector<192x28xf32> -> vector<192x28xf32>
    %4 = arith.truncf %3 : vector<192x28xf32> to vector<192x28xbf16>
    %c0_4 = arith.constant 0 : index
    %c0_5 = arith.constant 0 : index
    %c0_6 = arith.constant 0 : index
    %5 = vector.load %arg3[%c0_4, %c0_5, %c0_6] : memref<5x28x240xbf16, #tpu.memory_space<vmem>>, vector<1x28x240xbf16>
    %6 = vector.shape_cast %5 : vector<1x28x240xbf16> to vector<28x240xbf16>
    %cst_7 = arith.constant dense<0.000000e+00> : vector<192x240xf32>
    %7 = tpu.matmul %4, %6, %cst_7 {dimension_numbers = #tpu.dot_dimension_numbers<[1], [0], [0], [1], [0, 0, 1, 1], [], []>} : vector<192x28xbf16>, vector<28x240xbf16>, vector<192x240xf32> -> vector<192x240xf32>
    %c1 = arith.constant 1 : index
    %c0_8 = arith.constant 0 : index
    %c0_9 = arith.constant 0 : index
    %8 = vector.load %arg2[%c1, %c0_8, %c0_9] : memref<5x192x224xf32, #tpu.memory_space<vmem>>, vector<1x192x224xf32>
    %9 = vector.shape_cast %8 : vector<1x192x224xf32> to vector<192x224xf32>
    %cst_10 = arith.constant dense<0.000000e+00> : vector<192x28xf32>
    %10 = tpu.matmul %9, %0, %cst_10 {dimension_numbers = #tpu.dot_dimension_numbers<[1], [0], [0], [1], [0, 0, 1, 1], [], []>} : vector<192x224xf32>, vector<224x28xf32>, vector<192x28xf32> -> vector<192x28xf32>
    %11 = arith.truncf %10 : vector<192x28xf32> to vector<192x28xbf16>
    %c1_11 = arith.constant 1 : index
    %c0_12 = arith.constant 0 : index
    %c0_13 = arith.constant 0 : index
    %12 = vector.load %arg3[%c1_11, %c0_12, %c0_13] : memref<5x28x240xbf16, #tpu.memory_space<vmem>>, vector<1x28x240xbf16>
    %13 = vector.shape_cast %12 : vector<1x28x240xbf16> to vector<28x240xbf16>
    %cst_14 = arith.constant dense<0.000000e+00> : vector<192x240xf32>
    %14 = tpu.matmul %11, %13, %cst_14 {dimension_numbers = #tpu.dot_dimension_numbers<[1], [0], [0], [1], [0, 0, 1, 1], [], []>} : vector<192x28xbf16>, vector<28x240xbf16>, vector<192x240xf32> -> vector<192x240xf32>
    %15 = arith.addf %7, %14 : vector<192x240xf32>
    %c2 = arith.constant 2 : index
    %c0_15 = arith.constant 0 : index
    %c0_16 = arith.constant 0 : index
    %16 = vector.load %arg2[%c2, %c0_15, %c0_16] : memref<5x192x224xf32, #tpu.memory_space<vmem>>, vector<1x192x224xf32>
    %17 = vector.shape_cast %16 : vector<1x192x224xf32> to vector<192x224xf32>
    %cst_17 = arith.constant dense<0.000000e+00> : vector<192x28xf32>
    %18 = tpu.matmul %17, %0, %cst_17 {dimension_numbers = #tpu.dot_dimension_numbers<[1], [0], [0], [1], [0, 0, 1, 1], [], []>} : vector<192x224xf32>, vector<224x28xf32>, vector<192x28xf32> -> vector<192x28xf32>
    %19 = arith.truncf %18 : vector<192x28xf32> to vector<192x28xbf16>
    %c2_18 = arith.constant 2 : index
    %c0_19 = arith.constant 0 : index
    %c0_20 = arith.constant 0 : index
    %20 = vector.load %arg3[%c2_18, %c0_19, %c0_20] : memref<5x28x240xbf16, #tpu.memory_space<vmem>>, vector<1x28x240xbf16>
    %21 = vector.shape_cast %20 : vector<1x28x240xbf16> to vector<28x240xbf16>
    %cst_21 = arith.constant dense<0.000000e+00> : vector<192x240xf32>
    %22 = tpu.matmul %19, %21, %cst_21 {dimension_numbers = #tpu.dot_dimension_numbers<[1], [0], [0], [1], [0, 0, 1, 1], [], []>} : vector<192x28xbf16>, vector<28x240xbf16>, vector<192x240xf32> -> vector<192x240xf32>
    %23 = arith.addf %15, %22 : vector<192x240xf32>
    %c3 = arith.constant 3 : index
    %c0_22 = arith.constant 0 : index
    %c0_23 = arith.constant 0 : index
    %24 = vector.load %arg2[%c3, %c0_22, %c0_23] : memref<5x192x224xf32, #tpu.memory_space<vmem>>, vector<1x192x224xf32>
    %25 = vector.shape_cast %24 : vector<1x192x224xf32> to vector<192x224xf32>
    %cst_24 = arith.constant dense<0.000000e+00> : vector<192x28xf32>
    %26 = tpu.matmul %25, %0, %cst_24 {dimension_numbers = #tpu.dot_dimension_numbers<[1], [0], [0], [1], [0, 0, 1, 1], [], []>} : vector<192x224xf32>, vector<224x28xf32>, vector<192x28xf32> -> vector<192x28xf32>
    %27 = arith.truncf %26 : vector<192x28xf32> to vector<192x28xbf16>
    %c3_25 = arith.constant 3 : index
    %c0_26 = arith.constant 0 : index
    %c0_27 = arith.constant 0 : index
    %28 = vector.load %arg3[%c3_25, %c0_26, %c0_27] : memref<5x28x240xbf16, #tpu.memory_space<vmem>>, vector<1x28x240xbf16>
    %29 = vector.shape_cast %28 : vector<1x28x240xbf16> to vector<28x240xbf16>
    %cst_28 = arith.constant dense<0.000000e+00> : vector<192x240xf32>
    %30 = tpu.matmul %27, %29, %cst_28 {dimension_numbers = #tpu.dot_dimension_numbers<[1], [0], [0], [1], [0, 0, 1, 1], [], []>} : vector<192x28xbf16>, vector<28x240xbf16>, vector<192x240xf32> -> vector<192x240xf32>
    %31 = arith.addf %23, %30 : vector<192x240xf32>
    %c4 = arith.constant 4 : index
    %c0_29 = arith.constant 0 : index
    %c0_30 = arith.constant 0 : index
    %32 = vector.load %arg2[%c4, %c0_29, %c0_30] : memref<5x192x224xf32, #tpu.memory_space<vmem>>, vector<1x192x224xf32>
    %33 = vector.shape_cast %32 : vector<1x192x224xf32> to vector<192x224xf32>
    %cst_31 = arith.constant dense<0.000000e+00> : vector<192x28xf32>
    %34 = tpu.matmul %33, %0, %cst_31 {dimension_numbers = #tpu.dot_dimension_numbers<[1], [0], [0], [1], [0, 0, 1, 1], [], []>} : vector<192x224xf32>, vector<224x28xf32>, vector<192x28xf32> -> vector<192x28xf32>
    %35 = arith.truncf %34 : vector<192x28xf32> to vector<192x28xbf16>
    %c4_32 = arith.constant 4 : index
    %c0_33 = arith.constant 0 : index
    %c0_34 = arith.constant 0 : index
    %36 = vector.load %arg3[%c4_32, %c0_33, %c0_34] : memref<5x28x240xbf16, #tpu.memory_space<vmem>>, vector<1x28x240xbf16>
    %37 = vector.shape_cast %36 : vector<1x28x240xbf16> to vector<28x240xbf16>
    %cst_35 = arith.constant dense<0.000000e+00> : vector<192x240xf32>
    %38 = tpu.matmul %35, %37, %cst_35 {dimension_numbers = #tpu.dot_dimension_numbers<[1], [0], [0], [1], [0, 0, 1, 1], [], []>} : vector<192x28xbf16>, vector<28x240xbf16>, vector<192x240xf32> -> vector<192x240xf32>
    %39 = arith.addf %31, %38 : vector<192x240xf32>
    %c0_36 = arith.constant 0 : index
    %c0_37 = arith.constant 0 : index
    %40 = vector.load %arg4[%c0_36, %c0_37] : memref<1x240xf32, #tpu.memory_space<vmem>>, vector<1x240xf32>
    %41 = vector.broadcast %40 : vector<1x240xf32> to vector<192x240xf32>
    %42 = arith.addf %39, %41 : vector<192x240xf32>
    %c0_38 = arith.constant 0 : index
    %c0_39 = arith.constant 0 : index
    %43 = vector.load %arg5[%c0_38, %c0_39] : memref<96x192xf32, #tpu.memory_space<vmem>>, vector<96x192xf32>
    %cst_40 = arith.constant dense<0.000000e+00> : vector<96x240xf32>
    %44 = tpu.matmul %43, %42, %cst_40 {dimension_numbers = #tpu.dot_dimension_numbers<[1], [0], [0], [1], [0, 0, 1, 1], [], []>} : vector<96x192xf32>, vector<192x240xf32>, vector<96x240xf32> -> vector<96x240xf32>
    %c0_41 = arith.constant 0 : index
    %c0_42 = arith.constant 0 : index
    %45 = vector.load %arg6[%c0_41, %c0_42] : memref<96x192xf32, #tpu.memory_space<vmem>>, vector<96x192xf32>
    %cst_43 = arith.constant dense<0.000000e+00> : vector<96x240xf32>
    %46 = tpu.matmul %45, %42, %cst_43 {dimension_numbers = #tpu.dot_dimension_numbers<[1], [0], [0], [1], [0, 0, 1, 1], [], []>} : vector<96x192xf32>, vector<192x240xf32>, vector<96x240xf32> -> vector<96x240xf32>
    %47 = arith.maximumf %44, %46 : vector<96x240xf32>
    %c0_44 = arith.constant 0 : index
    %c0_45 = arith.constant 0 : index
    %48 = vector.load %arg7[%c0_44, %c0_45] : memref<240x120xf32, #tpu.memory_space<vmem>>, vector<240x120xf32>
    %cst_46 = arith.constant dense<0.000000e+00> : vector<96x120xf32>
    %49 = tpu.matmul %47, %48, %cst_46 {dimension_numbers = #tpu.dot_dimension_numbers<[1], [0], [0], [1], [0, 0, 1, 1], [], []>} : vector<96x240xf32>, vector<240x120xf32>, vector<96x120xf32> -> vector<96x120xf32>
    %c0_47 = arith.constant 0 : index
    %c0_48 = arith.constant 0 : index
    %50 = vector.load %arg8[%c0_47, %c0_48] : memref<240x120xf32, #tpu.memory_space<vmem>>, vector<240x120xf32>
    %cst_49 = arith.constant dense<0.000000e+00> : vector<96x120xf32>
    %51 = tpu.matmul %47, %50, %cst_49 {dimension_numbers = #tpu.dot_dimension_numbers<[1], [0], [0], [1], [0, 0, 1, 1], [], []>} : vector<96x240xf32>, vector<240x120xf32>, vector<96x120xf32> -> vector<96x120xf32>
    %52 = arith.maximumf %49, %51 : vector<96x120xf32>
    %cst_50 = arith.constant 0.000000e+00 : f32
    %53 = vector.broadcast %cst_50 : f32 to vector<96x120xf32>
    %54 = arith.maximumf %52, %53 : vector<96x120xf32>
    %c0_51 = arith.constant 0 : index
    %c0_52 = arith.constant 0 : index
    %c0_53 = arith.constant 0 : index
    %55 = vector.load %arg9[%c0_51, %c0_52, %c0_53] : memref<5x64x96xf32, #tpu.memory_space<vmem>>, vector<1x64x96xf32>
    %56 = vector.shape_cast %55 : vector<1x64x96xf32> to vector<64x96xf32>
    %cst_54 = arith.constant dense<0.000000e+00> : vector<64x120xf32>
    %57 = tpu.matmul %56, %54, %cst_54 {dimension_numbers = #tpu.dot_dimension_numbers<[1], [0], [0], [1], [0, 0, 1, 1], [], []>} : vector<64x96xf32>, vector<96x120xf32>, vector<64x120xf32> -> vector<64x120xf32>
    %58 = arith.truncf %57 : vector<64x120xf32> to vector<64x120xbf16>
    %c0_55 = arith.constant 0 : index
    %c0_56 = arith.constant 0 : index
    %c0_57 = arith.constant 0 : index
    %59 = vector.load %arg10[%c0_55, %c0_56, %c0_57] : memref<5x120x160xbf16, #tpu.memory_space<vmem>>, vector<1x120x160xbf16>
    %60 = vector.shape_cast %59 : vector<1x120x160xbf16> to vector<120x160xbf16>
    %cst_58 = arith.constant dense<0.000000e+00> : vector<64x160xf32>
    %61 = tpu.matmul %58, %60, %cst_58 {dimension_numbers = #tpu.dot_dimension_numbers<[1], [0], [0], [1], [0, 0, 1, 1], [], []>} : vector<64x120xbf16>, vector<120x160xbf16>, vector<64x160xf32> -> vector<64x160xf32>
    %c1_59 = arith.constant 1 : index
    %c0_60 = arith.constant 0 : index
    %c0_61 = arith.constant 0 : index
    %62 = vector.load %arg9[%c1_59, %c0_60, %c0_61] : memref<5x64x96xf32, #tpu.memory_space<vmem>>, vector<1x64x96xf32>
    %63 = vector.shape_cast %62 : vector<1x64x96xf32> to vector<64x96xf32>
    %cst_62 = arith.constant dense<0.000000e+00> : vector<64x120xf32>
    %64 = tpu.matmul %63, %54, %cst_62 {dimension_numbers = #tpu.dot_dimension_numbers<[1], [0], [0], [1], [0, 0, 1, 1], [], []>} : vector<64x96xf32>, vector<96x120xf32>, vector<64x120xf32> -> vector<64x120xf32>
    %65 = arith.truncf %64 : vector<64x120xf32> to vector<64x120xbf16>
    %c1_63 = arith.constant 1 : index
    %c0_64 = arith.constant 0 : index
    %c0_65 = arith.constant 0 : index
    %66 = vector.load %arg10[%c1_63, %c0_64, %c0_65] : memref<5x120x160xbf16, #tpu.memory_space<vmem>>, vector<1x120x160xbf16>
    %67 = vector.shape_cast %66 : vector<1x120x160xbf16> to vector<120x160xbf16>
    %cst_66 = arith.constant dense<0.000000e+00> : vector<64x160xf32>
    %68 = tpu.matmul %65, %67, %cst_66 {dimension_numbers = #tpu.dot_dimension_numbers<[1], [0], [0], [1], [0, 0, 1, 1], [], []>} : vector<64x120xbf16>, vector<120x160xbf16>, vector<64x160xf32> -> vector<64x160xf32>
    %69 = arith.addf %61, %68 : vector<64x160xf32>
    %c2_67 = arith.constant 2 : index
    %c0_68 = arith.constant 0 : index
    %c0_69 = arith.constant 0 : index
    %70 = vector.load %arg9[%c2_67, %c0_68, %c0_69] : memref<5x64x96xf32, #tpu.memory_space<vmem>>, vector<1x64x96xf32>
    %71 = vector.shape_cast %70 : vector<1x64x96xf32> to vector<64x96xf32>
    %cst_70 = arith.constant dense<0.000000e+00> : vector<64x120xf32>
    %72 = tpu.matmul %71, %54, %cst_70 {dimension_numbers = #tpu.dot_dimension_numbers<[1], [0], [0], [1], [0, 0, 1, 1], [], []>} : vector<64x96xf32>, vector<96x120xf32>, vector<64x120xf32> -> vector<64x120xf32>
    %73 = arith.truncf %72 : vector<64x120xf32> to vector<64x120xbf16>
    %c2_71 = arith.constant 2 : index
    %c0_72 = arith.constant 0 : index
    %c0_73 = arith.constant 0 : index
    %74 = vector.load %arg10[%c2_71, %c0_72, %c0_73] : memref<5x120x160xbf16, #tpu.memory_space<vmem>>, vector<1x120x160xbf16>
    %75 = vector.shape_cast %74 : vector<1x120x160xbf16> to vector<120x160xbf16>
    %cst_74 = arith.constant dense<0.000000e+00> : vector<64x160xf32>
    %76 = tpu.matmul %73, %75, %cst_74 {dimension_numbers = #tpu.dot_dimension_numbers<[1], [0], [0], [1], [0, 0, 1, 1], [], []>} : vector<64x120xbf16>, vector<120x160xbf16>, vector<64x160xf32> -> vector<64x160xf32>
    %77 = arith.addf %69, %76 : vector<64x160xf32>
    %c3_75 = arith.constant 3 : index
    %c0_76 = arith.constant 0 : index
    %c0_77 = arith.constant 0 : index
    %78 = vector.load %arg9[%c3_75, %c0_76, %c0_77] : memref<5x64x96xf32, #tpu.memory_space<vmem>>, vector<1x64x96xf32>
    %79 = vector.shape_cast %78 : vector<1x64x96xf32> to vector<64x96xf32>
    %cst_78 = arith.constant dense<0.000000e+00> : vector<64x120xf32>
    %80 = tpu.matmul %79, %54, %cst_78 {dimension_numbers = #tpu.dot_dimension_numbers<[1], [0], [0], [1], [0, 0, 1, 1], [], []>} : vector<64x96xf32>, vector<96x120xf32>, vector<64x120xf32> -> vector<64x120xf32>
    %81 = arith.truncf %80 : vector<64x120xf32> to vector<64x120xbf16>
    %c3_79 = arith.constant 3 : index
    %c0_80 = arith.constant 0 : index
    %c0_81 = arith.constant 0 : index
    %82 = vector.load %arg10[%c3_79, %c0_80, %c0_81] : memref<5x120x160xbf16, #tpu.memory_space<vmem>>, vector<1x120x160xbf16>
    %83 = vector.shape_cast %82 : vector<1x120x160xbf16> to vector<120x160xbf16>
    %cst_82 = arith.constant dense<0.000000e+00> : vector<64x160xf32>
    %84 = tpu.matmul %81, %83, %cst_82 {dimension_numbers = #tpu.dot_dimension_numbers<[1], [0], [0], [1], [0, 0, 1, 1], [], []>} : vector<64x120xbf16>, vector<120x160xbf16>, vector<64x160xf32> -> vector<64x160xf32>
    %85 = arith.addf %77, %84 : vector<64x160xf32>
    %c4_83 = arith.constant 4 : index
    %c0_84 = arith.constant 0 : index
    %c0_85 = arith.constant 0 : index
    %86 = vector.load %arg9[%c4_83, %c0_84, %c0_85] : memref<5x64x96xf32, #tpu.memory_space<vmem>>, vector<1x64x96xf32>
    %87 = vector.shape_cast %86 : vector<1x64x96xf32> to vector<64x96xf32>
    %cst_86 = arith.constant dense<0.000000e+00> : vector<64x120xf32>
    %88 = tpu.matmul %87, %54, %cst_86 {dimension_numbers = #tpu.dot_dimension_numbers<[1], [0], [0], [1], [0, 0, 1, 1], [], []>} : vector<64x96xf32>, vector<96x120xf32>, vector<64x120xf32> -> vector<64x120xf32>
    %89 = arith.truncf %88 : vector<64x120xf32> to vector<64x120xbf16>
    %c4_87 = arith.constant 4 : index
    %c0_88 = arith.constant 0 : index
    %c0_89 = arith.constant 0 : index
    %90 = vector.load %arg10[%c4_87, %c0_88, %c0_89] : memref<5x120x160xbf16, #tpu.memory_space<vmem>>, vector<1x120x160xbf16>
    %91 = vector.shape_cast %90 : vector<1x120x160xbf16> to vector<120x160xbf16>
    %cst_90 = arith.constant dense<0.000000e+00> : vector<64x160xf32>
    %92 = tpu.matmul %89, %91, %cst_90 {dimension_numbers = #tpu.dot_dimension_numbers<[1], [0], [0], [1], [0, 0, 1, 1], [], []>} : vector<64x120xbf16>, vector<120x160xbf16>, vector<64x160xf32> -> vector<64x160xf32>
    %93 = arith.addf %85, %92 : vector<64x160xf32>
    %c0_91 = arith.constant 0 : index
    %c0_92 = arith.constant 0 : index
    %94 = vector.load %arg11[%c0_91, %c0_92] : memref<1x160xf32, #tpu.memory_space<vmem>>, vector<1x160xf32>
    %95 = vector.broadcast %94 : vector<1x160xf32> to vector<64x160xf32>
    %96 = arith.addf %93, %95 : vector<64x160xf32>
    %c0_93 = arith.constant 0 : index
    %c0_94 = arith.constant 0 : index
    %97 = vector.load %arg12[%c0_93, %c0_94] : memref<32x64xf32, #tpu.memory_space<vmem>>, vector<32x64xf32>
    %cst_95 = arith.constant dense<0.000000e+00> : vector<32x160xf32>
    %98 = tpu.matmul %97, %96, %cst_95 {dimension_numbers = #tpu.dot_dimension_numbers<[1], [0], [0], [1], [0, 0, 1, 1], [], []>} : vector<32x64xf32>, vector<64x160xf32>, vector<32x160xf32> -> vector<32x160xf32>
    %c0_96 = arith.constant 0 : index
    %c0_97 = arith.constant 0 : index
    %99 = vector.load %arg13[%c0_96, %c0_97] : memref<32x64xf32, #tpu.memory_space<vmem>>, vector<32x64xf32>
    %cst_98 = arith.constant dense<0.000000e+00> : vector<32x160xf32>
    %100 = tpu.matmul %99, %96, %cst_98 {dimension_numbers = #tpu.dot_dimension_numbers<[1], [0], [0], [1], [0, 0, 1, 1], [], []>} : vector<32x64xf32>, vector<64x160xf32>, vector<32x160xf32> -> vector<32x160xf32>
    %101 = arith.maximumf %98, %100 : vector<32x160xf32>
    %c0_99 = arith.constant 0 : index
    %c0_100 = arith.constant 0 : index
    %102 = vector.load %arg14[%c0_99, %c0_100] : memref<160x80xf32, #tpu.memory_space<vmem>>, vector<160x80xf32>
    %cst_101 = arith.constant dense<0.000000e+00> : vector<32x80xf32>
    %103 = tpu.matmul %101, %102, %cst_101 {dimension_numbers = #tpu.dot_dimension_numbers<[1], [0], [0], [1], [0, 0, 1, 1], [], []>} : vector<32x160xf32>, vector<160x80xf32>, vector<32x80xf32> -> vector<32x80xf32>
    %c0_102 = arith.constant 0 : index
    %c0_103 = arith.constant 0 : index
    %104 = vector.load %arg15[%c0_102, %c0_103] : memref<160x80xf32, #tpu.memory_space<vmem>>, vector<160x80xf32>
    %cst_104 = arith.constant dense<0.000000e+00> : vector<32x80xf32>
    %105 = tpu.matmul %101, %104, %cst_104 {dimension_numbers = #tpu.dot_dimension_numbers<[1], [0], [0], [1], [0, 0, 1, 1], [], []>} : vector<32x160xf32>, vector<160x80xf32>, vector<32x80xf32> -> vector<32x80xf32>
    %106 = arith.maximumf %103, %105 : vector<32x80xf32>
    %cst_105 = arith.constant 0.000000e+00 : f32
    %107 = vector.broadcast %cst_105 : f32 to vector<32x80xf32>
    %108 = arith.maximumf %106, %107 : vector<32x80xf32>
    %c0_106 = arith.constant 0 : index
    %c0_107 = arith.constant 0 : index
    %c0_108 = arith.constant 0 : index
    %109 = vector.load %arg16[%c0_106, %c0_107, %c0_108] : memref<4x8x32xf32, #tpu.memory_space<vmem>>, vector<1x8x32xf32>
    %110 = vector.shape_cast %109 : vector<1x8x32xf32> to vector<8x32xf32>
    %cst_109 = arith.constant dense<0.000000e+00> : vector<8x80xf32>
    %111 = tpu.matmul %110, %108, %cst_109 {dimension_numbers = #tpu.dot_dimension_numbers<[1], [0], [0], [1], [0, 0, 1, 1], [], []>} : vector<8x32xf32>, vector<32x80xf32>, vector<8x80xf32> -> vector<8x80xf32>
    %112 = arith.truncf %111 : vector<8x80xf32> to vector<8x80xbf16>
    %c0_110 = arith.constant 0 : index
    %c0_111 = arith.constant 0 : index
    %c0_112 = arith.constant 0 : index
    %113 = vector.load %arg17[%c0_110, %c0_111, %c0_112] : memref<4x80x50xbf16, #tpu.memory_space<vmem>>, vector<1x80x50xbf16>
    %114 = vector.shape_cast %113 : vector<1x80x50xbf16> to vector<80x50xbf16>
    %cst_113 = arith.constant dense<0.000000e+00> : vector<8x50xf32>
    %115 = tpu.matmul %112, %114, %cst_113 {dimension_numbers = #tpu.dot_dimension_numbers<[1], [0], [0], [1], [0, 0, 1, 1], [], []>} : vector<8x80xbf16>, vector<80x50xbf16>, vector<8x50xf32> -> vector<8x50xf32>
    %c1_114 = arith.constant 1 : index
    %c0_115 = arith.constant 0 : index
    %c0_116 = arith.constant 0 : index
    %116 = vector.load %arg16[%c1_114, %c0_115, %c0_116] : memref<4x8x32xf32, #tpu.memory_space<vmem>>, vector<1x8x32xf32>
    %117 = vector.shape_cast %116 : vector<1x8x32xf32> to vector<8x32xf32>
    %cst_117 = arith.constant dense<0.000000e+00> : vector<8x80xf32>
    %118 = tpu.matmul %117, %108, %cst_117 {dimension_numbers = #tpu.dot_dimension_numbers<[1], [0], [0], [1], [0, 0, 1, 1], [], []>} : vector<8x32xf32>, vector<32x80xf32>, vector<8x80xf32> -> vector<8x80xf32>
    %119 = arith.truncf %118 : vector<8x80xf32> to vector<8x80xbf16>
    %c1_118 = arith.constant 1 : index
    %c0_119 = arith.constant 0 : index
    %c0_120 = arith.constant 0 : index
    %120 = vector.load %arg17[%c1_118, %c0_119, %c0_120] : memref<4x80x50xbf16, #tpu.memory_space<vmem>>, vector<1x80x50xbf16>
    %121 = vector.shape_cast %120 : vector<1x80x50xbf16> to vector<80x50xbf16>
    %cst_121 = arith.constant dense<0.000000e+00> : vector<8x50xf32>
    %122 = tpu.matmul %119, %121, %cst_121 {dimension_numbers = #tpu.dot_dimension_numbers<[1], [0], [0], [1], [0, 0, 1, 1], [], []>} : vector<8x80xbf16>, vector<80x50xbf16>, vector<8x50xf32> -> vector<8x50xf32>
    %123 = arith.addf %115, %122 : vector<8x50xf32>
    %c2_122 = arith.constant 2 : index
    %c0_123 = arith.constant 0 : index
    %c0_124 = arith.constant 0 : index
    %124 = vector.load %arg16[%c2_122, %c0_123, %c0_124] : memref<4x8x32xf32, #tpu.memory_space<vmem>>, vector<1x8x32xf32>
    %125 = vector.shape_cast %124 : vector<1x8x32xf32> to vector<8x32xf32>
    %cst_125 = arith.constant dense<0.000000e+00> : vector<8x80xf32>
    %126 = tpu.matmul %125, %108, %cst_125 {dimension_numbers = #tpu.dot_dimension_numbers<[1], [0], [0], [1], [0, 0, 1, 1], [], []>} : vector<8x32xf32>, vector<32x80xf32>, vector<8x80xf32> -> vector<8x80xf32>
    %127 = arith.truncf %126 : vector<8x80xf32> to vector<8x80xbf16>
    %c2_126 = arith.constant 2 : index
    %c0_127 = arith.constant 0 : index
    %c0_128 = arith.constant 0 : index
    %128 = vector.load %arg17[%c2_126, %c0_127, %c0_128] : memref<4x80x50xbf16, #tpu.memory_space<vmem>>, vector<1x80x50xbf16>
    %129 = vector.shape_cast %128 : vector<1x80x50xbf16> to vector<80x50xbf16>
    %cst_129 = arith.constant dense<0.000000e+00> : vector<8x50xf32>
    %130 = tpu.matmul %127, %129, %cst_129 {dimension_numbers = #tpu.dot_dimension_numbers<[1], [0], [0], [1], [0, 0, 1, 1], [], []>} : vector<8x80xbf16>, vector<80x50xbf16>, vector<8x50xf32> -> vector<8x50xf32>
    %131 = arith.addf %123, %130 : vector<8x50xf32>
    %c3_130 = arith.constant 3 : index
    %c0_131 = arith.constant 0 : index
    %c0_132 = arith.constant 0 : index
    %132 = vector.load %arg16[%c3_130, %c0_131, %c0_132] : memref<4x8x32xf32, #tpu.memory_space<vmem>>, vector<1x8x32xf32>
    %133 = vector.shape_cast %132 : vector<1x8x32xf32> to vector<8x32xf32>
    %cst_133 = arith.constant dense<0.000000e+00> : vector<8x80xf32>
    %134 = tpu.matmul %133, %108, %cst_133 {dimension_numbers = #tpu.dot_dimension_numbers<[1], [0], [0], [1], [0, 0, 1, 1], [], []>} : vector<8x32xf32>, vector<32x80xf32>, vector<8x80xf32> -> vector<8x80xf32>
    %135 = arith.truncf %134 : vector<8x80xf32> to vector<8x80xbf16>
    %c3_134 = arith.constant 3 : index
    %c0_135 = arith.constant 0 : index
    %c0_136 = arith.constant 0 : index
    %136 = vector.load %arg17[%c3_134, %c0_135, %c0_136] : memref<4x80x50xbf16, #tpu.memory_space<vmem>>, vector<1x80x50xbf16>
    %137 = vector.shape_cast %136 : vector<1x80x50xbf16> to vector<80x50xbf16>
    %cst_137 = arith.constant dense<0.000000e+00> : vector<8x50xf32>
    %138 = tpu.matmul %135, %137, %cst_137 {dimension_numbers = #tpu.dot_dimension_numbers<[1], [0], [0], [1], [0, 0, 1, 1], [], []>} : vector<8x80xbf16>, vector<80x50xbf16>, vector<8x50xf32> -> vector<8x50xf32>
    %139 = arith.addf %131, %138 : vector<8x50xf32>
    %c0_138 = arith.constant 0 : index
    %c0_139 = arith.constant 0 : index
    %140 = vector.load %arg18[%c0_138, %c0_139] : memref<1x50xf32, #tpu.memory_space<vmem>>, vector<1x50xf32>
    %141 = vector.broadcast %140 : vector<1x50xf32> to vector<8x50xf32>
    %142 = arith.addf %139, %141 : vector<8x50xf32>
    %cst_140 = arith.constant 0.000000e+00 : f32
    %143 = vector.broadcast %cst_140 : f32 to vector<8x50xf32>
    %144 = arith.maximumf %142, %143 : vector<8x50xf32>
    %145 = arith.truncf %144 : vector<8x50xf32> to vector<8x50xbf16>
    %c0_141 = arith.constant 0 : index
    %c0_142 = arith.constant 0 : index
    %146 = vector.load %arg19[%c0_141, %c0_142] : memref<50x10xbf16, #tpu.memory_space<vmem>>, vector<50x10xbf16>
    %cst_143 = arith.constant dense<0.000000e+00> : vector<8x10xf32>
    %147 = tpu.matmul %145, %146, %cst_143 {dimension_numbers = #tpu.dot_dimension_numbers<[1], [0], [0], [1], [0, 0, 1, 1], [], []>} : vector<8x50xbf16>, vector<50x10xbf16>, vector<8x10xf32> -> vector<8x10xf32>
    %c0_144 = arith.constant 0 : index
    %c0_145 = arith.constant 0 : index
    %148 = vector.load %arg20[%c0_144, %c0_145] : memref<1x10xf32, #tpu.memory_space<vmem>>, vector<1x10xf32>
    %149 = vector.broadcast %148 : vector<1x10xf32> to vector<8x10xf32>
    %150 = arith.addf %147, %149 : vector<8x10xf32>
    %cst_146 = arith.constant dense<0xFF800000> : vector<8xf32>
    %151 = vector.multi_reduction <maximumf>, %150, %cst_146 [1] : vector<8x10xf32> to vector<8xf32>
    %152 = vector.shape_cast %151 : vector<8xf32> to vector<8x1xf32>
    %153 = vector.broadcast %152 : vector<8x1xf32> to vector<8x10xf32>
    %154 = arith.subf %150, %153 : vector<8x10xf32>
    %155 = math.exp %154 : vector<8x10xf32>
    %cst_147 = arith.constant dense<0.000000e+00> : vector<8xf32>
    %156 = vector.multi_reduction <add>, %155, %cst_147 [1] : vector<8x10xf32> to vector<8xf32>
    %157 = vector.shape_cast %156 : vector<8xf32> to vector<8x1xf32>
    %158 = math.log %157 : vector<8x1xf32>
    %159 = vector.broadcast %158 : vector<8x1xf32> to vector<8x10xf32>
    %160 = arith.subf %154, %159 : vector<8x10xf32>
    %c0_148 = arith.constant 0 : index
    %c0_149 = arith.constant 0 : index
    %161 = vector.load %arg21[%c0_148, %c0_149] : memref<8x10xf32, #tpu.memory_space<vmem>>, vector<8x10xf32>
    tpu.vector_store %arg21[%c0_148, %c0_149], %160 {strides = array<i32>} : memref<8x10xf32, #tpu.memory_space<vmem>>, vector<8x10xf32>,
    return
  }
  func.func @transform_0(%arg0: i32) -> (i32, i32) {
    %c0_i32 = arith.constant 0 : i32
    %c0_i32_0 = arith.constant 0 : i32
    return %arg0, %c0_i32 : i32, i32
  }
  func.func @transform_1(%arg0: i32) -> (i32, i32, i32) {
    %c0_i32 = arith.constant 0 : i32
    %c0_i32_0 = arith.constant 0 : i32
    %c0_i32_1 = arith.constant 0 : i32
    %c0_i32_2 = arith.constant 0 : i32
    return %c0_i32, %c0_i32_0, %c0_i32_1 : i32, i32, i32
  }
  func.func @transform_2(%arg0: i32) -> (i32, i32, i32) {
    %c0_i32 = arith.constant 0 : i32
    %c0_i32_0 = arith.constant 0 : i32
    %c0_i32_1 = arith.constant 0 : i32
    %c0_i32_2 = arith.constant 0 : i32
    return %c0_i32, %c0_i32_0, %c0_i32_1 : i32, i32, i32
  }
  func.func @transform_3(%arg0: i32) -> (i32, i32) {
    %c0_i32 = arith.constant 0 : i32
    %c0_i32_0 = arith.constant 0 : i32
    %c0_i32_1 = arith.constant 0 : i32
    return %c0_i32, %c0_i32_0 : i32, i32
  }
  func.func @transform_4(%arg0: i32) -> (i32, i32) {
    %c0_i32 = arith.constant 0 : i32
    %c0_i32_0 = arith.constant 0 : i32
    %c0_i32_1 = arith.constant 0 : i32
    return %c0_i32, %c0_i32_0 : i32, i32
  }
  func.func @transform_5(%arg0: i32) -> (i32, i32) {
    %c0_i32 = arith.constant 0 : i32
    %c0_i32_0 = arith.constant 0 : i32
    %c0_i32_1 = arith.constant 0 : i32
    return %c0_i32, %c0_i32_0 : i32, i32
  }
  func.func @transform_6(%arg0: i32) -> (i32, i32) {
    %c0_i32 = arith.constant 0 : i32
    %c0_i32_0 = arith.constant 0 : i32
    %c0_i32_1 = arith.constant 0 : i32
    return %c0_i32, %c0_i32_0 : i32, i32
  }
  func.func @transform_7(%arg0: i32) -> (i32, i32) {
    %c0_i32 = arith.constant 0 : i32
    %c0_i32_0 = arith.constant 0 : i32
    %c0_i32_1 = arith.constant 0 : i32
    return %c0_i32, %c0_i32_0 : i32, i32
  }
  func.func @transform_8(%arg0: i32) -> (i32, i32, i32) {
    %c0_i32 = arith.constant 0 : i32
    %c0_i32_0 = arith.constant 0 : i32
    %c0_i32_1 = arith.constant 0 : i32
    %c0_i32_2 = arith.constant 0 : i32
    return %c0_i32, %c0_i32_0, %c0_i32_1 : i32, i32, i32
  }
  func.func @transform_9(%arg0: i32) -> (i32, i32, i32) {
    %c0_i32 = arith.constant 0 : i32
    %c0_i32_0 = arith.constant 0 : i32
    %c0_i32_1 = arith.constant 0 : i32
    %c0_i32_2 = arith.constant 0 : i32
    return %c0_i32, %c0_i32_0, %c0_i32_1 : i32, i32, i32
  }
  func.func @transform_10(%arg0: i32) -> (i32, i32) {
    %c0_i32 = arith.constant 0 : i32
    %c0_i32_0 = arith.constant 0 : i32
    %c0_i32_1 = arith.constant 0 : i32
    return %c0_i32, %c0_i32_0 : i32, i32
  }
  func.func @transform_11(%arg0: i32) -> (i32, i32) {
    %c0_i32 = arith.constant 0 : i32
    %c0_i32_0 = arith.constant 0 : i32
    %c0_i32_1 = arith.constant 0 : i32
    return %c0_i32, %c0_i32_0 : i32, i32
  }
  func.func @transform_12(%arg0: i32) -> (i32, i32) {
    %c0_i32 = arith.constant 0 : i32
    %c0_i32_0 = arith.constant 0 : i32
    %c0_i32_1 = arith.constant 0 : i32
    return %c0_i32, %c0_i32_0 : i32, i32
  }
  func.func @transform_13(%arg0: i32) -> (i32, i32) {
    %c0_i32 = arith.constant 0 : i32
    %c0_i32_0 = arith.constant 0 : i32
    %c0_i32_1 = arith.constant 0 : i32
    return %c0_i32, %c0_i32_0 : i32, i32
  }
  func.func @transform_14(%arg0: i32) -> (i32, i32) {
    %c0_i32 = arith.constant 0 : i32
    %c0_i32_0 = arith.constant 0 : i32
    %c0_i32_1 = arith.constant 0 : i32
    return %c0_i32, %c0_i32_0 : i32, i32
  }
  func.func @transform_15(%arg0: i32) -> (i32, i32, i32) {
    %c0_i32 = arith.constant 0 : i32
    %c0_i32_0 = arith.constant 0 : i32
    %c0_i32_1 = arith.constant 0 : i32
    %c0_i32_2 = arith.constant 0 : i32
    return %c0_i32, %c0_i32_0, %c0_i32_1 : i32, i32, i32
  }
  func.func @transform_16(%arg0: i32) -> (i32, i32, i32) {
    %c0_i32 = arith.constant 0 : i32
    %c0_i32_0 = arith.constant 0 : i32
    %c0_i32_1 = arith.constant 0 : i32
    %c0_i32_2 = arith.constant 0 : i32
    return %c0_i32, %c0_i32_0, %c0_i32_1 : i32, i32, i32
  }
  func.func @transform_17(%arg0: i32) -> (i32, i32) {
    %c0_i32 = arith.constant 0 : i32
    %c0_i32_0 = arith.constant 0 : i32
    %c0_i32_1 = arith.constant 0 : i32
    return %c0_i32, %c0_i32_0 : i32, i32
  }
  func.func @transform_18(%arg0: i32) -> (i32, i32) {
    %c0_i32 = arith.constant 0 : i32
    %c0_i32_0 = arith.constant 0 : i32
    %c0_i32_1 = arith.constant 0 : i32
    return %c0_i32, %c0_i32_0 : i32, i32
  }
  func.func @transform_19(%arg0: i32) -> (i32, i32) {
    %c0_i32 = arith.constant 0 : i32
    %c0_i32_0 = arith.constant 0 : i32
    %c0_i32_1 = arith.constant 0 : i32
    return %c0_i32, %c0_i32_0 : i32, i32
  }
  func.func @transform_20(%arg0: i32) -> (i32, i32) {
    %c0_i32 = arith.constant 0 : i32
    %c0_i32_0 = arith.constant 0 : i32
    return %arg0, %c0_i32 : i32, i32
  }
}

</mosaic_0001>

<bundles_post_ra>
// kernel: net_forward.1
= control target key start
LH: loop header
LB: loop body
LE: loop exit
PB: predicated region body
PF: predicated region fallthrough
CT: control target
= control target key end

     0   :  { %s12760_s0 = inlined_call_operand.vmem [shape: f32[448,28], index: 0, kind: input, shape index: {}]   ;;  %s12761_s1 = inlined_call_operand.hbm [shape: f32[5,192,224], index: 1, kind: input, shape index: {}]   ;;  %s12762_s2 = inlined_call_operand.hbm [shape: bf16[5,28,240], index: 2, kind: input, shape index: {}]   ;;  %s12763_s3 = inlined_call_operand.vmem [shape: f32[1,240], index: 3, kind: input, shape index: {}]   ;;  %s12764_s4 = inlined_call_operand.hbm [shape: f32[96,192], index: 4, kind: input, shape index: {}]   ;;  %s12765_s5 = inlined_call_operand.hbm [shape: f32[96,192], index: 5, kind: input, shape index: {}]   ;;  %s12766_s6 = inlined_call_operand.vmem [shape: f32[240,120], index: 6, kind: input, shape index: {}]   ;;  %s12767_s7 = inlined_call_operand.vmem [shape: f32[240,120], index: 7, kind: input, shape index: {}]   ;;  %s12768_s8 = inlined_call_operand.vmem [shape: f32[5,64,96], index: 8, kind: input, shape index: {}]   ;;  %s12769_s9 = inlined_call_operand.vmem [shape: bf16[5,120,160], index: 9, kind: input, shape index: {}]   ;;  %s12770_s10 = inlined_call_operand.vmem [shape: f32[1,160], index: 10, kind: input, shape index: {}]   ;;  %s12771_s11 = inlined_call_operand.hbm [shape: f32[32,64], index: 11, kind: input, shape index: {}]   ;;  %s12772_s12 = inlined_call_operand.hbm [shape: f32[32,64], index: 12, kind: input, shape index: {}]   ;;  %s12773_s13 = inlined_call_operand.hbm [shape: f32[160,80], index: 13, kind: input, shape index: {}]   ;;  %s12774_s14 = inlined_call_operand.hbm [shape: f32[160,80], index: 14, kind: input, shape index: {}]   ;;  %s12775_s15 = inlined_call_operand.hbm [shape: f32[4,8,32], index: 15, kind: input, shape index: {}]   ;;  %s12776_s16 = inlined_call_operand.vmem [shape: bf16[4,80,50], index: 16, kind: input, shape index: {}]   ;;  %s12777_s17 = inlined_call_operand.vmem [shape: f32[1,50], index: 17, kind: input, shape index: {}]   ;;  %s12778_s18 = inlined_call_operand.vmem [shape: bf16[50,10], index: 18, kind: input, shape index: {}]   ;;  %s12779_s19 = inlined_call_operand.vmem [shape: f32[1,10], index: 19, kind: input, shape index: {}]   ;;  %s12780_s20 = inlined_call_operand.hbm [shape: f32[16,10], index: 20, kind: output, shape index: {}]  }
   0x1   :  { %12808 = sst [smem:[#allocation32_spill]] %s12760_s0 }
   0x2   :  { %12809 = sst [smem:[#allocation33_spill]] %s12761_s1 }
   0x3   :  { %12810 = sst [smem:[#allocation34_spill]] %s12762_s2 }
   0x4   :  { %12811 = sst [smem:[#allocation35_spill]] %s12763_s3 }
   0x5   :  { %12812 = sst [smem:[#allocation36_spill]] %s12764_s4 }
   0x6   :  { %12813 = sst [smem:[#allocation37_spill]] %s12765_s5 }
   0x7   :  { %12814 = sst [smem:[#allocation38_spill]] %s12776_s16 }
   0x8   :  { %12815 = sst [smem:[#allocation39_spill]] %s12777_s17 }
   0x9   :  { %12816 = sst [smem:[#allocation40_spill]] %s12778_s18 }
   0xa   :  { %12817 = sst [smem:[#allocation41_spill]] %s12779_s19 }
   0xb   :  { %12818 = sst [smem:[#allocation42_spill]] %s12780_s20 }
   0xc   :  { %25 = vsyncpa [#allocation3], 0 }
   0xd   :  { %26 = vsyncpa [#allocation6], 0 }
   0xe   :  { %27 = vsyncpa [#allocation9], 0 }
   0xf   :  { %28 = vsyncpa [#allocation12], 0 }
  0x10   :  { %29 = vsyncpa [#allocation15], 0 }
  0x11   :  { %30 = vsyncpa [#allocation4], 0 }
  0x12   :  { %32 = vsyncpa [#allocation4 + $0x1], 0  ;;  %s10217_s1 = smov 0   ;;  %s10219_s22 = smov 0  }
  0x13   :  { %s10221_s23 = smov 0   ;;  %s10223_s24 = smov 0  }
  0x14 LB: > { %12819 = sst [smem:[#allocation24_spill]] %s10080_s1  ;;  %s10238_s2 = sadd.s32 4294967295, %s10092_s24   ;;  %s10092_s24 = sphi %s10223_s24, %s12866_s24   ;;  %s10088_s23 = sphi %s10221_s23, %s12869_s23   ;;  %s10084_s22 = sphi %s10219_s22, %s12868_s22   ;;  %s10080_s1 = sphi %s10217_s1, %s12867_s1  }
  0x15   : > { %12820 = sst [smem:[#allocation25_spill]] %s10084_s22  ;;  %s7519_s25 = sadd.s32 4294967294, %s10092_s24  }
  0x16   : > { %12821 = sst [smem:[#allocation26_spill]] %s10088_s23  ;;  %s10242_s3 = sadd.s32 1, %s10092_s24  }
  0x17   : > { %12822 = sst [smem:[#allocation27_spill]] %s10092_s24  ;;  %s470_s26 = sadd.s32 1, %s10088_s23 }
  0x18   : > { %12823 = sst [smem:[#allocation28_spill]] %s10242_s3  ;;  %s467_s27 = ssub.s32 %s10092_s24, %s10242_s3 }
  0x19   : > { %p480_p0 = scmp.ne.s32.totalorder %s10088_s23, %s10084_s22  ;;  %p468_p1 = scmp.eq.s32.totalorder %s467_s27, 0 }
  0x1a   : > { %p481_p2 = scmp.eq.s32.totalorder %s10238_s2, 1  ;;  %p486_p3 = scmp.ne.s32.totalorder %s10084_s22, %s10080_s1 }
  0x1b   : > { %p487_p4 = scmp.eq.s32.totalorder %s7519_s25, 1  ;;  %p7520_p7 = scmp.ge.s32.totalorder %s10092_s24, 1 }
  0x1c   : > { %s10253_s28 = scalar_select %p468_p1, %s10088_s23, %s470_s26  }
  0x1d   : > { %p10255_p5 = por %p481_p2, %p480_p0  ;;  %p10259_p6 = por %p487_p4, %p486_p3 }
  0x1e   : > { %12824 = sst [smem:[#allocation29_spill]] %s10253_s28  ;;  %p494_p8 = scmp.lt.s32.totalorder %s10092_s24, 3 }
  0x1f   : > { %s12825_s4 = scalar_select %p10255_p5, 1, 0 }
  0x20   : > { %s12827_s29 = scalar_select %p10259_p6, 1, 0 }
  0x21   : > { %12826 = sst [smem:[#allocation30_spill]] %s12825_s4  ;;  %p12793_p9 = scmp.eq.s32.totalorder %s10238_s2, 0 }
  0x22   : > { %12828 = sst [smem:[#allocation31_spill]] %s12827_s29  ;;  %p10266_p10 = pnand %p7520_p7, %p494_p8 }
  0x23   : > { %s10094_s0 = smov [#allocation5]   ;;  %s10095_s26 = smov [#allocation8]  }
  0x24   : > { %s12829_s30 = scalar_select %p10266_p10, 1, 0 }
  0x25   : > { %s519_s21 = sshll.u32 %s10094_s0, 4  ;;  %p9485_p11 = pneg %p10266_p10  ;;  %s520_s21 = int_to_ptr.vmem [resolvable:$true] %s519_s21 }
  0x26   : > { %s548_s27 = sshll.u32 %s10095_s26, 4  ;;  %s12831_s3 = sld [smem:[#allocation34_spill]]  ;;  %s549_s27 = int_to_ptr.vmem [resolvable:$true] %s548_s27 }
  0x27   : > { %p10274_p12 = pnand %p12793_p9, %p9485_p11 }
  0x29   : > { %p10286_p0 = pneg %p10274_p12 }
  0x2c   : > { %s9758_s29 = scalar_lea.hbm %s12831_s3, 2560 }
  0x2d   : > { %p9759_p13 = scmp.ne.s32.totalorder %s12831_s3, %s9758_s29  ;;  %p9765_p3 = scmp.lt.u32.totalorder %s9758_s29, %s12831_s3 }
  0x2f   : > { %p9761_p1 = pnand %p10286_p0, %p9759_p13 }
  0x31   : > { %p9762_p2 = pneg %p9761_p1 }
  0x33   : > { %p9767_p4 = pnand %p9765_p3, %p9762_p2 }
  0x35   : > { %9770 = shalt.err (!%p9767_p4)
}
  0x36   : > { %s9771_s23 = scalar_lea.vmem %s520_s21, 2560  ;;  %p9779_p9 = scmp.lt.s32.totalorder %s520_s21, %s520_s21 }
  0x37   : > { %p9772_p7 = scmp.ne.s32.totalorder %s520_s21, %s9771_s23  ;;  %p9780_p6 = scmp.lt.s32.totalorder %s9771_s23, %s9771_s23 }
  0x39   : > { %p9774_p8 = pnand %p9772_p7, %p10286_p0  ;;  %p9781_p5 = por %p9780_p6, %p9779_p9 }
  0x3b   : > { %p9775_p11 = pneg %p9774_p8 }
  0x3d   : > { %p9782_p10 = pnand %p9781_p5, %p9775_p11 }
  0x3f   : > { %9785 = shalt.err (!%p9782_p10)
}
  0x40   : > { %s12803_s1 = smov 128   ;;  %s12805_s24 = smov 8  }
  0x41   : > { %9491 = dma.hbm_to_vmem [thread:$0]  (!%p10274_p12), %s12831_s3, 2560, %s520_s21, [#allocation6], %s12803_s1, %s12803_s1, %s12805_s24  }
  0x42   : > { %s10098_s4 = smov [#allocation11]   ;;  %s12833_s5 = sld [smem:[#allocation37_spill]] }
  0x43   : > { %s589_s29 = sshll.u32 %s10098_s4, 4  ;;  %s590_s29 = int_to_ptr.vmem [resolvable:$true] %s589_s29 }
  0x48   : > { %s9786_s22 = scalar_lea.hbm %s12833_s5, 3072 }
  0x49   : > { %p9787_p5 = scmp.ne.s32.totalorder %s12833_s5, %s9786_s22  ;;  %p9793_p10 = scmp.lt.u32.totalorder %s9786_s22, %s12833_s5 }
  0x4b   : > { %p9789_p6 = pnand %p9787_p5, %p10286_p0 }
  0x4d   : > { %p9790_p9 = pneg %p9789_p6 }
  0x4f   : > { %p9795_p13 = pnand %p9793_p10, %p9790_p9 }
  0x51   : > { %9798 = shalt.err (!%p9795_p13)
}
  0x52   : > { %s9799_s21 = scalar_lea.vmem %s549_s27, 3072  ;;  %p9807_p4 = scmp.lt.s32.totalorder %s549_s27, %s549_s27 }
  0x53   : > { %p9800_p1 = scmp.ne.s32.totalorder %s549_s27, %s9799_s21  ;;  %p9808_p7 = scmp.lt.s32.totalorder %s9799_s21, %s9799_s21 }
  0x55   : > { %p9802_p2 = pnand %p9800_p1, %p10286_p0  ;;  %p9809_p8 = por %p9808_p7, %p9807_p4 }
  0x57   : > { %p9803_p3 = pneg %p9802_p2 }
  0x59   : > { %p9810_p11 = pnand %p9809_p8, %p9803_p3 }
  0x5b   : > { %9813 = shalt.err (!%p9810_p11)
}
  0x5c   : > { %s12799_s17 = smov 256   ;;  %s12801_s19 = smov 16  }
  0x5d   : > { %9497 = dma.hbm_to_vmem [thread:$0]  (!%p10274_p12), %s12833_s5, 3072, %s549_s27, [#allocation9], %s12799_s17, %s12799_s17, %s12801_s19  }
  0x5e   : > { %s9814_s28 = scalar_lea.hbm %s12772_s12, 512 }
  0x5f   : > { %p9815_p5 = scmp.ne.s32.totalorder %s12772_s12, %s9814_s28  ;;  %p9821_p10 = scmp.lt.u32.totalorder %s9814_s28, %s12772_s12 }
  0x61   : > { %p9817_p6 = pnand %p9815_p5, %p10286_p0 }
  0x63   : > { %p9818_p9 = pneg %p9817_p6 }
  0x65   : > { %p9823_p13 = pnand %p9821_p10, %p9818_p9 }
  0x67   : > { %9826 = shalt.err (!%p9823_p13)
}
  0x68   : > { %s9827_s16 = scalar_lea.vmem %s590_s29, 512  ;;  %p9835_p4 = scmp.lt.s32.totalorder %s590_s29, %s590_s29 }
  0x69   : > { %p9828_p1 = scmp.ne.s32.totalorder %s590_s29, %s9827_s16  ;;  %p9836_p7 = scmp.lt.s32.totalorder %s9827_s16, %s9827_s16 }
  0x6b   : > { %p9830_p2 = pnand %p9828_p1, %p10286_p0  ;;  %p9837_p8 = por %p9836_p7, %p9835_p4 }
  0x6d   : > { %p9831_p3 = pneg %p9830_p2 }
  0x6f   : > { %p9838_p11 = pnand %p9837_p8, %p9831_p3 }
  0x71   : > { %9841 = shalt.err (!%p9838_p11)
}
  0x72   : > { %9503 = dma.hbm_to_vmem [thread:$0]  (!%p10274_p12), %s12772_s12, 512, %s590_s29, [#allocation12], %s12803_s1, %s12803_s1, %s12805_s24  }
  0x73   : > { %s10101_s22 = smov [#allocation14]   ;;  %s10102_s28 = smov [#allocation2]  }
  0x74   : > { %s615_s20 = sshll.u32 %s10101_s22, 4  ;;  %s506_s4 = sshll.u32 %s10102_s28, 4  ;;  %s616_s20 = int_to_ptr.vmem [resolvable:$true] %s615_s20  ;;  %s507_s4 = int_to_ptr.vmem [resolvable:$true] %s506_s4 }
  0x75   : > { %s9842_s21 = scalar_lea.hbm %s12774_s14, 2560 }
  0x76   : > { %p9843_p5 = scmp.ne.s32.totalorder %s12774_s14, %s9842_s21  ;;  %p9849_p10 = scmp.lt.u32.totalorder %s9842_s21, %s12774_s14 }
  0x78   : > { %p9845_p6 = pnand %p9843_p5, %p10286_p0 }
  0x7a   : > { %p9846_p9 = pneg %p9845_p6 }
  0x7c   : > { %p9851_p13 = pnand %p9849_p10, %p9846_p9 }
  0x7e   : > { %9854 = shalt.err (!%p9851_p13)
}
  0x7f   : > { %s9855_s29 = scalar_lea.vmem %s616_s20, 2560  ;;  %p9863_p4 = scmp.lt.s32.totalorder %s616_s20, %s616_s20 }
  0x80   : > { %p9856_p1 = scmp.ne.s32.totalorder %s616_s20, %s9855_s29  ;;  %p9864_p7 = scmp.lt.s32.totalorder %s9855_s29, %s9855_s29 }
  0x82   : > { %p9858_p2 = pnand %p9856_p1, %p10286_p0  ;;  %p9865_p8 = por %p9864_p7, %p9863_p4 }
  0x84   : > { %p9859_p3 = pneg %p9858_p2 }
  0x86   : > { %p9866_p11 = pnand %p9865_p8, %p9859_p3 }
  0x88   : > { %9869 = shalt.err (!%p9866_p11)
}
  0x89   : > { %9509 = dma.hbm_to_vmem [thread:$0]  (!%p10274_p12), %s12774_s14, 2560, %s616_s20, [#allocation15], %s12803_s1, %s12803_s1, %s12805_s24  }
  0x8a   : > { %s12834_s28 = sld [smem:[#allocation33_spill]] }
  0x90   : > { %s9870_s26 = scalar_lea.hbm %s12834_s28, 30720 }
  0x91   : > { %p9871_p5 = scmp.ne.s32.totalorder %s12834_s28, %s9870_s26  ;;  %p9877_p10 = scmp.lt.u32.totalorder %s9870_s26, %s12834_s28 }
  0x93   : > { %p9873_p6 = pnand %p9871_p5, %p10286_p0 }
  0x95   : > { %p9874_p9 = pneg %p9873_p6 }
  0x97   : > { %p9879_p13 = pnand %p9877_p10, %p9874_p9 }
  0x99   : > { %9882 = shalt.err (!%p9879_p13)
}
  0x9a   : > { %s9883_s29 = scalar_lea.vmem %s507_s4, 30720  ;;  %p9891_p4 = scmp.lt.s32.totalorder %s507_s4, %s507_s4 }
  0x9b   : > { %p9884_p1 = scmp.ne.s32.totalorder %s507_s4, %s9883_s29  ;;  %p9892_p7 = scmp.lt.s32.totalorder %s9883_s29, %s9883_s29 }
  0x9d   : > { %p9886_p2 = pnand %p9884_p1, %p10286_p0  ;;  %p9893_p8 = por %p9892_p7, %p9891_p4 }
  0x9f   : > { %p9887_p3 = pneg %p9886_p2 }
  0xa1   : > { %p9894_p11 = pnand %p9893_p8, %p9887_p3 }
  0xa3   : > { %9897 = shalt.err (!%p9894_p11)
}
  0xa4   : > { %s12835_s20 = smov 16   ;;  %s12836_s17 = smov 256  }
  0xa5   : > { %9488 = dma.hbm_to_vmem [thread:$0]  (!%p10274_p12), %s12834_s28, 30720, %s507_s4, [#allocation3], %s12836_s17, %s12836_s17, %s12835_s20  }
  0xa6   : > { %s10103_s22 = smov [#allocation7]   ;;  %s10104_s23 = smov [#allocation10]  }
  0xa7   : > { %s535_s26 = sshll.u32 %s10103_s22, 4  ;;  %s576_s21 = sshll.u32 %s10104_s23, 4  ;;  %s536_s26 = int_to_ptr.vmem [resolvable:$true] %s535_s26  ;;  %s577_s21 = int_to_ptr.vmem [resolvable:$true] %s576_s21 }
  0xa8   : > { %s12837_s29 = sld [smem:[#allocation36_spill]] }
  0xae   : > { %s9898_s1 = scalar_lea.hbm %s12837_s29, 3072 }
  0xaf   : > { %p9899_p5 = scmp.ne.s32.totalorder %s12837_s29, %s9898_s1  ;;  %p9905_p10 = scmp.lt.u32.totalorder %s9898_s1, %s12837_s29 }
  0xb1   : > { %p9901_p6 = pnand %p9899_p5, %p10286_p0 }
  0xb3   : > { %p9902_p9 = pneg %p9901_p6 }
  0xb5   : > { %p9907_p13 = pnand %p9905_p10, %p9902_p9 }
  0xb7   : > { %9910 = shalt.err (!%p9907_p13)
}
  0xb8   : > { %s9911_s4 = scalar_lea.vmem %s536_s26, 3072  ;;  %p9919_p4 = scmp.lt.s32.totalorder %s536_s26, %s536_s26 }
  0xb9   : > { %p9912_p1 = scmp.ne.s32.totalorder %s536_s26, %s9911_s4  ;;  %p9920_p7 = scmp.lt.s32.totalorder %s9911_s4, %s9911_s4 }
  0xbb   : > { %p9914_p2 = pnand %p9912_p1, %p10286_p0  ;;  %p9921_p8 = por %p9920_p7, %p9919_p4 }
  0xbd   : > { %p9915_p3 = pneg %p9914_p2 }
  0xbf   : > { %p9922_p11 = pnand %p9921_p8, %p9915_p3 }
  0xc1   : > { %9925 = shalt.err (!%p9922_p11)
}
  0xc2   : > { %9494 = dma.hbm_to_vmem [thread:$0]  (!%p10274_p12), %s12837_s29, 3072, %s536_s26, [#allocation6], %s12836_s17, %s12836_s17, %s12835_s20  }
  0xc3   : > { %s9926_s18 = scalar_lea.hbm %s12771_s11, 512 }
  0xc4   : > { %p9927_p5 = scmp.ne.s32.totalorder %s12771_s11, %s9926_s18  ;;  %p9933_p10 = scmp.lt.u32.totalorder %s9926_s18, %s12771_s11 }
  0xc6   : > { %p9929_p6 = pnand %p9927_p5, %p10286_p0 }
  0xc8   : > { %p9930_p9 = pneg %p9929_p6 }
  0xca   : > { %p9935_p13 = pnand %p9933_p10, %p9930_p9 }
  0xcc   : > { %9938 = shalt.err (!%p9935_p13)
}
  0xcd   : > { %s9939_s19 = scalar_lea.vmem %s577_s21, 512  ;;  %p9947_p4 = scmp.lt.s32.totalorder %s577_s21, %s577_s21 }
  0xce   : > { %p9940_p1 = scmp.ne.s32.totalorder %s577_s21, %s9939_s19  ;;  %p9948_p7 = scmp.lt.s32.totalorder %s9939_s19, %s9939_s19 }
  0xd0   : > { %p9942_p2 = pnand %p9940_p1, %p10286_p0  ;;  %p9949_p8 = por %p9948_p7, %p9947_p4 }
  0xd2   : > { %p9943_p3 = pneg %p9942_p2 }
  0xd4   : > { %p9950_p11 = pnand %p9949_p8, %p9943_p3 }
  0xd6   : > { %9953 = shalt.err (!%p9950_p11)
}
  0xd7   : > { %s12838_s20 = smov 8   ;;  %s12839_s17 = smov 128  }
  0xd8   : > { %9500 = dma.hbm_to_vmem [thread:$0]  (!%p10274_p12), %s12771_s11, 512, %s577_s21, [#allocation9], %s12839_s17, %s12839_s17, %s12838_s20  }
  0xd9   : > { %s10105_s5 = smov [#allocation13]   ;;  %s10106_s1 = smov [#allocation16]  }
  0xda   : > { %s602_s3 = sshll.u32 %s10105_s5, 4  ;;  %s628_s24 = sshll.u32 %s10106_s1, 4  ;;  %s603_s3 = int_to_ptr.vmem [resolvable:$true] %s602_s3  ;;  %s629_s24 = int_to_ptr.vmem [resolvable:$true] %s628_s24 }
  0xdb   : > { %s9954_s23 = scalar_lea.hbm %s12773_s13, 2560 }
  0xdc   : > { %p9955_p5 = scmp.ne.s32.totalorder %s12773_s13, %s9954_s23  ;;  %p9961_p10 = scmp.lt.u32.totalorder %s9954_s23, %s12773_s13 }
  0xde   : > { %p9957_p6 = pnand %p9955_p5, %p10286_p0 }
  0xe0   : > { %p9958_p9 = pneg %p9957_p6 }
  0xe2   : > { %p9963_p13 = pnand %p9961_p10, %p9958_p9 }
  0xe4   : > { %9966 = shalt.err (!%p9963_p13)
}
  0xe5   : > { %s9967_s21 = scalar_lea.vmem %s603_s3, 2560  ;;  %p9975_p4 = scmp.lt.s32.totalorder %s603_s3, %s603_s3 }
  0xe6   : > { %p9968_p1 = scmp.ne.s32.totalorder %s603_s3, %s9967_s21  ;;  %p9976_p7 = scmp.lt.s32.totalorder %s9967_s21, %s9967_s21 }
  0xe8   : > { %p9970_p2 = pnand %p9968_p1, %p10286_p0  ;;  %p9977_p8 = por %p9976_p7, %p9975_p4 }
  0xea   : > { %p9971_p3 = pneg %p9970_p2 }
  0xec   : > { %p9978_p11 = pnand %p9977_p8, %p9971_p3 }
  0xee   : > { %9981 = shalt.err (!%p9978_p11)
}
  0xef   : > { %9506 = dma.hbm_to_vmem [thread:$0]  (!%p10274_p12), %s12773_s13, 2560, %s603_s3, [#allocation12], %s12839_s17, %s12839_s17, %s12838_s20  }
  0xf0   : > { %s9982_s22 = scalar_lea.hbm %s12775_s15, 512 }
  0xf1   : > { %p9983_p5 = scmp.ne.s32.totalorder %s12775_s15, %s9982_s22  ;;  %p9989_p10 = scmp.lt.u32.totalorder %s9982_s22, %s12775_s15 }
  0xf3   : > { %p9985_p6 = pnand %p9983_p5, %p10286_p0 }
  0xf5   : > { %p9986_p9 = pneg %p9985_p6 }
  0xf7   : > { %p9991_p13 = pnand %p9989_p10, %p9986_p9 }
  0xf9   : > { %9994 = shalt.err (!%p9991_p13)
}
  0xfa   : > { %s9995_s26 = scalar_lea.vmem %s629_s24, 512  ;;  %p10003_p4 = scmp.lt.s32.totalorder %s629_s24, %s629_s24 }
  0xfb   : > { %p9996_p1 = scmp.ne.s32.totalorder %s629_s24, %s9995_s26  ;;  %p10004_p7 = scmp.lt.s32.totalorder %s9995_s26, %s9995_s26 }
  0xfd   : > { %p9998_p2 = pnand %p9996_p1, %p10286_p0  ;;  %p10005_p8 = por %p10004_p7, %p10003_p4 }
  0xff   : > { %p9999_p3 = pneg %p9998_p2 }
 0x101   : > { %p10006_p11 = pnand %p10005_p8, %p9999_p3 }
 0x103   : > { %10009 = shalt.err (!%p10006_p11)
}
 0x104   : > { %9512 = dma.hbm_to_vmem [thread:$0]  (!%p10274_p12), %s12775_s15, 512, %s629_s24, [#allocation15], %s12839_s17, %s12839_s17, %s12838_s20  }
 0x105   : > { %p12840_p5 = scmp.ne.s32.totalorder %s12829_s30, 0 }
 0x106   : > { %p12841_p0 = scmp.eq.s32.totalorder (!%p12840_p5), %s10238_s2, 0 }
 0x107   : > { %665 = sbr.rel (%p12840_p5) target bundleno = 4146 (0x1032), region = 100 }
 0x10e   : > { %10055 = dma.done.wait (%p12841_p0), [#allocation3], 30720   ;;  %p12842_p6 = pmov %p12841_p0 }
 0x10f   : > { %p12843_p9 = pmov %p12841_p0 }
 0x110   : > { %10057 = vsyncadd (%p12842_p6), [#allocation3], 4294936576 }
 0x111   : > { %10059 = dma.done.wait (%p12843_p9), [#allocation6], 5632   ;;  %p12844_p10 = pmov %p12841_p0 }
 0x112   : > { %p12845_p13 = pmov %p12841_p0 }
 0x113   : > { %10061 = vsyncadd (%p12844_p10), [#allocation6], 4294961664 }
 0x114   : > { %10063 = dma.done.wait (%p12845_p13), [#allocation9], 3584   ;;  %p12846_p12 = pmov %p12841_p0 }
 0x115   : > { %p12847_p1 = pmov %p12841_p0 }
 0x116   : > { %10065 = vsyncadd (%p12846_p12), [#allocation9], 4294963712 }
 0x117   : > { %10067 = dma.done.wait (%p12847_p1), [#allocation12], 3072   ;;  %p12848_p2 = pmov %p12841_p0 }
 0x118   : > { %p12849_p3 = pmov %p12841_p0 }
 0x119   : > { %10069 = vsyncadd (%p12848_p2), [#allocation12], 4294964224 }
 0x11a   : > { %10071 = dma.done.wait (%p12849_p3), [#allocation15], 3072   ;;  %p12850_p4 = pmov %p12841_p0 }
 0x11b   : > { %s755_s30 = smul.u32 28, %s10238_s2  ;;  %v10107_v0 = vmov 0.0|0.0   ;;  %vm838_vm0 = vcmask 785408   ;;  %s12851_s17 = sld [smem:[#allocation32_spill]]  ;;  %v1114_v1 = vld [vmem:[#allocation2 + $0x188] sm:$0xff]  ;;  %v1113_v46 = vld [vmem:[#allocation2 + $0x180] sm:$0xff] }
 0x11c   : > { %10073 = vsyncadd (%p12850_p4), [#allocation15], 4294964224  ;;  %8601 = vmatprep.subr.bf16.mxu1 %v10107_v0  ;;  %8559 = vmatprep.subr.bf16.mxu0 %v10107_v0  ;;  %v791_v23 = vld [vmem:[#allocation2 + $0x8] sm:$0xff]  ;;  %v790_v47 = vld [vmem:[#allocation2] sm:$0xff]  ;;  %vm1490_vm1 = vcmask 1045504   ;;  %vm1453_vm2 = vcmask 228352  }
 0x11d   : > { %p756_p7 = scmp.lt.s32.totalorder %s755_s30, 55  ;;  %7567 = vmatprep.mubr.msk.f32.mxu1 %vm838_vm0, %v1114_v1  ;;  %7543 = vmatprep.mubr.msk.f32.mxu0 %vm838_vm0, %v791_v23  ;;  %v9587_v44 = vld [vmem:[#allocation5 + $0x24] ss:$8 sps:$4 sm:$0xff]   ;;  %v1116_v48 = vld [vmem:[#allocation2 + $0x198] sm:$0xff]  ;;  %v9585_v50 = vld [vmem:[#allocation5 + $0x20] ss:$8 sps:$4 sm:$0xff]  }
 0x11e   : > { %v793_v49 = vld [vmem:[#allocation2 + $0x18] sm:$0xff]  ;;  %v1115_v51 = vld [vmem:[#allocation2 + $0x190] sm:$0xff]  ;;  %v1118_v53 = vld [vmem:[#allocation2 + $0x1a8] sm:$0xff]  ;;  %vm3699_vm3 = vcmask 523264   ;;  %s12852_s1 = sld [smem:[#allocation35_spill]]  ;;  %vm4124_vm4 = vcmask 916480  }
 0x11f   : > { %s12871_s30 = smov (!%p756_p7, %s755_s30), 55  ;;  %v792_v52 = vld [vmem:[#allocation2 + $0x10] sm:$0xff]  ;;  %v795_v54 = vld [vmem:[#allocation2 + $0x28] sm:$0xff]  ;;  %v1117_v55 = vld [vmem:[#allocation2 + $0x1a0] sm:$0xff]  ;;  %vm4867_vm5 = vcmask 1043456   ;;  %vm4854_vm6 = vcmask 982016  }
 0x120   : > { %s7542_s25 = sshll.u32 %s12871_s30, 3  ;;  %v794_v56 = vld [vmem:[#allocation2 + $0x20] sm:$0xff]  ;;  %v1120_v57 = vld [vmem:[#allocation2 + $0x1b8] sm:$0xff]  ;;  %v1119_v59 = vld [vmem:[#allocation2 + $0x1b0] sm:$0xff]  ;;  %vm6399_vm7 = vcmask 261120   ;;  %vm10110_vm8 = vmmov 0  }
 0x121   : > { %s10501_s24 = scalar_lea.vmem %s12851_s17, %s7542_s25  ;;  %v797_v58 = vld [vmem:[#allocation2 + $0x38] sm:$0xff]  ;;  %v796_v60 = vld [vmem:[#allocation2 + $0x30] sm:$0xff]  ;;  %v1122_v61 = vld [vmem:[#allocation2 + $0x1c8] sm:$0xff]  ;;  %s12853_s20 = sld [smem:[#allocation38_spill]]  ;;  %vm6812_vm9 = vcmask 654336   ;;  %vm7300_vm10 = vcmask 1040384  }
 0x122   : > { %v762_v2 = vld [vmem:[%s10501_s24] sm:$0xff]  ;;  %v763_v3 = vld [vmem:[%s10501_s24 + $0x8] sm:$0xff]  ;;  %v764_v4 = vld [vmem:[%s10501_s24 + $0x10] sm:$0xff]  ;;  %s12854_s22 = sld [smem:[#allocation40_spill]]  ;;  %s12856_s0 = sld [smem:[#allocation39_spill]]  ;;  %vm7296_vm11 = vcmask 408576  }
 0x123   : > { %v10507_v5 = vpack.c.bf16 %v763_v3, %v762_v2  ;;  %v765_v6 = vld [vmem:[%s10501_s24 + $0x18] sm:$0xff]  ;;  %v766_v8 = vld [vmem:[%s10501_s24 + $0x20] sm:$0xff]  ;;  %v767_v9 = vld [vmem:[%s10501_s24 + $0x28] sm:$0xff]  ;;  %s12857_s4 = sld [smem:[#allocation41_spill]]  ;;  %vm7344_vm12 = vcmask 80896   ;;  %s12858_s5 = sld [smem:[#allocation25_spill]] }
 0x124   : > { %v10511_v7 = vpack.c.bf16 %v765_v6, %v764_v4  ;;  %v10519_v10 = vpack.c.bf16 %v767_v9, %v766_v8  ;;  %v768_v11 = vld [vmem:[%s10501_s24 + $0x30] sm:$0xff]  ;;  %v769_v12 = vld [vmem:[%s10501_s24 + $0x38] sm:$0xff]  ;;  %v770_v14 = vld [vmem:[%s10501_s24 + $0x40] sm:$0xff]  ;;  %s8115_s23 = sshll.u32 %s10238_s2, 7  ;;  %s12860_s21 = sld [smem:[#allocation42_spill]] }
 0x125   : > { %8603 = vmatpush1.bf16.msra.mxu1 %v10507_v5  ;;  %8561 = vmatpush1.bf16.msra.mxu0 %v10507_v5  ;;  %v10527_v13 = vpack.c.bf16 %v769_v12, %v768_v11  ;;  %v771_v15 = vld [vmem:[%s10501_s24 + $0x48] sm:$0xff]  ;;  %v772_v17 = vld [vmem:[%s10501_s24 + $0x50] sm:$0xff]  ;;  %v773_v18 = vld [vmem:[%s10501_s24 + $0x58] sm:$0xff]  ;;  %s10111_s2 = smov [#allocation17]  }
 0x126   : > { %8604 = vmatprep.subr.bf16.mxu1 %v10107_v0  ;;  %8562 = vmatprep.subr.bf16.mxu0 %v10107_v0  ;;  %v10535_v16 = vpack.c.bf16 %v771_v15, %v770_v14  ;;  %v10543_v19 = vpack.c.bf16 %v773_v18, %v772_v17  ;;  %v774_v20 = vld [vmem:[%s10501_s24 + $0x60] sm:$0xff]  ;;  %v775_v21 = vld [vmem:[%s10501_s24 + $0x68] sm:$0xff]  ;;  %v776_v24 = vld [vmem:[%s10501_s24 + $0x70] sm:$0xff]  ;;  %s10014_s17 = sshll.u32 %s10111_s2, 4  ;;  %s10015_s17 = int_to_ptr.vmem [resolvable:$false] %s10014_s17 }
 0x127   : > { %v10551_v22 = vpack.c.bf16 %v775_v21, %v774_v20  ;;  %v777_v25 = vld [vmem:[%s10501_s24 + $0x78] sm:$0xff]  ;;  %v778_v27 = vld [vmem:[%s10501_s24 + $0x80] sm:$0xff]  ;;  %v779_v28 = vld [vmem:[%s10501_s24 + $0x88] sm:$0xff] }
 0x128   : > { %v10560_v26 = vpack.c.bf16 %v777_v25, %v776_v24  ;;  %v10568_v29 = vpack.c.bf16 %v779_v28, %v778_v27  ;;  %v780_v30 = vld [vmem:[%s10501_s24 + $0x90] sm:$0xff]  ;;  %v781_v31 = vld [vmem:[%s10501_s24 + $0x98] sm:$0xff]  ;;  %v782_v33 = vld [vmem:[%s10501_s24 + $0xa0] sm:$0xff]  ;;  %s12855_s16 = smov %s12854_s22 }
 0x129   : > { %8606 = vmatpush1.bf16.msra.mxu1 %v10511_v7  ;;  %8564 = vmatpush1.bf16.msra.mxu0 %v10511_v7  ;;  %v10576_v32 = vpack.c.bf16 %v781_v31, %v780_v30  ;;  %v783_v34 = vld [vmem:[%s10501_s24 + $0xa8] sm:$0xff]  ;;  %v784_v36 = vld [vmem:[%s10501_s24 + $0xb0] sm:$0xff]  ;;  %v785_v37 = vld [vmem:[%s10501_s24 + $0xb8] sm:$0xff]  ;;  %s752_s18 = sand.u32 1, %s12858_s5  }
 0x12a   : > { %8607 = vmatprep.subr.bf16.mxu1 %v10107_v0  ;;  %8565 = vmatprep.subr.bf16.mxu0 %v10107_v0  ;;  %v10584_v35 = vpack.c.bf16 %v783_v34, %v782_v33  ;;  %v10592_v38 = vpack.c.bf16 %v785_v37, %v784_v36  ;;  %v786_v39 = vld [vmem:[%s10501_s24 + $0xc0] sm:$0xff]  ;;  %v787_v40 = vld [vmem:[%s10501_s24 + $0xc8] sm:$0xff]  ;;  %v788_v41 = vld [vmem:[%s10501_s24 + $0xd0] sm:$0xff]  ;;  %s12717_s30 = scalar_lea.hbm %s12860_s21, %s8115_s23  ;;  %s7359_s25 = scalar_lea.sflag [#allocation4], %s752_s18 }
 0x12b   : > { %v789_v42 = vld [vmem:[%s10501_s24 + $0xd8] sm:$0xff]  ;;  %v10602_v43 = vpack.c.bf16 %v787_v40, %v786_v39  ;;  %v799_v62 = vld [vmem:[#allocation2 + $0x48] sm:$0xff]  ;;  %v1121_v63 = vld [vmem:[#allocation2 + $0x1c0] sm:$0xff]  ;;  %s10016_s24 = scalar_lea.vmem %s10015_s17, 256 }
 0x12c   : > { %v10608_v45 = vpack.c.bf16 %v789_v42, %v788_v41  ;;  %v798_v1 = vld [vmem:[#allocation2 + $0x40] sm:$0xff]  ;;  %v1124_v2 = vld [vmem:[#allocation2 + $0x1d8] sm:$0xff]  ;;  %v1123_v4 = vld [vmem:[#allocation2 + $0x1d0] sm:$0xff] }
 0x12d   : > { %8609 = vmatpush1.bf16.msra.mxu1 %v10519_v10  ;;  %8567 = vmatpush1.bf16.msra.mxu0 %v10519_v10  ;;  %v801_v3 = vld [vmem:[#allocation2 + $0x58] sm:$0xff]  ;;  %v800_v6 = vld [vmem:[#allocation2 + $0x50] sm:$0xff]  ;;  %v1126_v8 = vld [vmem:[#allocation2 + $0x1e8] sm:$0xff] }
 0x12e   : > { %8610 = vmatprep.subr.bf16.mxu1 %v10107_v0  ;;  %8568 = vmatprep.subr.bf16.mxu0 %v10107_v0  ;;  %v803_v9 = vld [vmem:[#allocation2 + $0x68] sm:$0xff]  ;;  %v1125_v11 = vld [vmem:[#allocation2 + $0x1e0] sm:$0xff]  ;;  %v1128_v14 = vld [vmem:[#allocation2 + $0x1f8] sm:$0xff] }
 0x12f   : > { %v802_v12 = vld [vmem:[#allocation2 + $0x60] sm:$0xff]  ;;  %v805_v15 = vld [vmem:[#allocation2 + $0x78] sm:$0xff]  ;;  %v1127_v17 = vld [vmem:[#allocation2 + $0x1f0] sm:$0xff] }
 0x130   : > { %v804_v18 = vld [vmem:[#allocation2 + $0x70] sm:$0xff]  ;;  %v1130_v20 = vld [vmem:[#allocation2 + $0x208] sm:$0xff]  ;;  %v1129_v23 = vld [vmem:[#allocation2 + $0x200] sm:$0xff] }
 0x131   : > { %8612 = vmatpush1.bf16.msra.mxu1 %v10527_v13  ;;  %8570 = vmatpush1.bf16.msra.mxu0 %v10527_v13  ;;  %v807_v21 = vld [vmem:[#allocation2 + $0x88] sm:$0xff]  ;;  %v806_v24 = vld [vmem:[#allocation2 + $0x80] sm:$0xff]  ;;  %v1132_v25 = vld [vmem:[#allocation2 + $0x218] sm:$0xff] }
 0x132   : > { %8613 = vmatprep.subr.bf16.mxu1 %v10107_v0  ;;  %8571 = vmatprep.subr.bf16.mxu0 %v10107_v0  ;;  %v809_v27 = vld [vmem:[#allocation2 + $0x98] sm:$0xff]  ;;  %v1131_v28 = vld [vmem:[#allocation2 + $0x210] sm:$0xff]  ;;  %v1134_v31 = vld [vmem:[#allocation2 + $0x228] sm:$0xff] }
 0x133   : > { %v808_v30 = vld [vmem:[#allocation2 + $0x90] sm:$0xff]  ;;  %v811_v33 = vld [vmem:[#allocation2 + $0xa8] sm:$0xff]  ;;  %v1133_v34 = vld [vmem:[#allocation2 + $0x220] sm:$0xff] }
 0x134   : > { %v810_v36 = vld [vmem:[#allocation2 + $0xa0] sm:$0xff]  ;;  %v1136_v37 = vld [vmem:[#allocation2 + $0x238] sm:$0xff]  ;;  %v1135_v40 = vld [vmem:[#allocation2 + $0x230] sm:$0xff] }
 0x135   : > { %8615 = vmatpush1.bf16.msra.mxu1 %v10535_v16  ;;  %8573 = vmatpush1.bf16.msra.mxu0 %v10535_v16  ;;  %v813_v39 = vld [vmem:[#allocation2 + $0xb8] sm:$0xff]  ;;  %v812_v41 = vld [vmem:[#allocation2 + $0xb0] sm:$0xff]  ;;  %v1138_v42 = vld [vmem:[#allocation2 + $0x248] sm:$0xff] }
 0x136   : > { %8616 = vmatprep.subr.bf16.mxu1 %v10107_v0  ;;  %8574 = vmatprep.subr.bf16.mxu0 %v10107_v0 }
 0x139   : > { %8618 = vmatpush1.bf16.msra.mxu1 %v10543_v19  ;;  %8576 = vmatpush1.bf16.msra.mxu0 %v10543_v19 }
 0x13a   : > { %8619 = vmatprep.subr.bf16.mxu1 %v10107_v0  ;;  %8577 = vmatprep.subr.bf16.mxu0 %v10107_v0 }
 0x13d   : > { %8621 = vmatpush1.bf16.msra.mxu1 %v10551_v22  ;;  %8579 = vmatpush1.bf16.msra.mxu0 %v10551_v22 }
 0x13e   : > { %8622 = vmatprep.subr.bf16.mxu1 %v10107_v0  ;;  %8580 = vmatprep.subr.bf16.mxu0 %v10107_v0 }
 0x141   : > { %8624 = vmatpush1.bf16.msra.mxu1 %v10560_v26  ;;  %8582 = vmatpush1.bf16.msra.mxu0 %v10560_v26 }
 0x142   : > { %8625 = vmatprep.subr.bf16.mxu1 %v10107_v0  ;;  %8583 = vmatprep.subr.bf16.mxu0 %v10107_v0 }
 0x145   : > { %8627 = vmatpush1.bf16.msra.mxu1 %v10568_v29  ;;  %8585 = vmatpush1.bf16.msra.mxu0 %v10568_v29 }
 0x146   : > { %8628 = vmatprep.subr.bf16.mxu1 %v10107_v0  ;;  %8586 = vmatprep.subr.bf16.mxu0 %v10107_v0 }
 0x149   : > { %8630 = vmatpush1.bf16.msra.mxu1 %v10576_v32  ;;  %8588 = vmatpush1.bf16.msra.mxu0 %v10576_v32 }
 0x14a   : > { %8631 = vmatprep.subr.bf16.mxu1 %v10107_v0  ;;  %8589 = vmatprep.subr.bf16.mxu0 %v10107_v0 }
 0x14d   : > { %8633 = vmatpush1.bf16.msra.mxu1 %v10584_v35  ;;  %8591 = vmatpush1.bf16.msra.mxu0 %v10584_v35 }
 0x14e   : > { %8634 = vmatprep.subr.bf16.mxu1 %v10107_v0  ;;  %8592 = vmatprep.subr.bf16.mxu0 %v10107_v0 }
 0x151   : > { %8636 = vmatpush1.bf16.msra.mxu1 %v10592_v38  ;;  %8594 = vmatpush1.bf16.msra.mxu0 %v10592_v38 }
 0x152   : > { %8637 = vmatprep.subr.bf16.mxu1 %v10107_v0  ;;  %8595 = vmatprep.subr.bf16.mxu0 %v10107_v0 }
 0x155   : > { %8639 = vmatpush1.bf16.msra.mxu1 %v10602_v43  ;;  %8597 = vmatpush1.bf16.msra.mxu0 %v10602_v43 }
 0x156   : > { %8640 = vmatprep.subr.bf16.mxu1 %v10107_v0  ;;  %8598 = vmatprep.subr.bf16.mxu0 %v10107_v0 }
 0x159   : > { %8642 = vmatpush1.bf16.msra.mxu1 %v10608_v45  ;;  %8600 = vmatpush1.bf16.msra.mxu0 %v10608_v45 }
 0x15a   : > { %8643 = vmatprep.subr.bf16.mxu1 %v10107_v0  ;;  %1497 = vmatprep.subr.bf16.mxu0 %v9587_v44  ;;  %v815_v44 = vld [vmem:[#allocation2 + $0xc8] sm:$0xff] }
 0x15c   : > { %1298 = vmatmul.mubr.f32.vlgmr.msra.gmra.mrb[0].mxu1 %v1113_v46  ;;  %976 = vmatmul.mubr.f32.vlgmr.msra.gmra.mrb[0].mxu0 %v790_v47  ;;  %v1137_v46 = vld [vmem:[#allocation2 + $0x240] sm:$0xff] }
 0x15d   : > { %7568 = vmatprep.mubr.msk.f32.mxu1 %vm838_vm0, %v1116_v48  ;;  %7544 = vmatprep.mubr.msk.f32.mxu0 %vm838_vm0, %v793_v49  ;;  %v814_v47 = vld [vmem:[#allocation2 + $0xc0] sm:$0xff]  ;;  %v1140_v48 = vld [vmem:[#allocation2 + $0x258] sm:$0xff] }
 0x15e   : > { %8645 = vmatpush1.bf16.msra.mxu1 %v10507_v5  ;;  %1498 = vmatpush1.bf16.msra.mxu0 %v9585_v50  ;;  %v817_v49 = vld [vmem:[#allocation2 + $0xd8] sm:$0xff]  ;;  %v1139_v50 = vld [vmem:[#allocation2 + $0x250] sm:$0xff] }
 0x15f   : > { %8646 = vmatprep.subr.bf16.mxu1 %v10107_v0 }
 0x160   : > { %1303 = vmatmul.mubr.f32.gmra.mrb[2].mxu1 %v1115_v51  ;;  %981 = vmatmul.mubr.f32.gmra.mrb[2].mxu0 %v792_v52  ;;  %v816_v51 = vld [vmem:[#allocation2 + $0xd0] sm:$0xff]  ;;  %v1142_v52 = vld [vmem:[#allocation2 + $0x268] sm:$0xff] }
 0x161   : > { %7569 = vmatprep.mubr.msk.f32.mxu1 %vm838_vm0, %v1118_v53  ;;  %7545 = vmatprep.mubr.msk.f32.mxu0 %vm838_vm0, %v795_v54  ;;  %v819_v53 = vld [vmem:[#allocation2 + $0xe8] sm:$0xff]  ;;  %v1141_v54 = vld [vmem:[#allocation2 + $0x260] sm:$0xff] }
 0x162   : > { %8648 = vmatpush1.bf16.msra.mxu1 %v10511_v7 }
 0x163   : > { %8649 = vmatprep.subr.bf16.mxu1 %v10107_v0 }
 0x164   : > { %1308 = vmatmul.mubr.f32.gmra.mrb[4].mxu1 %v1117_v55  ;;  %986 = vmatmul.mubr.f32.gmra.mrb[4].mxu0 %v794_v56  ;;  %v818_v55 = vld [vmem:[#allocation2 + $0xe0] sm:$0xff]  ;;  %v1144_v56 = vld [vmem:[#allocation2 + $0x278] sm:$0xff] }
 0x165   : > { %7570 = vmatprep.mubr.msk.f32.mxu1 %vm838_vm0, %v1120_v57  ;;  %7546 = vmatprep.mubr.msk.f32.mxu0 %vm838_vm0, %v797_v58  ;;  %v821_v57 = vld [vmem:[#allocation2 + $0xf8] sm:$0xff]  ;;  %v1143_v58 = vld [vmem:[#allocation2 + $0x270] sm:$0xff] }
 0x166   : > { %8651 = vmatpush1.bf16.msra.mxu1 %v10519_v10 }
 0x167   : > { %8652 = vmatprep.subr.bf16.mxu1 %v10107_v0 }
 0x168   : > { %1313 = vmatmul.mubr.f32.gmra.mrb[6].mxu1 %v1119_v59  ;;  %991 = vmatmul.mubr.f32.gmra.mrb[6].mxu0 %v796_v60  ;;  %v820_v59 = vld [vmem:[#allocation2 + $0xf0] sm:$0xff]  ;;  %v1146_v60 = vld [vmem:[#allocation2 + $0x288] sm:$0xff] }
 0x169   : > { %7571 = vmatprep.mubr.msk.f32.mxu1 %vm838_vm0, %v1122_v61  ;;  %7547 = vmatprep.mubr.msk.f32.mxu0 %vm838_vm0, %v799_v62  ;;  %v823_v61 = vld [vmem:[#allocation2 + $0x108] sm:$0xff]  ;;  %v1145_v62 = vld [vmem:[#allocation2 + $0x280] sm:$0xff] }
 0x16a   : > { %8654 = vmatpush1.bf16.msra.mxu1 %v10527_v13 }
 0x16b   : > { %8655 = vmatprep.subr.bf16.mxu1 %v10107_v0 }
 0x16c   : > { %1318 = vmatmul.mubr.f32.gmra.mrb[8].mxu1 %v1121_v63  ;;  %996 = vmatmul.mubr.f32.gmra.mrb[8].mxu0 %v798_v1  ;;  %v822_v63 = vld [vmem:[#allocation2 + $0x100] sm:$0xff]  ;;  %v1148_v1 = vld [vmem:[#allocation2 + $0x298] sm:$0xff] }
 0x16d   : > { %7572 = vmatprep.mubr.msk.f32.mxu1 %vm838_vm0, %v1124_v2  ;;  %7548 = vmatprep.mubr.msk.f32.mxu0 %vm838_vm0, %v801_v3  ;;  %v825_v2 = vld [vmem:[#allocation2 + $0x118] sm:$0xff]  ;;  %v1147_v3 = vld [vmem:[#allocation2 + $0x290] sm:$0xff] }
 0x16e   : > { %8657 = vmatpush1.bf16.msra.mxu1 %v10535_v16 }
 0x16f   : > { %8658 = vmatprep.subr.bf16.mxu1 %v10107_v0 }
 0x170   : > { %1323 = vmatmul.mubr.f32.gmra.mrb[10].mxu1 %v1123_v4  ;;  %1001 = vmatmul.mubr.f32.gmra.mrb[10].mxu0 %v800_v6  ;;  %v824_v4 = vld [vmem:[#allocation2 + $0x110] sm:$0xff]  ;;  %v1150_v6 = vld [vmem:[#allocation2 + $0x2a8] sm:$0xff] }
 0x171   : > { %7573 = vmatprep.mubr.msk.f32.mxu1 %vm838_vm0, %v1126_v8  ;;  %7549 = vmatprep.mubr.msk.f32.mxu0 %vm838_vm0, %v803_v9  ;;  %v827_v8 = vld [vmem:[#allocation2 + $0x128] sm:$0xff]  ;;  %v1149_v9 = vld [vmem:[#allocation2 + $0x2a0] sm:$0xff] }
 0x172   : > { %8660 = vmatpush1.bf16.msra.mxu1 %v10543_v19 }
 0x173   : > { %8661 = vmatprep.subr.bf16.mxu1 %v10107_v0 }
 0x174   : > { %1328 = vmatmul.mubr.f32.gmra.mrb[12].mxu1 %v1125_v11  ;;  %1006 = vmatmul.mubr.f32.gmra.mrb[12].mxu0 %v802_v12  ;;  %v826_v11 = vld [vmem:[#allocation2 + $0x120] sm:$0xff]  ;;  %v1152_v12 = vld [vmem:[#allocation2 + $0x2b8] sm:$0xff] }
 0x175   : > { %7574 = vmatprep.mubr.msk.f32.mxu1 %vm838_vm0, %v1128_v14  ;;  %7550 = vmatprep.mubr.msk.f32.mxu0 %vm838_vm0, %v805_v15  ;;  %v829_v14 = vld [vmem:[#allocation2 + $0x138] sm:$0xff]  ;;  %v1151_v15 = vld [vmem:[#allocation2 + $0x2b0] sm:$0xff] }
 0x176   : > { %8663 = vmatpush1.bf16.msra.mxu1 %v10551_v22 }
 0x177   : > { %8664 = vmatprep.subr.bf16.mxu1 %v10107_v0 }
 0x178   : > { %1333 = vmatmul.mubr.f32.gmra.mrb[14].mxu1 %v1127_v17  ;;  %1011 = vmatmul.mubr.f32.gmra.mrb[14].mxu0 %v804_v18  ;;  %v828_v17 = vld [vmem:[#allocation2 + $0x130] sm:$0xff]  ;;  %v1154_v18 = vld [vmem:[#allocation2 + $0x2c8] sm:$0xff] }
 0x179   : > { %7575 = vmatprep.mubr.msk.f32.mxu1 %vm838_vm0, %v1130_v20  ;;  %7551 = vmatprep.mubr.msk.f32.mxu0 %vm838_vm0, %v807_v21  ;;  %v831_v20 = vld [vmem:[#allocation2 + $0x148] sm:$0xff]  ;;  %v1153_v21 = vld [vmem:[#allocation2 + $0x2c0] sm:$0xff] }
 0x17a   : > { %8666 = vmatpush1.bf16.msra.mxu1 %v10560_v26 }
 0x17b   : > { %8667 = vmatprep.subr.bf16.mxu1 %v10107_v0 }
 0x17c   : > { %1338 = vmatmul.mubr.f32.gmra.mrb[16].mxu1 %v1129_v23  ;;  %1016 = vmatmul.mubr.f32.gmra.mrb[16].mxu0 %v806_v24  ;;  %v830_v23 = vld [vmem:[#allocation2 + $0x140] sm:$0xff]  ;;  %v1156_v24 = vld [vmem:[#allocation2 + $0x2d8] sm:$0xff] }
 0x17d   : > { %7576 = vmatprep.mubr.msk.f32.mxu1 %vm838_vm0, %v1132_v25  ;;  %7552 = vmatprep.mubr.msk.f32.mxu0 %vm838_vm0, %v809_v27  ;;  %v833_v25 = vld [vmem:[#allocation2 + $0x158] sm:$0xff]  ;;  %v1155_v27 = vld [vmem:[#allocation2 + $0x2d0] sm:$0xff] }
 0x17e   : > { %8669 = vmatpush1.bf16.msra.mxu1 %v10568_v29 }
 0x17f   : > { %8670 = vmatprep.subr.bf16.mxu1 %v10107_v0 }
 0x180   : > { %1343 = vmatmul.mubr.f32.gmra.mrb[18].mxu1 %v1131_v28  ;;  %1021 = vmatmul.mubr.f32.gmra.mrb[18].mxu0 %v808_v30  ;;  %v832_v28 = vld [vmem:[#allocation2 + $0x150] sm:$0xff]  ;;  %v1158_v30 = vld [vmem:[#allocation2 + $0x2e8] sm:$0xff] }
 0x181   : > { %7577 = vmatprep.mubr.msk.f32.mxu1 %vm838_vm0, %v1134_v31  ;;  %7553 = vmatprep.mubr.msk.f32.mxu0 %vm838_vm0, %v811_v33  ;;  %v835_v31 = vld [vmem:[#allocation2 + $0x168] sm:$0xff]  ;;  %v9588_v33 = vld [vmem:[#allocation5 + $0x34] ss:$8 sps:$4 sm:$0x3f]  }
 0x182   : > { %8672 = vmatpush1.bf16.msra.mxu1 %v10576_v32  ;;  %7595 = vmatprep.subr.msk.bf16.mxu0 %vm1490_vm1, %v9588_v33  ;;  %v1903_v33 = vld [vmem:[#allocation2 + $0x438] sm:$0xff] }
 0x183   : > { %8673 = vmatprep.subr.bf16.mxu1 %v10107_v0 }
 0x184   : > { %1348 = vmatmul.mubr.f32.gmra.mrb[20].mxu1 %v1133_v34  ;;  %1026 = vmatmul.mubr.f32.gmra.mrb[20].mxu0 %v810_v36  ;;  %v1157_v34 = vld [vmem:[#allocation2 + $0x2e0] sm:$0xff] }
 0x185   : > { %7578 = vmatprep.mubr.msk.f32.mxu1 %vm838_vm0, %v1136_v37  ;;  %7554 = vmatprep.mubr.msk.f32.mxu0 %vm838_vm0, %v813_v39  ;;  %v834_v36 = vld [vmem:[#allocation2 + $0x160] sm:$0xff]  ;;  %v9590_v37 = vld [vmem:[#allocation5 + $0x30] ss:$8 sps:$4 sm:$0x3f]  }
 0x186   : > { %8675 = vmatpush1.bf16.msra.mxu1 %v10584_v35  ;;  %v1160_v39 = vld [vmem:[#allocation2 + $0x2f8] sm:$0xff] }
 0x187   : > { %8676 = vmatprep.subr.bf16.mxu1 %v10107_v0 }
 0x188   : > { %1353 = vmatmul.mubr.f32.gmra.mrb[22].mxu1 %v1135_v40  ;;  %1031 = vmatmul.mubr.f32.gmra.mrb[22].mxu0 %v812_v41  ;;  %v837_v40 = vld [vmem:[#allocation2 + $0x178] sm:$0xff]  ;;  %v1492_v41 = vsel %vm1490_vm1, %v9590_v37, 0  ;;  %v1904_v37 = vld [vmem:[#allocation2 + $0x440] sm:$0xff] }
 0x189   : > { %7579 = vmatprep.mubr.msk.f32.mxu1 %vm838_vm0, %v1138_v42  ;;  %7555 = vmatprep.mubr.msk.f32.mxu0 %vm838_vm0, %v815_v44  ;;  %v1159_v42 = vld [vmem:[#allocation2 + $0x2f0] sm:$0xff] }
 0x18a   : > { %8678 = vmatpush1.bf16.msra.mxu1 %v10592_v38  ;;  %v836_v44 = vld [vmem:[#allocation2 + $0x170] sm:$0xff]  ;;  %1500 = vmatpush1.bf16.msra.mxu0 %v1492_v41  ;;  %v1909_v41 = vld [vmem:[#allocation2 + $0x468] sm:$0xff] }
 0x18b   : > { %8679 = vmatprep.subr.bf16.mxu1 %v10107_v0 }
 0x18c   : > { %1358 = vmatmul.mubr.f32.gmra.mrb[24].mxu1 %v1137_v46  ;;  %1036 = vmatmul.mubr.f32.gmra.mrb[24].mxu0 %v814_v47  ;;  %v1865_v46 = vld [vmem:[#allocation2 + $0x308] sm:$0xff]  ;;  %v1864_v47 = vld [vmem:[#allocation2 + $0x300] sm:$0xff] }
 0x18d   : > { %7580 = vmatprep.mubr.msk.f32.mxu1 %vm838_vm0, %v1140_v48  ;;  %7556 = vmatprep.mubr.msk.f32.mxu0 %vm838_vm0, %v817_v49  ;;  %v10108_v48 = vmov 0   ;;  %v1867_v49 = vld [vmem:[#allocation2 + $0x318] sm:$0xff] }
 0x18e   : > { %8681 = vmatpush1.bf16.msra.mxu1 %v10602_v43 }
 0x18f   : > { %8682 = vmatprep.subr.bf16.mxu1 %v10107_v0 }
 0x190   : > { %1363 = vmatmul.mubr.f32.gmra.mrb[26].mxu1 %v1139_v50  ;;  %1041 = vmatmul.mubr.f32.gmra.mrb[26].mxu0 %v816_v51  ;;  %v1866_v50 = vld [vmem:[#allocation2 + $0x310] sm:$0xff]  ;;  %v1869_v51 = vld [vmem:[#allocation2 + $0x328] sm:$0xff] }
 0x191   : > { %7581 = vmatprep.mubr.msk.f32.mxu1 %vm838_vm0, %v1142_v52  ;;  %7557 = vmatprep.mubr.msk.f32.mxu0 %vm838_vm0, %v819_v53  ;;  %v1868_v52 = vld [vmem:[#allocation2 + $0x320] sm:$0xff]  ;;  %v1871_v53 = vld [vmem:[#allocation2 + $0x338] sm:$0xff] }
 0x192   : > { %8684 = vmatpush1.bf16.msra.mxu1 %v10608_v45 }
 0x193   : > { %8685 = vmatprep.subr.bf16.mxu1 %v10107_v0 }
 0x194   : > { %1368 = vmatmul.mubr.f32.gmra.mrb[28].mxu1 %v1141_v54  ;;  %1046 = vmatmul.mubr.f32.gmra.mrb[28].mxu0 %v818_v55  ;;  %v1870_v54 = vld [vmem:[#allocation2 + $0x330] sm:$0xff]  ;;  %v1873_v55 = vld [vmem:[#allocation2 + $0x348] sm:$0xff] }
 0x195   : > { %7582 = vmatprep.mubr.msk.f32.mxu1 %vm838_vm0, %v1144_v56  ;;  %7558 = vmatprep.mubr.msk.f32.mxu0 %vm838_vm0, %v821_v57  ;;  %v1872_v56 = vld [vmem:[#allocation2 + $0x340] sm:$0xff]  ;;  %v1875_v57 = vld [vmem:[#allocation2 + $0x358] sm:$0xff] }
 0x198   : > { %1373 = vmatmul.mubr.f32.gmra.mrb[30].mxu1 %v1143_v58  ;;  %1051 = vmatmul.mubr.f32.gmra.mrb[30].mxu0 %v820_v59  ;;  %v1874_v58 = vld [vmem:[#allocation2 + $0x350] sm:$0xff]  ;;  %v1877_v59 = vld [vmem:[#allocation2 + $0x368] sm:$0xff] }
 0x199   : > { %7583 = vmatprep.mubr.msk.f32.mxu1 %vm838_vm0, %v1146_v60  ;;  %7559 = vmatprep.mubr.msk.f32.mxu0 %vm838_vm0, %v823_v61  ;;  %v1876_v60 = vld [vmem:[#allocation2 + $0x360] sm:$0xff]  ;;  %v1879_v61 = vld [vmem:[#allocation2 + $0x378] sm:$0xff] }
 0x19c   : > { %1378 = vmatmul.mubr.f32.gmra.mrb[32].mxu1 %v1145_v62  ;;  %1056 = vmatmul.mubr.f32.gmra.mrb[32].mxu0 %v822_v63  ;;  %v1878_v62 = vld [vmem:[#allocation2 + $0x370] sm:$0xff]  ;;  %v1881_v63 = vld [vmem:[#allocation2 + $0x388] sm:$0xff] }
 0x19d   : > { %7584 = vmatprep.mubr.msk.f32.mxu1 %vm838_vm0, %v1148_v1  ;;  %7560 = vmatprep.mubr.msk.f32.mxu0 %vm838_vm0, %v825_v2  ;;  %v1880_v1 = vld [vmem:[#allocation2 + $0x380] sm:$0xff]  ;;  %v1883_v2 = vld [vmem:[#allocation2 + $0x398] sm:$0xff] }
 0x1a0   : > { %1383 = vmatmul.mubr.f32.gmra.mrb[34].mxu1 %v1147_v3  ;;  %1061 = vmatmul.mubr.f32.gmra.mrb[34].mxu0 %v824_v4  ;;  %v1882_v3 = vld [vmem:[#allocation2 + $0x390] sm:$0xff]  ;;  %v1885_v4 = vld [vmem:[#allocation2 + $0x3a8] sm:$0xff] }
 0x1a1   : > { %7585 = vmatprep.mubr.msk.f32.mxu1 %vm838_vm0, %v1150_v6  ;;  %7561 = vmatprep.mubr.msk.f32.mxu0 %vm838_vm0, %v827_v8  ;;  %v1884_v6 = vld [vmem:[#allocation2 + $0x3a0] sm:$0xff]  ;;  %v1887_v8 = vld [vmem:[#allocation2 + $0x3b8] sm:$0xff] }
 0x1a4   : > { %1388 = vmatmul.mubr.f32.gmra.mrb[36].mxu1 %v1149_v9  ;;  %1066 = vmatmul.mubr.f32.gmra.mrb[36].mxu0 %v826_v11  ;;  %v1886_v9 = vld [vmem:[#allocation2 + $0x3b0] sm:$0xff]  ;;  %v1889_v11 = vld [vmem:[#allocation2 + $0x3c8] sm:$0xff] }
 0x1a5   : > { %7586 = vmatprep.mubr.msk.f32.mxu1 %vm838_vm0, %v1152_v12  ;;  %7562 = vmatprep.mubr.msk.f32.mxu0 %vm838_vm0, %v829_v14  ;;  %v9593_v12 = vld [vmem:[#allocation5 + $0x4] ss:$8 sps:$4 sm:$0xff]  }
 0x1a6   : > { %v1888_v14 = vld [vmem:[#allocation2 + $0x3c0] sm:$0xff]  ;;  %1710 = vmatprep.subr.bf16.mxu0 %v9593_v12 }
 0x1a8   : > { %1393 = vmatmul.mubr.f32.gmra.mrb[38].mxu1 %v1151_v15  ;;  %1071 = vmatmul.mubr.f32.gmra.mrb[38].mxu0 %v828_v17  ;;  %v1891_v15 = vld [vmem:[#allocation2 + $0x3d8] sm:$0xff]  ;;  %v1890_v17 = vld [vmem:[#allocation2 + $0x3d0] sm:$0xff] }
 0x1a9   : > { %7587 = vmatprep.mubr.msk.f32.mxu1 %vm838_vm0, %v1154_v18  ;;  %7563 = vmatprep.mubr.msk.f32.mxu0 %vm838_vm0, %v831_v20  ;;  %v1893_v18 = vld [vmem:[#allocation2 + $0x3e8] sm:$0xff]  ;;  %v1892_v20 = vld [vmem:[#allocation2 + $0x3e0] sm:$0xff] }
 0x1ac   : > { %1398 = vmatmul.mubr.f32.gmra.mrb[40].mxu1 %v1153_v21  ;;  %1076 = vmatmul.mubr.f32.gmra.mrb[40].mxu0 %v830_v23  ;;  %v1895_v21 = vld [vmem:[#allocation2 + $0x3f8] sm:$0xff]  ;;  %v1894_v23 = vld [vmem:[#allocation2 + $0x3f0] sm:$0xff] }
 0x1ad   : > { %7588 = vmatprep.mubr.msk.f32.mxu1 %vm838_vm0, %v1156_v24  ;;  %7564 = vmatprep.mubr.msk.f32.mxu0 %vm838_vm0, %v833_v25  ;;  %v1897_v24 = vld [vmem:[#allocation2 + $0x408] sm:$0xff]  ;;  %v1896_v25 = vld [vmem:[#allocation2 + $0x400] sm:$0xff] }
 0x1b0   : > { %1403 = vmatmul.mubr.f32.gmra.mrb[42].mxu1 %v1155_v27  ;;  %1081 = vmatmul.mubr.f32.gmra.mrb[42].mxu0 %v832_v28  ;;  %v1899_v27 = vld [vmem:[#allocation2 + $0x418] sm:$0xff]  ;;  %v1898_v28 = vld [vmem:[#allocation2 + $0x410] sm:$0xff] }
 0x1b1   : > { %7589 = vmatprep.mubr.msk.f32.mxu1 %vm838_vm0, %v1158_v30  ;;  %7565 = vmatprep.mubr.msk.f32.mxu0 %vm838_vm0, %v835_v31  ;;  %v1901_v30 = vld [vmem:[#allocation2 + $0x428] sm:$0xff]  ;;  %v1900_v31 = vld [vmem:[#allocation2 + $0x420] sm:$0xff] }
 0x1b4   : > { %1408 = vmatmul.mubr.f32.gmra.mrb[44].mxu1 %v1157_v34  ;;  %1086 = vmatmul.mubr.f32.gmra.mrb[44].mxu0 %v834_v36  ;;  %v1902_v34 = vld [vmem:[#allocation2 + $0x430] sm:$0xff]  ;;  %v1905_v36 = vld [vmem:[#allocation2 + $0x448] sm:$0xff] }
 0x1b5   : > { %7590 = vmatprep.mubr.msk.f32.mxu1 %vm838_vm0, %v1160_v39  ;;  %7566 = vmatprep.mubr.msk.f32.mxu0 %vm838_vm0, %v837_v40  ;;  %v1907_v39 = vld [vmem:[#allocation2 + $0x458] sm:$0xff]  ;;  %v1906_v40 = vld [vmem:[#allocation2 + $0x450] sm:$0xff] }
 0x1b8   : > { %1413 = vmatmul.mubr.f32.gmra.mrb[46].mxu1 %v1159_v42  ;;  %1091 = vmatmul.mubr.f32.gmra.mrb[46].mxu0 %v836_v44  ;;  %v1908_v42 = vld [vmem:[#allocation2 + $0x460] sm:$0xff]  ;;  %v1911_v44 = vld [vmem:[#allocation2 + $0x478] sm:$0xff] }
 0x1b9   : > { %7625 = vmatprep.mubr.msk.f32.mxu1 %vm838_vm0, %v1865_v46  ;;  %1529 = vmatprep.mubr.bf16.mxu0 %v10108_v48  ;;  %v1910_v46 = vld [vmem:[#allocation2 + $0x470] sm:$0xff] }
 0x1bc   : > { %2049 = vmatmul.mubr.f32.vlgmr.msra.gmra.mrb[48].mxu1 %v1864_v47  ;;  %v2449_v47 = vld [vmem:[#allocation2 + $0x488] sm:$0xff] }
 0x1bd   : > { %7626 = vmatprep.mubr.msk.f32.mxu1 %vm838_vm0, %v1867_v49  ;;  %8687 = vmatpush1.bf16.msra.mxu1 %v10507_v5  ;;  %v2448_v49 = vld [vmem:[#allocation2 + $0x480] sm:$0xff] }
 0x1be   : > { %8688 = vmatprep.subr.bf16.mxu1 %v10107_v0 }
 0x1c0   : > { %2054 = vmatmul.mubr.f32.gmra.mrb[50].mxu1 %v1866_v50  ;;  %v2451_v50 = vld [vmem:[#allocation2 + $0x498] sm:$0xff] }
 0x1c1   : > { %7627 = vmatprep.mubr.msk.f32.mxu1 %vm838_vm0, %v1869_v51  ;;  %8690 = vmatpush1.bf16.msra.mxu1 %v10511_v7  ;;  %v2450_v51 = vld [vmem:[#allocation2 + $0x490] sm:$0xff] }
 0x1c2   : > { %8691 = vmatprep.subr.bf16.mxu1 %v10107_v0 }
 0x1c4   : > { %2059 = vmatmul.mubr.f32.gmra.mrb[52].mxu1 %v1868_v52  ;;  %v2453_v52 = vld [vmem:[#allocation2 + $0x4a8] sm:$0xff] }
 0x1c5   : > { %7628 = vmatprep.mubr.msk.f32.mxu1 %vm838_vm0, %v1871_v53  ;;  %8693 = vmatpush1.bf16.msra.mxu1 %v10519_v10  ;;  %v2452_v53 = vld [vmem:[#allocation2 + $0x4a0] sm:$0xff] }
 0x1c6   : > { %8694 = vmatprep.subr.bf16.mxu1 %v10107_v0 }
 0x1c8   : > { %2064 = vmatmul.mubr.f32.gmra.mrb[54].mxu1 %v1870_v54  ;;  %v2455_v54 = vld [vmem:[#allocation2 + $0x4b8] sm:$0xff] }
 0x1c9   : > { %7629 = vmatprep.mubr.msk.f32.mxu1 %vm838_vm0, %v1873_v55  ;;  %8696 = vmatpush1.bf16.msra.mxu1 %v10527_v13  ;;  %v2454_v55 = vld [vmem:[#allocation2 + $0x4b0] sm:$0xff] }
 0x1ca   : > { %8697 = vmatprep.subr.bf16.mxu1 %v10107_v0 }
 0x1cc   : > { %2069 = vmatmul.mubr.f32.gmra.mrb[56].mxu1 %v1872_v56  ;;  %v2457_v56 = vld [vmem:[#allocation2 + $0x4c8] sm:$0xff] }
 0x1cd   : > { %7630 = vmatprep.mubr.msk.f32.mxu1 %vm838_vm0, %v1875_v57  ;;  %8699 = vmatpush1.bf16.msra.mxu1 %v10535_v16  ;;  %v2459_v57 = vld [vmem:[#allocation2 + $0x4d8] sm:$0xff] }
 0x1ce   : > { %8700 = vmatprep.subr.bf16.mxu1 %v10107_v0 }
 0x1d0   : > { %2074 = vmatmul.mubr.f32.gmra.mrb[58].mxu1 %v1874_v58  ;;  %v2461_v58 = vld [vmem:[#allocation2 + $0x4e8] sm:$0xff] }
 0x1d1   : > { %7631 = vmatprep.mubr.msk.f32.mxu1 %vm838_vm0, %v1877_v59  ;;  %8702 = vmatpush1.bf16.msra.mxu1 %v10543_v19 }
 0x1d2   : > { %8703 = vmatprep.subr.bf16.mxu1 %v10107_v0 }
 0x1d4   : > { %2079 = vmatmul.mubr.f32.gmra.mrb[60].mxu1 %v1876_v60 }
 0x1d5   : > { %7632 = vmatprep.mubr.msk.f32.mxu1 %vm838_vm0, %v1879_v61  ;;  %8705 = vmatpush1.bf16.msra.mxu1 %v10551_v22 }
 0x1d6   : > { %8706 = vmatprep.subr.bf16.mxu1 %v10107_v0 }
 0x1d8   : > { %2084 = vmatmul.mubr.f32.gmra.mrb[62].mxu1 %v1878_v62  ;;  %v9591_v62 = vld [vmem:[#allocation5] ss:$8 sps:$4 sm:$0xff]  }
 0x1d9   : > { %7633 = vmatprep.mubr.msk.f32.mxu1 %vm838_vm0, %v1881_v63  ;;  %8708 = vmatpush1.bf16.msra.mxu1 %v10560_v26  ;;  %v2463_v63 = vld [vmem:[#allocation2 + $0x4f8] sm:$0xff] }
 0x1da   : > { %8709 = vmatprep.subr.bf16.mxu1 %v10107_v0 }
 0x1dc   : > { %2089 = vmatmul.mubr.f32.gmra.mrb[64].mxu1 %v1880_v1 }
 0x1dd   : > { %7634 = vmatprep.mubr.msk.f32.mxu1 %vm838_vm0, %v1883_v2  ;;  %8711 = vmatpush1.bf16.msra.mxu1 %v10568_v29  ;;  %v9594_v2 = vld [vmem:[#allocation5 + $0x14] ss:$8 sps:$4 sm:$0x3f]  }
 0x1de   : > { %8712 = vmatprep.subr.bf16.mxu1 %v10107_v0 }
 0x1e0   : > { %2094 = vmatmul.mubr.f32.gmra.mrb[66].mxu1 %v1882_v3 }
 0x1e1   : > { %7635 = vmatprep.mubr.msk.f32.mxu1 %vm838_vm0, %v1885_v4  ;;  %8714 = vmatpush1.bf16.msra.mxu1 %v10576_v32 }
 0x1e2   : > { %8715 = vmatprep.subr.bf16.mxu1 %v10107_v0 }
 0x1e4   : > { %2099 = vmatmul.mubr.f32.gmra.mrb[68].mxu1 %v1884_v6 }
 0x1e5   : > { %7636 = vmatprep.mubr.msk.f32.mxu1 %vm838_vm0, %v1887_v8  ;;  %8717 = vmatpush1.bf16.msra.mxu1 %v10584_v35 }
 0x1e6   : > { %8718 = vmatprep.subr.bf16.mxu1 %v10107_v0 }
 0x1e8   : > { %2104 = vmatmul.mubr.f32.gmra.mrb[70].mxu1 %v1886_v9  ;;  %v9596_v9 = vld [vmem:[#allocation5 + $0x10] ss:$8 sps:$4 sm:$0x3f]  }
 0x1e9   : > { %7637 = vmatprep.mubr.msk.f32.mxu1 %vm838_vm0, %v1889_v11  ;;  %8720 = vmatpush1.bf16.msra.mxu1 %v10592_v38  ;;  %v2465_v11 = vld [vmem:[#allocation2 + $0x508] sm:$0xff] }
 0x1ea   : > { %8721 = vmatprep.subr.bf16.mxu1 %v10107_v0 }
 0x1ec   : > { %2109 = vmatmul.mubr.f32.gmra.mrb[72].mxu1 %v1888_v14 }
 0x1ed   : > { %7638 = vmatprep.mubr.msk.f32.mxu1 %vm838_vm0, %v1891_v15  ;;  %8723 = vmatpush1.bf16.msra.mxu1 %v10602_v43 }
 0x1ee   : > { %8724 = vmatprep.subr.bf16.mxu1 %v10107_v0 }
 0x1f0   : > { %2114 = vmatmul.mubr.f32.gmra.mrb[74].mxu1 %v1890_v17  ;;  %v1705_v17 = vsel %vm1490_vm1, %v9596_v9, 0 }
 0x1f1   : > { %7639 = vmatprep.mubr.msk.f32.mxu1 %vm838_vm0, %v1893_v18  ;;  %8726 = vmatpush1.bf16.msra.mxu1 %v10608_v45 }
 0x1f2   : > { %8727 = vmatprep.subr.bf16.mxu1 %v10107_v0 }
 0x1f4   : > { %2119 = vmatmul.mubr.f32.gmra.mrb[76].mxu1 %v1892_v20  ;;  %v2467_v20 = vld [vmem:[#allocation2 + $0x518] sm:$0xff] }
 0x1f5   : > { %7640 = vmatprep.mubr.msk.f32.mxu1 %vm838_vm0, %v1895_v21 }
 0x1f8   : > { %2124 = vmatmul.mubr.f32.gmra.mrb[78].mxu1 %v1894_v23 }
 0x1f9   : > { %7641 = vmatprep.mubr.msk.f32.mxu1 %vm838_vm0, %v1897_v24 }
 0x1fc   : > { %2129 = vmatmul.mubr.f32.gmra.mrb[80].mxu1 %v1896_v25 }
 0x1fd   : > { %7642 = vmatprep.mubr.msk.f32.mxu1 %vm838_vm0, %v1899_v27 }
 0x200   : > { %2134 = vmatmul.mubr.f32.gmra.mrb[82].mxu1 %v1898_v28 }
 0x201   : > { %7643 = vmatprep.mubr.msk.f32.mxu1 %vm838_vm0, %v1901_v30  ;;  %v2466_v30 = vld [vmem:[#allocation2 + $0x510] sm:$0xff] }
 0x204   : > { %2139 = vmatmul.mubr.f32.gmra.mrb[84].mxu1 %v1900_v31 }
 0x205   : > { %7644 = vmatprep.mubr.msk.f32.mxu1 %vm838_vm0, %v1903_v33 }
 0x208   : > { %2144 = vmatmul.mubr.f32.gmra.mrb[86].mxu1 %v1902_v34 }
 0x209   : > { %7645 = vmatprep.mubr.msk.f32.mxu1 %vm838_vm0, %v1905_v36 }
 0x20c   : > { %2149 = vmatmul.mubr.f32.gmra.mrb[88].mxu1 %v1904_v37  ;;  %v2468_v37 = vld [vmem:[#allocation2 + $0x520] sm:$0xff] }
 0x20d   : > { %7646 = vmatprep.mubr.msk.f32.mxu1 %vm838_vm0, %v1907_v39  ;;  %v2471_v39 = vld [vmem:[#allocation2 + $0x538] sm:$0xff] }
 0x210   : > { %2154 = vmatmul.mubr.f32.gmra.mrb[90].mxu1 %v1906_v40 }
 0x211   : > { %7647 = vmatprep.mubr.msk.f32.mxu1 %vm838_vm0, %v1909_v41 }
 0x214   : > { %2159 = vmatmul.mubr.f32.gmra.mrb[92].mxu1 %v1908_v42 }
 0x215   : > { %7648 = vmatprep.mubr.msk.f32.mxu1 %vm838_vm0, %v1911_v44 }
 0x218   : > { %2164 = vmatmul.mubr.f32.gmra.mrb[94].mxu1 %v1910_v46 }
 0x219   : > { %7666 = vmatprep.mubr.msk.f32.mxu1 %vm838_vm0, %v2449_v47  ;;  %v2470_v47 = vld [vmem:[#allocation2 + $0x530] sm:$0xff] }
 0x21c   : > { %2633 = vmatmul.mubr.f32.vlgmr.msra.gmra.mrb[96].mxu1 %v2448_v49 }
 0x21d   : > { %7667 = vmatprep.mubr.msk.f32.mxu1 %vm838_vm0, %v2451_v50  ;;  %8729 = vmatpush1.bf16.msra.mxu1 %v10507_v5  ;;  %v2456_v5 = vld [vmem:[#allocation2 + $0x4c0] sm:$0xff] }
 0x21e   : > { %8730 = vmatprep.subr.bf16.mxu1 %v10107_v0 }
 0x220   : > { %2638 = vmatmul.mubr.f32.gmra.mrb[98].mxu1 %v2450_v51  ;;  %v9599_v51 = vld [vmem:[#allocation5 + $0x44] ss:$8 sps:$4 sm:$0xff]  }
 0x221   : > { %7668 = vmatprep.mubr.msk.f32.mxu1 %vm838_vm0, %v2453_v52  ;;  %8732 = vmatpush1.bf16.msra.mxu1 %v10511_v7  ;;  %v2458_v7 = vld [vmem:[#allocation2 + $0x4d0] sm:$0xff] }
 0x222   : > { %8733 = vmatprep.subr.bf16.mxu1 %v10107_v0 }
 0x224   : > { %2643 = vmatmul.mubr.f32.gmra.mrb[100].mxu1 %v2452_v53 }
 0x225   : > { %7669 = vmatprep.mubr.msk.f32.mxu1 %vm838_vm0, %v2455_v54  ;;  %8735 = vmatpush1.bf16.msra.mxu1 %v10519_v10  ;;  %v2472_v54 = vld [vmem:[#allocation2 + $0x540] sm:$0xff] }
 0x226   : > { %8736 = vmatprep.subr.bf16.mxu1 %v10107_v0 }
 0x228   : > { %2648 = vmatmul.mubr.f32.gmra.mrb[102].mxu1 %v2454_v55  ;;  %v2475_v55 = vld [vmem:[#allocation2 + $0x558] sm:$0xff] }
 0x229   : > { %7670 = vmatprep.mubr.msk.f32.mxu1 %vm838_vm0, %v2457_v56  ;;  %8738 = vmatpush1.bf16.msra.mxu1 %v10527_v13  ;;  %v2460_v13 = vld [vmem:[#allocation2 + $0x4e0] sm:$0xff] }
 0x22a   : > { %8739 = vmatprep.subr.bf16.mxu1 %v10107_v0 }
 0x22c   : > { %2653 = vmatmul.mubr.f32.gmra.mrb[104].mxu1 %v2456_v5 }
 0x22d   : > { %7671 = vmatprep.mubr.msk.f32.mxu1 %vm838_vm0, %v2459_v57  ;;  %8741 = vmatpush1.bf16.msra.mxu1 %v10535_v16 }
 0x22e   : > { %8742 = vmatprep.subr.bf16.mxu1 %v10107_v0 }
 0x22f   : > { %v1299_v10 = vpop.f32.mrb[0].mxu1  ;;  %v10761_v59 = vpop.f32.mrb[0].mxu0 }
 0x230   : > { %v1301_v60 = vpop.f32.mrb[1].mxu1  ;;  %2658 = vmatmul.mubr.f32.gmra.mrb[106].mxu1 %v2458_v7  ;;  %v979_v61 = vpop.f32.mrb[1].mxu0 }
 0x231   : > { %7672 = vmatprep.mubr.msk.f32.mxu1 %vm838_vm0, %v2461_v58  ;;  %8744 = vmatpush1.bf16.msra.mxu1 %v10543_v19  ;;  %v2462_v19 = vld [vmem:[#allocation2 + $0x4f0] sm:$0xff]  ;;  %v2477_v60 = vld [vmem:[#allocation2 + $0x568] sm:$0xff] }
 0x232   : > { %8745 = vmatprep.subr.bf16.mxu1 %v10107_v0 }
 0x233   : > { %v1304_v1 = vpop.f32.mrb[2].mxu1  ;;  %v10766_v16 = vpop.f32.mrb[2].mxu0 }
 0x234   : > { %v1418_v3 = vpack.c.bf16 %v1304_v1, %v1299_v10  ;;  %v1306_v4 = vpop.f32.mrb[3].mxu1  ;;  %v1096_v6 = vpack.c.bf16 %v10766_v16, %v10761_v59  ;;  %2663 = vmatmul.mubr.f32.gmra.mrb[108].mxu1 %v2460_v13  ;;  %v984_v8 = vpop.f32.mrb[3].mxu0  ;;  %v2474_v10 = vld [vmem:[#allocation2 + $0x550] sm:$0xff]  ;;  %v2479_v1 = vld [vmem:[#allocation2 + $0x578] sm:$0xff] }
 0x235   : > { %7673 = vmatprep.mubr.msk.f32.mxu1 %vm838_vm0, %v2463_v63  ;;  %8747 = vmatpush1.bf16.msra.mxu1 %v10551_v22  ;;  %v2464_v22 = vld [vmem:[#allocation2 + $0x500] sm:$0xff] }
 0x236   : > { %7596 = vmatmul.mubr.msk.bf16.vlgmr.msra.gmra.mrb[48].mxu0 %vm1453_vm2, %v1418_v3  ;;  %8748 = vmatprep.subr.bf16.mxu1 %v10107_v0  ;;  %v2476_v63 = vld [vmem:[#allocation2 + $0x560] sm:$0xff] }
 0x237   : > { %v1309_v12 = vpop.f32.mrb[4].mxu1  ;;  %1539 = vmatprep.mubr.bf16.mxu0 %v10108_v48  ;;  %1711 = vmatpush1.bf16.msra.mxu0 %v9591_v62  ;;  %v10775_v14 = vpop.f32.mrb[4].mxu0 }
 0x238   : > { %v1311_v15 = vpop.f32.mrb[5].mxu1  ;;  %7612 = vmatprep.subr.msk.bf16.mxu0 %vm1490_vm1, %v9594_v2  ;;  %2668 = vmatmul.mubr.f32.gmra.mrb[110].mxu1 %v2462_v19  ;;  %v989_v18 = vpop.f32.mrb[5].mxu0  ;;  %v2478_v19 = vld [vmem:[#allocation2 + $0x570] sm:$0xff] }
 0x239   : > { %7674 = vmatprep.mubr.msk.f32.mxu1 %vm838_vm0, %v2465_v11  ;;  %8750 = vmatpush1.bf16.msra.mxu1 %v10560_v26  ;;  %v2469_v26 = vld [vmem:[#allocation2 + $0x528] sm:$0xff]  ;;  %v2480_v18 = vld [vmem:[#allocation2 + $0x580] sm:$0xff] }
 0x23a   : > { %8751 = vmatprep.subr.bf16.mxu1 %v10107_v0  ;;  %v2481_v11 = vld [vmem:[#allocation2 + $0x588] sm:$0xff] }
 0x23b   : > { %v1314_v21 = vpop.f32.mrb[6].mxu1  ;;  %1713 = vmatpush1.bf16.msra.mxu0 %v1705_v17  ;;  %v10782_v23 = vpop.f32.mrb[6].mxu0 }
 0x23c   : > { %v1419_v24 = vpack.c.bf16 %v1314_v21, %v1309_v12  ;;  %v1316_v25 = vpop.f32.mrb[7].mxu1  ;;  %v1097_v27 = vpack.c.bf16 %v10782_v23, %v10775_v14  ;;  %2673 = vmatmul.mubr.f32.gmra.mrb[112].mxu1 %v2464_v22  ;;  %v994_v28 = vpop.f32.mrb[7].mxu0  ;;  %2246 = vmatprep.subr.bf16.mxu0 %v9599_v51  ;;  %v2483_v22 = vld [vmem:[#allocation2 + $0x598] sm:$0xff]  ;;  %v3054_v23 = vld [vmem:[#allocation2 + $0x6b0] sm:$0xff] }
 0x23d   : > { %7675 = vmatprep.mubr.msk.f32.mxu1 %vm838_vm0, %v2467_v20  ;;  %8753 = vmatpush1.bf16.msra.mxu1 %v10568_v29 }
 0x23e   : > { %7597 = vmatmul.mubr.msk.bf16.gmra.mrb[52].mxu0 %vm1453_vm2, %v1419_v24  ;;  %8754 = vmatprep.subr.bf16.mxu1 %v10107_v0 }
 0x23f   : > { %v1319_v31 = vpop.f32.mrb[8].mxu1  ;;  %1549 = vmatprep.mubr.bf16.mxu0 %v10108_v48  ;;  %v10791_v33 = vpop.f32.mrb[8].mxu0 }
 0x240   : > { %v1321_v34 = vpop.f32.mrb[9].mxu1  ;;  %2678 = vmatmul.mubr.f32.gmra.mrb[114].mxu1 %v2466_v30  ;;  %v999_v36 = vpop.f32.mrb[9].mxu0 }
 0x241   : > { %7676 = vmatprep.mubr.msk.f32.mxu1 %vm838_vm0, %v2469_v26  ;;  %8756 = vmatpush1.bf16.msra.mxu1 %v10576_v32  ;;  %v2473_v32 = vld [vmem:[#allocation2 + $0x548] sm:$0xff]  ;;  %v2482_v26 = vld [vmem:[#allocation2 + $0x590] sm:$0xff] }
 0x242   : > { %8757 = vmatprep.subr.bf16.mxu1 %v10107_v0 }
 0x243   : > { %v1324_v29 = vpop.f32.mrb[10].mxu1  ;;  %v10796_v40 = vpop.f32.mrb[10].mxu0 }
 0x244   : > { %v1420_v41 = vpack.c.bf16 %v1324_v29, %v1319_v31  ;;  %v1326_v42 = vpop.f32.mrb[11].mxu1  ;;  %v1098_v44 = vpack.c.bf16 %v10796_v40, %v10791_v33  ;;  %2683 = vmatmul.mubr.f32.gmra.mrb[116].mxu1 %v2468_v37  ;;  %v1004_v46 = vpop.f32.mrb[11].mxu0  ;;  %v2485_v31 = vld [vmem:[#allocation2 + $0x5a8] sm:$0xff]  ;;  %v2484_v29 = vld [vmem:[#allocation2 + $0x5a0] sm:$0xff] }
 0x245   : > { %7677 = vmatprep.mubr.msk.f32.mxu1 %vm838_vm0, %v2471_v39  ;;  %8759 = vmatpush1.bf16.msra.mxu1 %v10584_v35 }
 0x246   : > { %7598 = vmatmul.mubr.msk.bf16.gmra.mrb[56].mxu0 %vm1453_vm2, %v1420_v41  ;;  %8760 = vmatprep.subr.bf16.mxu1 %v10107_v0  ;;  %v2487_v41 = vld [vmem:[#allocation2 + $0x5b8] sm:$0xff] }
 0x247   : > { %v1329_v49 = vpop.f32.mrb[12].mxu1  ;;  %1559 = vmatprep.mubr.bf16.mxu0 %v10108_v48  ;;  %v10805_v50 = vpop.f32.mrb[12].mxu0 }
 0x248   : > { %v1331_v52 = vpop.f32.mrb[13].mxu1  ;;  %2688 = vmatmul.mubr.f32.gmra.mrb[118].mxu1 %v2470_v47  ;;  %v1009_v53 = vpop.f32.mrb[13].mxu0 }
 0x249   : > { %7678 = vmatprep.mubr.msk.f32.mxu1 %vm838_vm0, %v2473_v32  ;;  %8762 = vmatpush1.bf16.msra.mxu1 %v10592_v38  ;;  %v2486_v52 = vld [vmem:[#allocation2 + $0x5b0] sm:$0xff]  ;;  %v2489_v53 = vld [vmem:[#allocation2 + $0x5c8] sm:$0xff] }
 0x24a   : > { %8763 = vmatprep.subr.bf16.mxu1 %v10107_v0 }
 0x24b   : > { %v1334_v35 = vpop.f32.mrb[14].mxu1  ;;  %v10809_v56 = vpop.f32.mrb[14].mxu0 }
 0x24c   : > { %v1421_v5 = vpack.c.bf16 %v1334_v35, %v1329_v49  ;;  %v1336_v57 = vpop.f32.mrb[15].mxu1  ;;  %v1099_v7 = vpack.c.bf16 %v10809_v56, %v10805_v50  ;;  %2693 = vmatmul.mubr.f32.gmra.mrb[120].mxu1 %v2472_v54  ;;  %v1014_v58 = vpop.f32.mrb[15].mxu0  ;;  %v3062_v56 = vld [vmem:[#allocation2 + $0x6f0] sm:$0xff] }
 0x24d   : > { %7679 = vmatprep.mubr.msk.f32.mxu1 %vm838_vm0, %v2475_v55  ;;  %8765 = vmatpush1.bf16.msra.mxu1 %v10602_v43  ;;  %v2488_v57 = vld [vmem:[#allocation2 + $0x5c0] sm:$0xff]  ;;  %v2491_v58 = vld [vmem:[#allocation2 + $0x5d8] sm:$0xff] }
 0x24e   : > { %7599 = vmatmul.mubr.msk.bf16.gmra.mrb[60].mxu0 %vm1453_vm2, %v1421_v5  ;;  %8766 = vmatprep.subr.bf16.mxu1 %v10107_v0 }
 0x24f   : > { %v1339_v38 = vpop.f32.mrb[16].mxu1  ;;  %1569 = vmatprep.mubr.bf16.mxu0 %v10108_v48  ;;  %v10818_v61 = vpop.f32.mrb[16].mxu0 }
 0x250   : > { %v1341_v13 = vpop.f32.mrb[17].mxu1  ;;  %2698 = vmatmul.mubr.f32.gmra.mrb[122].mxu1 %v2474_v10  ;;  %v1019_v62 = vpop.f32.mrb[17].mxu0 }
 0x251   : > { %7680 = vmatprep.mubr.msk.f32.mxu1 %vm838_vm0, %v2477_v60  ;;  %8768 = vmatpush1.bf16.msra.mxu1 %v10608_v45 }
 0x253   : > { %v1344_v2 = vpop.f32.mrb[18].mxu1  ;;  %v10823_v3 = vpop.f32.mrb[18].mxu0 }
 0x254   : > { %v1422_v43 = vpack.c.bf16 %v1344_v2, %v1339_v38  ;;  %v1346_v4 = vpop.f32.mrb[19].mxu1  ;;  %v1100_v8 = vpack.c.bf16 %v10823_v3, %v10818_v61  ;;  %2703 = vmatmul.mubr.f32.gmra.mrb[124].mxu1 %v2476_v63  ;;  %v1024_v9 = vpop.f32.mrb[19].mxu0  ;;  %v2493_v2 = vld [vmem:[#allocation2 + $0x5e8] sm:$0xff]  ;;  %v3066_v3 = vld [vmem:[#allocation2 + $0x710] sm:$0xff] }
 0x255   : > { %7681 = vmatprep.mubr.msk.f32.mxu1 %vm838_vm0, %v2479_v1  ;;  %v2490_v1 = vld [vmem:[#allocation2 + $0x5d0] sm:$0xff] }
 0x256   : > { %7600 = vmatmul.mubr.msk.bf16.gmra.mrb[64].mxu0 %vm1453_vm2, %v1422_v43 }
 0x257   : > { %v1349_v12 = vpop.f32.mrb[20].mxu1  ;;  %1579 = vmatprep.mubr.bf16.mxu0 %v10108_v48  ;;  %v10830_v45 = vpop.f32.mrb[20].mxu0 }
 0x258   : > { %v1351_v15 = vpop.f32.mrb[21].mxu1  ;;  %2708 = vmatmul.mubr.f32.gmra.mrb[126].mxu1 %v2478_v19  ;;  %v1029_v17 = vpop.f32.mrb[21].mxu0 }
 0x259   : > { %7682 = vmatprep.mubr.msk.f32.mxu1 %vm838_vm0, %v2481_v11  ;;  %v2492_v11 = vld [vmem:[#allocation2 + $0x5e0] sm:$0xff] }
 0x25b   : > { %v1354_v20 = vpop.f32.mrb[22].mxu1  ;;  %v10833_v21 = vpop.f32.mrb[22].mxu0 }
 0x25c   : > { %v1423_v24 = vpack.c.bf16 %v1354_v20, %v1349_v12  ;;  %v1356_v25 = vpop.f32.mrb[23].mxu1  ;;  %v1101_v28 = vpack.c.bf16 %v10833_v21, %v10830_v45  ;;  %2713 = vmatmul.mubr.f32.gmra.mrb[128].mxu1 %v2480_v18  ;;  %v1034_v30 = vpop.f32.mrb[23].mxu0  ;;  %v2495_v12 = vld [vmem:[#allocation2 + $0x5f8] sm:$0xff]  ;;  %v3070_v21 = vld [vmem:[#allocation2 + $0x730] sm:$0xff] }
 0x25d   : > { %7683 = vmatprep.mubr.msk.f32.mxu1 %vm838_vm0, %v2483_v22  ;;  %v2494_v25 = vld [vmem:[#allocation2 + $0x5f0] sm:$0xff]  ;;  %v3033_v30 = vld [vmem:[#allocation2 + $0x608] sm:$0xff] }
 0x25e   : > { %7601 = vmatmul.mubr.msk.bf16.gmra.mrb[68].mxu0 %vm1453_vm2, %v1423_v24 }
 0x25f   : > { %v1359_v34 = vpop.f32.mrb[24].mxu1  ;;  %1589 = vmatprep.mubr.bf16.mxu0 %v10108_v48  ;;  %v10840_v36 = vpop.f32.mrb[24].mxu0 }
 0x260   : > { %v1361_v37 = vpop.f32.mrb[25].mxu1  ;;  %2718 = vmatmul.mubr.f32.gmra.mrb[130].mxu1 %v2482_v26  ;;  %v1039_v39 = vpop.f32.mrb[25].mxu0 }
 0x261   : > { %7684 = vmatprep.mubr.msk.f32.mxu1 %vm838_vm0, %v2485_v31  ;;  %v3032_v39 = vld [vmem:[#allocation2 + $0x600] sm:$0xff] }
 0x263   : > { %v1364_v42 = vpop.f32.mrb[26].mxu1  ;;  %v10843_v46 = vpop.f32.mrb[26].mxu0 }
 0x264   : > { %v1424_v47 = vpack.c.bf16 %v1364_v42, %v1359_v34  ;;  %v1366_v32 = vpop.f32.mrb[27].mxu1  ;;  %v1102_v49 = vpack.c.bf16 %v10843_v46, %v10840_v36  ;;  %2723 = vmatmul.mubr.f32.gmra.mrb[132].mxu1 %v2484_v29  ;;  %v1044_v51 = vpop.f32.mrb[27].mxu0  ;;  %v3035_v29 = vld [vmem:[#allocation2 + $0x618] sm:$0xff]  ;;  %v3074_v46 = vld [vmem:[#allocation2 + $0x750] sm:$0xff] }
 0x265   : > { %7685 = vmatprep.mubr.msk.f32.mxu1 %vm838_vm0, %v2487_v41 }
 0x266   : > { %7602 = vmatmul.mubr.msk.bf16.gmra.mrb[72].mxu0 %vm1453_vm2, %v1424_v47 }
 0x267   : > { %v1369_v54 = vpop.f32.mrb[28].mxu1  ;;  %1599 = vmatprep.mubr.bf16.mxu0 %v10108_v48  ;;  %v10850_v55 = vpop.f32.mrb[28].mxu0 }
 0x268   : > { %v1371_v35 = vpop.f32.mrb[29].mxu1  ;;  %2728 = vmatmul.mubr.f32.gmra.mrb[134].mxu1 %v2486_v52  ;;  %v1049_v5 = vpop.f32.mrb[29].mxu0 }
 0x269   : > { %7686 = vmatprep.mubr.msk.f32.mxu1 %vm838_vm0, %v2489_v53  ;;  %v3034_v53 = vld [vmem:[#allocation2 + $0x610] sm:$0xff] }
 0x26b   : > { %v1374_v10 = vpop.f32.mrb[30].mxu1  ;;  %v10853_v60 = vpop.f32.mrb[30].mxu0 }
 0x26c   : > { %v1425_v38 = vpack.c.bf16 %v1374_v10, %v1369_v54  ;;  %v1376_v13 = vpop.f32.mrb[31].mxu1  ;;  %v1103_v62 = vpack.c.bf16 %v10853_v60, %v10850_v55  ;;  %2733 = vmatmul.mubr.f32.gmra.mrb[136].mxu1 %v2488_v57  ;;  %v1054_v63 = vpop.f32.mrb[31].mxu0  ;;  %v3037_v54 = vld [vmem:[#allocation2 + $0x628] sm:$0xff]  ;;  %v3036_v10 = vld [vmem:[#allocation2 + $0x620] sm:$0xff]  ;;  %v3078_v60 = vld [vmem:[#allocation2 + $0x770] sm:$0xff] }
 0x26d   : > { %7687 = vmatprep.mubr.msk.f32.mxu1 %vm838_vm0, %v2491_v58 }
 0x26e   : > { %7603 = vmatmul.mubr.msk.bf16.gmra.mrb[76].mxu0 %vm1453_vm2, %v1425_v38  ;;  %v3039_v38 = vld [vmem:[#allocation2 + $0x638] sm:$0xff] }
 0x26f   : > { %v1379_v43 = vpop.f32.mrb[32].mxu1  ;;  %1609 = vmatprep.mubr.bf16.mxu0 %v10108_v48  ;;  %v10860_v4 = vpop.f32.mrb[32].mxu0 }
 0x270   : > { %v1381_v9 = vpop.f32.mrb[33].mxu1  ;;  %2738 = vmatmul.mubr.f32.gmra.mrb[138].mxu1 %v2490_v1  ;;  %v1059_v19 = vpop.f32.mrb[33].mxu0 }
 0x271   : > { %7688 = vmatprep.mubr.msk.f32.mxu1 %vm838_vm0, %v2493_v2  ;;  %v3038_v19 = vld [vmem:[#allocation2 + $0x630] sm:$0xff] }
 0x273   : > { %v1384_v15 = vpop.f32.mrb[34].mxu1  ;;  %v10863_v17 = vpop.f32.mrb[34].mxu0 }
 0x274   : > { %v1386_v18 = vpop.f32.mrb[35].mxu1  ;;  %v1426_v22 = vpack.c.bf16 %v1384_v15, %v1379_v43  ;;  %v1104_v20 = vpack.c.bf16 %v10863_v17, %v10860_v4  ;;  %2743 = vmatmul.mubr.f32.gmra.mrb[140].mxu1 %v2492_v11  ;;  %v1064_v24 = vpop.f32.mrb[35].mxu0  ;;  %v3041_v11 = vld [vmem:[#allocation2 + $0x648] sm:$0xff] }
 0x275   : > { %7689 = vmatprep.mubr.msk.f32.mxu1 %vm838_vm0, %v2495_v12  ;;  %v3040_v24 = vld [vmem:[#allocation2 + $0x640] sm:$0xff] }
 0x276   : > { %7604 = vmatmul.mubr.msk.bf16.gmra.mrb[80].mxu0 %vm1453_vm2, %v1426_v22 }
 0x277   : > { %v1389_v26 = vpop.f32.mrb[36].mxu1  ;;  %1619 = vmatprep.mubr.bf16.mxu0 %v10108_v48  ;;  %v10870_v31 = vpop.f32.mrb[36].mxu0 }
 0x278   : > { %v1391_v34 = vpop.f32.mrb[37].mxu1  ;;  %2748 = vmatmul.mubr.f32.gmra.mrb[142].mxu1 %v2494_v25  ;;  %v1069_v37 = vpop.f32.mrb[37].mxu0  ;;  %v3043_v25 = vld [vmem:[#allocation2 + $0x658] sm:$0xff] }
 0x279   : > { %7707 = vmatprep.mubr.msk.f32.mxu1 %vm838_vm0, %v3033_v30 }
 0x27b   : > { %v1394_v41 = vpop.f32.mrb[38].mxu1  ;;  %v10873_v42 = vpop.f32.mrb[38].mxu0 }
 0x27c   : > { %v1396_v47 = vpop.f32.mrb[39].mxu1  ;;  %v1427_v32 = vpack.c.bf16 %v1394_v41, %v1389_v26  ;;  %v1105_v51 = vpack.c.bf16 %v10873_v42, %v10870_v31  ;;  %3217 = vmatmul.mubr.f32.vlgmr.msra.gmra.mrb[144].mxu1 %v3032_v39  ;;  %v1074_v52 = vpop.f32.mrb[39].mxu0  ;;  %v3042_v41 = vld [vmem:[#allocation2 + $0x650] sm:$0xff] }
 0x27d   : > { %7708 = vmatprep.mubr.msk.f32.mxu1 %vm838_vm0, %v3035_v29  ;;  %v3045_v47 = vld [vmem:[#allocation2 + $0x668] sm:$0xff] }
 0x27e   : > { %7605 = vmatmul.mubr.msk.bf16.gmra.mrb[84].mxu0 %vm1453_vm2, %v1427_v32 }
 0x27f   : > { %v1399_v35 = vpop.f32.mrb[40].mxu1  ;;  %1629 = vmatprep.mubr.bf16.mxu0 %v10108_v48  ;;  %v10880_v5 = vpop.f32.mrb[40].mxu0 }
 0x280   : > { %v1401_v57 = vpop.f32.mrb[41].mxu1  ;;  %3222 = vmatmul.mubr.f32.gmra.mrb[146].mxu1 %v3034_v53  ;;  %v1079_v58 = vpop.f32.mrb[41].mxu0  ;;  %v3044_v53 = vld [vmem:[#allocation2 + $0x660] sm:$0xff] }
 0x281   : > { %7709 = vmatprep.mubr.msk.f32.mxu1 %vm838_vm0, %v3037_v54  ;;  %v3047_v54 = vld [vmem:[#allocation2 + $0x678] sm:$0xff] }
 0x282   : > { %v9600_v58 = vld [vmem:[#allocation5 + $0x54] ss:$8 sps:$4 sm:$0x3f]  }
 0x283   : > { %v1404_v13 = vpop.f32.mrb[42].mxu1  ;;  %v10883_v63 = vpop.f32.mrb[42].mxu0 }
 0x284   : > { %v1406_v1 = vpop.f32.mrb[43].mxu1  ;;  %v1428_v2 = vpack.c.bf16 %v1404_v13, %v1399_v35  ;;  %v1106_v43 = vpack.c.bf16 %v10883_v63, %v10880_v5  ;;  %3227 = vmatmul.mubr.f32.gmra.mrb[148].mxu1 %v3036_v10  ;;  %v1084_v9 = vpop.f32.mrb[43].mxu0  ;;  %v9597_v35 = vld [vmem:[#allocation5 + $0x40] ss:$8 sps:$4 sm:$0xff]  }
 0x285   : > { %7710 = vmatprep.mubr.msk.f32.mxu1 %vm838_vm0, %v3039_v38  ;;  %v9602_v13 = vld [vmem:[#allocation5 + $0x50] ss:$8 sps:$4 sm:$0x3f]  }
 0x286   : > { %7606 = vmatmul.mubr.msk.bf16.gmra.mrb[88].mxu0 %vm1453_vm2, %v1428_v2  ;;  %v3046_v1 = vld [vmem:[#allocation2 + $0x670] sm:$0xff]  ;;  %v3049_v2 = vld [vmem:[#allocation2 + $0x688] sm:$0xff] }
 0x287   : > { %v1409_v12 = vpop.f32.mrb[44].mxu1  ;;  %1639 = vmatprep.mubr.bf16.mxu0 %v10108_v48  ;;  %v10890_v15 = vpop.f32.mrb[44].mxu0 }
 0x288   : > { %v1411_v18 = vpop.f32.mrb[45].mxu1  ;;  %3232 = vmatmul.mubr.f32.gmra.mrb[150].mxu1 %v3038_v19  ;;  %v1089_v22 = vpop.f32.mrb[45].mxu0  ;;  %v2241_v19 = vsel %vm1490_vm1, %v9602_v13, 0 }
 0x289   : > { %7711 = vmatprep.mubr.msk.f32.mxu1 %vm838_vm0, %v3041_v11  ;;  %v3051_v18 = vld [vmem:[#allocation2 + $0x698] sm:$0xff]  ;;  %v3050_v22 = vld [vmem:[#allocation2 + $0x690] sm:$0xff] }
 0x28b   : > { %v1414_v30 = vpop.f32.mrb[46].mxu1  ;;  %v10893_v26 = vpop.f32.mrb[46].mxu0 }
 0x28c   : > { %v1416_v34 = vpop.f32.mrb[47].mxu1  ;;  %v1429_v37 = vpack.c.bf16 %v1414_v30, %v1409_v12  ;;  %v1107_v39 = vpack.c.bf16 %v10893_v26, %v10890_v15  ;;  %3237 = vmatmul.mubr.f32.gmra.mrb[152].mxu1 %v3040_v24  ;;  %v1094_v29 = vpop.f32.mrb[47].mxu0  ;;  %v3048_v12 = vld [vmem:[#allocation2 + $0x680] sm:$0xff]  ;;  %v3053_v24 = vld [vmem:[#allocation2 + $0x6a8] sm:$0xff] }
 0x28d   : > { %7712 = vmatprep.mubr.msk.f32.mxu1 %vm838_vm0, %v3043_v25  ;;  %v3052_v34 = vld [vmem:[#allocation2 + $0x6a0] sm:$0xff] }
 0x28e   : > { %7607 = vmatmul.mubr.msk.bf16.gmra.mrb[92].mxu0 %vm1453_vm2, %v1429_v37  ;;  %v3055_v37 = vld [vmem:[#allocation2 + $0x6b8] sm:$0xff] }
 0x28f   : > { %1742 = vmatprep.mubr.bf16.mxu0 %v10108_v48  ;;  %v10900_v32 = vpop.f32.mrb[48].mxu1 }
 0x290   : > { %3242 = vmatmul.mubr.f32.gmra.mrb[154].mxu1 %v3042_v41  ;;  %v2052_v52 = vpop.f32.mrb[49].mxu1 }
 0x291   : > { %7713 = vmatprep.mubr.msk.f32.mxu1 %vm838_vm0, %v3045_v47  ;;  %v9605_v52 = vld [vmem:[#allocation5 + $0x64] ss:$8 sps:$4 sm:$0xff]  }
 0x293   : > { %v10903_v57 = vpop.f32.mrb[50].mxu1 }
 0x294   : > { %v2169_v10 = vpack.c.bf16 %v10903_v57, %v10900_v32  ;;  %3247 = vmatmul.mubr.f32.gmra.mrb[156].mxu1 %v3044_v53  ;;  %v2057_v38 = vpop.f32.mrb[51].mxu1 }
 0x295   : > { %7714 = vmatprep.mubr.msk.f32.mxu1 %vm838_vm0, %v3047_v54  ;;  %v3056_v54 = vld [vmem:[#allocation2 + $0x6c0] sm:$0xff]  ;;  %v3061_v38 = vld [vmem:[#allocation2 + $0x6e8] sm:$0xff] }
 0x296   : > { %7613 = vmatmul.mubr.msk.bf16.vlgmr.msra.gmra.mrb[48].mxu0 %vm1453_vm2, %v1096_v6 }
 0x297   : > { %1752 = vmatprep.mubr.bf16.mxu0 %v10108_v48  ;;  %2247 = vmatpush1.bf16.msra.mxu0 %v9597_v35  ;;  %v10913_v9 = vpop.f32.mrb[52].mxu1  ;;  %v3059_v35 = vld [vmem:[#allocation2 + $0x6d8] sm:$0xff] }
 0x298   : > { %7653 = vmatprep.subr.msk.bf16.mxu0 %vm1490_vm1, %v9600_v58  ;;  %3252 = vmatmul.mubr.f32.gmra.mrb[158].mxu1 %v3046_v1  ;;  %v2062_v11 = vpop.f32.mrb[53].mxu1 }
 0x299   : > { %7715 = vmatprep.mubr.msk.f32.mxu1 %vm838_vm0, %v3049_v2  ;;  %v3060_v2 = vld [vmem:[#allocation2 + $0x6e0] sm:$0xff] }
 0x29b   : > { %2249 = vmatpush1.bf16.msra.mxu0 %v2241_v19  ;;  %v10918_v59 = vpop.f32.mrb[54].mxu1  ;;  %v3063_v19 = vld [vmem:[#allocation2 + $0x6f8] sm:$0xff] }
 0x29c   : > { %v2170_v16 = vpack.c.bf16 %v10918_v59, %v10913_v9  ;;  %3257 = vmatmul.mubr.f32.gmra.mrb[160].mxu1 %v3048_v12  ;;  %v2067_v6 = vpop.f32.mrb[55].mxu1  ;;  %2830 = vmatprep.subr.bf16.mxu0 %v9605_v52 }
 0x29d   : > { %7716 = vmatprep.mubr.msk.f32.mxu1 %vm838_vm0, %v3051_v18 }
 0x29e   : > { %7614 = vmatmul.mubr.msk.bf16.gmra.mrb[52].mxu0 %vm1453_vm2, %v1097_v27  ;;  %v3057_v27 = vld [vmem:[#allocation2 + $0x6c8] sm:$0xff] }
 0x29f   : > { %1762 = vmatprep.mubr.bf16.mxu0 %v10108_v48  ;;  %v10928_v25 = vpop.f32.mrb[56].mxu1 }
 0x2a0   : > { %3262 = vmatmul.mubr.f32.gmra.mrb[162].mxu1 %v3050_v22  ;;  %v2072_v30 = vpop.f32.mrb[57].mxu1  ;;  %v3064_v22 = vld [vmem:[#allocation2 + $0x700] sm:$0xff] }
 0x2a1   : > { %7717 = vmatprep.mubr.msk.f32.mxu1 %vm838_vm0, %v3053_v24  ;;  %v3067_v24 = vld [vmem:[#allocation2 + $0x718] sm:$0xff] }
 0x2a3   : > { %v10931_v29 = vpop.f32.mrb[58].mxu1 }
 0x2a4   : > { %v2171_v41 = vpack.c.bf16 %v10931_v29, %v10928_v25  ;;  %3267 = vmatmul.mubr.f32.gmra.mrb[164].mxu1 %v3052_v34  ;;  %v2077_v14 = vpop.f32.mrb[59].mxu1 }
 0x2a5   : > { %7718 = vmatprep.mubr.msk.f32.mxu1 %vm838_vm0, %v3055_v37 }
 0x2a6   : > { %7615 = vmatmul.mubr.msk.bf16.gmra.mrb[56].mxu0 %vm1453_vm2, %v1098_v44  ;;  %v3058_v44 = vld [vmem:[#allocation2 + $0x6d0] sm:$0xff] }
 0x2a7   : > { %1772 = vmatprep.mubr.bf16.mxu0 %v10108_v48  ;;  %v10941_v47 = vpop.f32.mrb[60].mxu1 }
 0x2a8   : > { %3272 = vmatmul.mubr.f32.gmra.mrb[166].mxu1 %v3054_v23  ;;  %v2082_v53 = vpop.f32.mrb[61].mxu1  ;;  %v3068_v23 = vld [vmem:[#allocation2 + $0x720] sm:$0xff] }
 0x2a9   : > { %7719 = vmatprep.mubr.msk.f32.mxu1 %vm838_vm0, %v3057_v27  ;;  %v3071_v27 = vld [vmem:[#allocation2 + $0x738] sm:$0xff] }
 0x2ab   : > { %v10944_v58 = vpop.f32.mrb[62].mxu1 }
 0x2ac   : > { %v2172_v33 = vpack.c.bf16 %v10944_v58, %v10941_v47  ;;  %3277 = vmatmul.mubr.f32.gmra.mrb[168].mxu1 %v3056_v54  ;;  %v2087_v40 = vpop.f32.mrb[63].mxu1 }
 0x2ad   : > { %7720 = vmatprep.mubr.msk.f32.mxu1 %vm838_vm0, %v3059_v35  ;;  %v3072_v40 = vld [vmem:[#allocation2 + $0x740] sm:$0xff] }
 0x2ae   : > { %7616 = vmatmul.mubr.msk.bf16.gmra.mrb[60].mxu0 %vm1453_vm2, %v1099_v7  ;;  %v3065_v7 = vld [vmem:[#allocation2 + $0x708] sm:$0xff] }
 0x2af   : > { %1782 = vmatprep.mubr.bf16.mxu0 %v10108_v48  ;;  %v10954_v13 = vpop.f32.mrb[64].mxu1 }
 0x2b0   : > { %3282 = vmatmul.mubr.f32.gmra.mrb[170].mxu1 %v3058_v44  ;;  %v2092_v1 = vpop.f32.mrb[65].mxu1  ;;  %v3075_v44 = vld [vmem:[#allocation2 + $0x758] sm:$0xff] }
 0x2b1   : > { %7721 = vmatprep.mubr.msk.f32.mxu1 %vm838_vm0, %v3061_v38 }
 0x2b3   : > { %v10957_v11 = vpop.f32.mrb[66].mxu1 }
 0x2b4   : > { %v2173_v12 = vpack.c.bf16 %v10957_v11, %v10954_v13  ;;  %3287 = vmatmul.mubr.f32.gmra.mrb[172].mxu1 %v3060_v2  ;;  %v2097_v50 = vpop.f32.mrb[67].mxu1 }
 0x2b5   : > { %7722 = vmatprep.mubr.msk.f32.mxu1 %vm838_vm0, %v3063_v19  ;;  %v3076_v50 = vld [vmem:[#allocation2 + $0x760] sm:$0xff] }
 0x2b6   : > { %7617 = vmatmul.mubr.msk.bf16.gmra.mrb[64].mxu0 %vm1453_vm2, %v1100_v8  ;;  %v3069_v8 = vld [vmem:[#allocation2 + $0x728] sm:$0xff] }
 0x2b7   : > { %1792 = vmatprep.mubr.bf16.mxu0 %v10108_v48  ;;  %v10967_v18 = vpop.f32.mrb[68].mxu1 }
 0x2b8   : > { %3292 = vmatmul.mubr.f32.gmra.mrb[174].mxu1 %v3062_v56  ;;  %v2102_v6 = vpop.f32.mrb[69].mxu1  ;;  %v3079_v56 = vld [vmem:[#allocation2 + $0x778] sm:$0xff] }
 0x2b9   : > { %7723 = vmatprep.mubr.msk.f32.mxu1 %vm838_vm0, %v3065_v7 }
 0x2bb   : > { %v10970_v30 = vpop.f32.mrb[70].mxu1 }
 0x2bc   : > { %v2174_v34 = vpack.c.bf16 %v10970_v30, %v10967_v18  ;;  %3297 = vmatmul.mubr.f32.gmra.mrb[176].mxu1 %v3064_v22  ;;  %v2107_v61 = vpop.f32.mrb[71].mxu1 }
 0x2bd   : > { %7724 = vmatprep.mubr.msk.f32.mxu1 %vm838_vm0, %v3067_v24 }
 0x2be   : > { %7618 = vmatmul.mubr.msk.bf16.gmra.mrb[68].mxu0 %vm1453_vm2, %v1101_v28  ;;  %v3073_v28 = vld [vmem:[#allocation2 + $0x748] sm:$0xff] }
 0x2bf   : > { %1802 = vmatprep.mubr.bf16.mxu0 %v10108_v48  ;;  %v10980_v37 = vpop.f32.mrb[72].mxu1 }
 0x2c0   : > { %3302 = vmatmul.mubr.f32.gmra.mrb[178].mxu1 %v3066_v3  ;;  %v2112_v14 = vpop.f32.mrb[73].mxu1 }
 0x2c1   : > { %7725 = vmatprep.mubr.msk.f32.mxu1 %vm838_vm0, %v3069_v8 }
 0x2c3   : > { %v10983_v52 = vpop.f32.mrb[74].mxu1 }
 0x2c4   : > { %v2175_v53 = vpack.c.bf16 %v10983_v52, %v10980_v37  ;;  %3307 = vmatmul.mubr.f32.gmra.mrb[180].mxu1 %v3068_v23  ;;  %v2117_v45 = vpop.f32.mrb[75].mxu1 }
 0x2c5   : > { %7726 = vmatprep.mubr.msk.f32.mxu1 %vm838_vm0, %v3071_v27 }
 0x2c6   : > { %7619 = vmatmul.mubr.msk.bf16.gmra.mrb[72].mxu0 %vm1453_vm2, %v1102_v49  ;;  %v3077_v49 = vld [vmem:[#allocation2 + $0x768] sm:$0xff] }
 0x2c7   : > { %1812 = vmatprep.mubr.bf16.mxu0 %v10108_v48  ;;  %v10993_v54 = vpop.f32.mrb[76].mxu1 }
 0x2c8   : > { %3312 = vmatmul.mubr.f32.gmra.mrb[182].mxu1 %v3070_v21  ;;  %v2122_v35 = vpop.f32.mrb[77].mxu1  ;;  %v9606_v21 = vld [vmem:[#allocation5 + $0x74] ss:$8 sps:$4 sm:$0x3f]  }
 0x2c9   : > { %7727 = vmatprep.mubr.msk.f32.mxu1 %vm838_vm0, %v3073_v28 }
 0x2cb   : > { %v10996_v38 = vpop.f32.mrb[78].mxu1 }
 0x2cc   : > { %v2176_v1 = vpack.c.bf16 %v10996_v38, %v10993_v54  ;;  %3317 = vmatmul.mubr.f32.gmra.mrb[184].mxu1 %v3072_v40  ;;  %v2127_v36 = vpop.f32.mrb[79].mxu1  ;;  %v9608_v40 = vld [vmem:[#allocation5 + $0x70] ss:$8 sps:$4 sm:$0x3f]  }
 0x2cd   : > { %7728 = vmatprep.mubr.msk.f32.mxu1 %vm838_vm0, %v3075_v44  ;;  %v2825_v26 = vsel %vm1490_vm1, %v9608_v40, 0 }
 0x2ce   : > { %7620 = vmatmul.mubr.msk.bf16.gmra.mrb[76].mxu0 %vm1453_vm2, %v1103_v62 }
 0x2cf   : > { %1822 = vmatprep.mubr.bf16.mxu0 %v10108_v48  ;;  %v11006_v2 = vpop.f32.mrb[80].mxu1 }
 0x2d0   : > { %3322 = vmatmul.mubr.f32.gmra.mrb[186].mxu1 %v3074_v46  ;;  %v2132_v19 = vpop.f32.mrb[81].mxu1 }
 0x2d1   : > { %7729 = vmatprep.mubr.msk.f32.mxu1 %vm838_vm0, %v3077_v49 }
 0x2d3   : > { %v11009_v7 = vpop.f32.mrb[82].mxu1 }
 0x2d4   : > { %v2177_v6 = vpack.c.bf16 %v11009_v7, %v11006_v2  ;;  %3327 = vmatmul.mubr.f32.gmra.mrb[188].mxu1 %v3076_v50  ;;  %v2137_v55 = vpop.f32.mrb[83].mxu1  ;;  %v9611_v50 = vld [vmem:[#allocation5 + $0x84] ss:$8 sps:$4 sm:$0xff]  }
 0x2d5   : > { %7730 = vmatprep.mubr.msk.f32.mxu1 %vm838_vm0, %v3079_v56 }
 0x2d6   : > { %7621 = vmatmul.mubr.msk.bf16.gmra.mrb[80].mxu0 %vm1453_vm2, %v1104_v20 }
 0x2d7   : > { %1832 = vmatprep.mubr.bf16.mxu0 %v10108_v48  ;;  %v11019_v62 = vpop.f32.mrb[84].mxu1 }
 0x2d8   : > { %3332 = vmatmul.mubr.f32.gmra.mrb[190].mxu1 %v3078_v60  ;;  %v2142_v22 = vpop.f32.mrb[85].mxu1 }
 0x2db   : > { %v11021_v24 = vpop.f32.mrb[86].mxu1 }
 0x2dc   : > { %v2178_v61 = vpack.c.bf16 %v11021_v24, %v11019_v62  ;;  %v2147_v3 = vpop.f32.mrb[87].mxu1 }
 0x2de   : > { %7622 = vmatmul.mubr.msk.bf16.gmra.mrb[84].mxu0 %vm1453_vm2, %v1105_v51 }
 0x2df   : > { %1842 = vmatprep.mubr.bf16.mxu0 %v10108_v48  ;;  %v11030_v4 = vpop.f32.mrb[88].mxu1 }
 0x2e0   : > { %v2152_v17 = vpop.f32.mrb[89].mxu1 }
 0x2e3   : > { %v11032_v20 = vpop.f32.mrb[90].mxu1 }
 0x2e4   : > { %v2179_v8 = vpack.c.bf16 %v11032_v20, %v11030_v4  ;;  %v2157_v14 = vpop.f32.mrb[91].mxu1 }
 0x2e6   : > { %7623 = vmatmul.mubr.msk.bf16.gmra.mrb[88].mxu0 %vm1453_vm2, %v1106_v43  ;;  %v9603_v43 = vld [vmem:[#allocation5 + $0x60] ss:$8 sps:$4 sm:$0xff]  }
 0x2e7   : > { %1852 = vmatprep.mubr.bf16.mxu0 %v10108_v48  ;;  %v11041_v31 = vpop.f32.mrb[92].mxu1 }
 0x2e8   : > { %v2162_v42 = vpop.f32.mrb[93].mxu1 }
 0x2eb   : > { %v11043_v51 = vpop.f32.mrb[94].mxu1 }
 0x2ec   : > { %v2180_v23 = vpack.c.bf16 %v11043_v51, %v11041_v31  ;;  %v2167_v27 = vpop.f32.mrb[95].mxu1 }
 0x2ee   : > { %7624 = vmatmul.mubr.msk.bf16.gmra.mrb[92].mxu0 %vm1453_vm2, %v1107_v39 }
 0x2ef   : > { %2278 = vmatprep.mubr.bf16.mxu0 %v10108_v48  ;;  %v11052_v5 = vpop.f32.mrb[96].mxu1 }
 0x2f0   : > { %v2636_v63 = vpop.f32.mrb[97].mxu1 }
 0x2f3   : > { %v11054_v45 = vpop.f32.mrb[98].mxu1 }
 0x2f4   : > { %v2753_v28 = vpack.c.bf16 %v11054_v45, %v11052_v5  ;;  %v2641_v35 = vpop.f32.mrb[99].mxu1 }
 0x2f6   : > { %7654 = vmatmul.mubr.msk.bf16.vlgmr.msra.gmra.mrb[48].mxu0 %vm1453_vm2, %v2169_v10 }
 0x2f7   : > { %2288 = vmatprep.mubr.bf16.mxu0 %v10108_v48  ;;  %2831 = vmatpush1.bf16.msra.mxu0 %v9603_v43  ;;  %v11063_v15 = vpop.f32.mrb[100].mxu1 }
 0x2f8   : > { %7694 = vmatprep.subr.msk.bf16.mxu0 %vm1490_vm1, %v9606_v21  ;;  %v2646_v39 = vpop.f32.mrb[101].mxu1 }
 0x2fb   : > { %2833 = vmatpush1.bf16.msra.mxu0 %v2825_v26  ;;  %v11067_v44 = vpop.f32.mrb[102].mxu1 }
 0x2fc   : > { %v2754_v36 = vpack.c.bf16 %v11067_v44, %v11063_v15  ;;  %v2651_v46 = vpop.f32.mrb[103].mxu1  ;;  %3414 = vmatprep.subr.bf16.mxu0 %v9611_v50  ;;  %v9612_v50 = vld [vmem:[#allocation5 + $0x94] ss:$8 sps:$4 sm:$0x3f]  }
 0x2fe   : > { %7655 = vmatmul.mubr.msk.bf16.gmra.mrb[52].mxu0 %vm1453_vm2, %v2170_v16 }
 0x2ff   : > { %2298 = vmatprep.mubr.bf16.mxu0 %v10108_v48  ;;  %v11076_v32 = vpop.f32.mrb[104].mxu1 }
 0x300   : > { %v2656_v57 = vpop.f32.mrb[105].mxu1 }
 0x303   : > { %v11078_v10 = vpop.f32.mrb[106].mxu1 }
 0x304   : > { %v2755_v49 = vpack.c.bf16 %v11078_v10, %v11076_v32  ;;  %v2661_v19 = vpop.f32.mrb[107].mxu1 }
 0x306   : > { %7656 = vmatmul.mubr.msk.bf16.gmra.mrb[56].mxu0 %vm1453_vm2, %v2171_v41 }
 0x307   : > { %2308 = vmatprep.mubr.bf16.mxu0 %v10108_v48  ;;  %v11087_v9 = vpop.f32.mrb[108].mxu1 }
 0x308   : > { %v2666_v59 = vpop.f32.mrb[109].mxu1 }
 0x30b   : > { %v11089_v16 = vpop.f32.mrb[110].mxu1 }
 0x30c   : > { %v2756_v56 = vpack.c.bf16 %v11089_v16, %v11087_v9  ;;  %v2671_v55 = vpop.f32.mrb[111].mxu1 }
 0x30e   : > { %7657 = vmatmul.mubr.msk.bf16.gmra.mrb[60].mxu0 %vm1453_vm2, %v2172_v33 }
 0x30f   : > { %2318 = vmatprep.mubr.bf16.mxu0 %v10108_v48  ;;  %v11098_v25 = vpop.f32.mrb[112].mxu1 }
 0x310   : > { %v2676_v29 = vpop.f32.mrb[113].mxu1 }
 0x311   : > { %v9614_v29 = vld [vmem:[#allocation5 + $0x90] ss:$8 sps:$4 sm:$0x3f]  }
 0x312   : > { %v3409_v51 = vsel %vm1490_vm1, %v9614_v29, 0 }
 0x313   : > { %v11100_v41 = vpop.f32.mrb[114].mxu1 }
 0x314   : > { %v2757_v60 = vpack.c.bf16 %v11100_v41, %v11098_v25  ;;  %v2681_v22 = vpop.f32.mrb[115].mxu1 }
 0x316   : > { %7658 = vmatmul.mubr.msk.bf16.gmra.mrb[64].mxu0 %vm1453_vm2, %v2173_v12 }
 0x317   : > { %2328 = vmatprep.mubr.bf16.mxu0 %v10108_v48  ;;  %v11109_v47 = vpop.f32.mrb[116].mxu1 }
 0x318   : > { %v2686_v58 = vpop.f32.mrb[117].mxu1 }
 0x31b   : > { %v11111_v33 = vpop.f32.mrb[118].mxu1 }
 0x31c   : > { %v2758_v3 = vpack.c.bf16 %v11111_v33, %v11109_v47  ;;  %v2691_v17 = vpop.f32.mrb[119].mxu1 }
 0x31e   : > { %7659 = vmatmul.mubr.msk.bf16.gmra.mrb[68].mxu0 %vm1453_vm2, %v2174_v34 }
 0x31f   : > { %2338 = vmatprep.mubr.bf16.mxu0 %v10108_v48  ;;  %v11120_v13 = vpop.f32.mrb[120].mxu1 }
 0x320   : > { %v2696_v11 = vpop.f32.mrb[121].mxu1 }
 0x323   : > { %v11122_v12 = vpop.f32.mrb[122].mxu1 }
 0x324   : > { %v2759_v14 = vpack.c.bf16 %v11122_v12, %v11120_v13  ;;  %v2701_v42 = vpop.f32.mrb[123].mxu1 }
 0x326   : > { %7660 = vmatmul.mubr.msk.bf16.gmra.mrb[72].mxu0 %vm1453_vm2, %v2175_v53 }
 0x327   : > { %2348 = vmatprep.mubr.bf16.mxu0 %v10108_v48  ;;  %v11131_v18 = vpop.f32.mrb[124].mxu1 }
 0x328   : > { %v2706_v30 = vpop.f32.mrb[125].mxu1 }
 0x32b   : > { %v11133_v34 = vpop.f32.mrb[126].mxu1 }
 0x32c   : > { %v2760_v27 = vpack.c.bf16 %v11133_v34, %v11131_v18  ;;  %v2711_v63 = vpop.f32.mrb[127].mxu1 }
 0x32e   : > { %7661 = vmatmul.mubr.msk.bf16.gmra.mrb[76].mxu0 %vm1453_vm2, %v2176_v1 }
 0x32f   : > { %2358 = vmatprep.mubr.bf16.mxu0 %v10108_v48  ;;  %v11142_v37 = vpop.f32.mrb[128].mxu1 }
 0x330   : > { %v2716_v52 = vpop.f32.mrb[129].mxu1 }
 0x333   : > { %v11144_v53 = vpop.f32.mrb[130].mxu1 }
 0x334   : > { %v2761_v43 = vpack.c.bf16 %v11144_v53, %v11142_v37  ;;  %v2721_v21 = vpop.f32.mrb[131].mxu1 }
 0x336   : > { %7662 = vmatmul.mubr.msk.bf16.gmra.mrb[80].mxu0 %vm1453_vm2, %v2177_v6 }
 0x337   : > { %2368 = vmatprep.mubr.bf16.mxu0 %v10108_v48  ;;  %v11153_v54 = vpop.f32.mrb[132].mxu1 }
 0x338   : > { %v2726_v38 = vpop.f32.mrb[133].mxu1 }
 0x33b   : > { %v11155_v1 = vpop.f32.mrb[134].mxu1 }
 0x33c   : > { %v2762_v35 = vpack.c.bf16 %v11155_v1, %v11153_v54  ;;  %v2731_v40 = vpop.f32.mrb[135].mxu1 }
 0x33e   : > { %7663 = vmatmul.mubr.msk.bf16.gmra.mrb[84].mxu0 %vm1453_vm2, %v2178_v61 }
 0x33f   : > { %2378 = vmatprep.mubr.bf16.mxu0 %v10108_v48  ;;  %v11164_v2 = vpop.f32.mrb[136].mxu1 }
 0x340   : > { %v2736_v7 = vpop.f32.mrb[137].mxu1 }
 0x343   : > { %v11166_v6 = vpop.f32.mrb[138].mxu1 }
 0x344   : > { %v2763_v26 = vpack.c.bf16 %v11166_v6, %v11164_v2  ;;  %v2741_v39 = vpop.f32.mrb[139].mxu1  ;;  %v3617_v2 = vlaneseq }
 0x346   : > { %7664 = vmatmul.mubr.msk.bf16.gmra.mrb[88].mxu0 %vm1453_vm2, %v2179_v8  ;;  %v9609_v8 = vld [vmem:[#allocation5 + $0x80] ss:$8 sps:$4 sm:$0xff]   ;;  %v11314_v6 = vshrl.u32 %v3617_v2, 7 }
 0x347   : > { %2388 = vmatprep.mubr.bf16.mxu0 %v10108_v48  ;;  %v11175_v62 = vpop.f32.mrb[140].mxu1 }
 0x348   : > { %v2746_v24 = vpop.f32.mrb[141].mxu1 }
 0x34b   : > { %v11177_v61 = vpop.f32.mrb[142].mxu1 }
 0x34c   : > { %v2764_v46 = vpack.c.bf16 %v11177_v61, %v11175_v62  ;;  %v2751_v57 = vpop.f32.mrb[143].mxu1  ;;  %v3615_v62 = vld [vmem:[%s12852_s1] sm:$0x3]  ;;  %v3623_v61 = vsub.s32 1, %v11314_v6  ;;  %s12859_s1 = sld [smem:[#allocation30_spill]] }
 0x34e   : > { %7665 = vmatmul.mubr.msk.bf16.gmra.mrb[92].mxu0 %vm1453_vm2, %v2180_v23 }
 0x34f   : > { %2862 = vmatprep.mubr.bf16.mxu0 %v10108_v48  ;;  %v11186_v4 = vpop.f32.mrb[144].mxu1 }
 0x350   : > { %v3220_v20 = vpop.f32.mrb[145].mxu1 }
 0x352   : > { %p12861_p11 = scmp.ne.s32.totalorder %s12859_s1, 0 }
 0x353   : > { %v11188_v19 = vpop.f32.mrb[146].mxu1 }
 0x354   : > { %v3337_v59 = vpack.c.bf16 %v11188_v19, %v11186_v4  ;;  %v3225_v55 = vpop.f32.mrb[147].mxu1  ;;  %v11327_v19 = vrot.slane %v3615_v62, %v3623_v61 }
 0x356   : > { %7695 = vmatmul.mubr.msk.bf16.vlgmr.msra.gmra.mrb[48].mxu0 %vm1453_vm2, %v2753_v28 }
 0x357   : > { %2872 = vmatprep.mubr.bf16.mxu0 %v10108_v48  ;;  %3415 = vmatpush1.bf16.msra.mxu0 %v9609_v8  ;;  %v11197_v31 = vpop.f32.mrb[148].mxu1 }
 0x358   : > { %7735 = vmatprep.subr.msk.bf16.mxu0 %vm1490_vm1, %v9612_v50  ;;  %v3230_v23 = vpop.f32.mrb[149].mxu1 }
 0x35b   : > { %3417 = vmatpush1.bf16.msra.mxu0 %v3409_v51  ;;  %v11201_v22 = vpop.f32.mrb[150].mxu1 }
 0x35c   : > { %v3338_v58 = vpack.c.bf16 %v11201_v22, %v11197_v31  ;;  %v3235_v17 = vpop.f32.mrb[151].mxu1 }
 0x35e   : > { %7696 = vmatmul.mubr.msk.bf16.gmra.mrb[52].mxu0 %vm1453_vm2, %v2754_v36 }
 0x35f   : > { %2882 = vmatprep.mubr.bf16.mxu0 %v10108_v48  ;;  %v11210_v5 = vpop.f32.mrb[152].mxu1 }
 0x360   : > { %v3240_v45 = vpop.f32.mrb[153].mxu1 }
 0x363   : > { %v11212_v28 = vpop.f32.mrb[154].mxu1 }
 0x364   : > { %v3339_v11 = vpack.c.bf16 %v11212_v28, %v11210_v5  ;;  %v3245_v42 = vpop.f32.mrb[155].mxu1 }
 0x366   : > { %7697 = vmatmul.mubr.msk.bf16.gmra.mrb[56].mxu0 %vm1453_vm2, %v2755_v49 }
 0x367   : > { %2892 = vmatprep.mubr.bf16.mxu0 %v10108_v48  ;;  %v11221_v15 = vpop.f32.mrb[156].mxu1 }
 0x368   : > { %v3250_v44 = vpop.f32.mrb[157].mxu1 }
 0x36b   : > { %v11223_v36 = vpop.f32.mrb[158].mxu1 }
 0x36c   : > { %v3340_v30 = vpack.c.bf16 %v11223_v36, %v11221_v15  ;;  %v3255_v63 = vpop.f32.mrb[159].mxu1 }
 0x36e   : > { %7698 = vmatmul.mubr.msk.bf16.gmra.mrb[60].mxu0 %vm1453_vm2, %v2756_v56 }
 0x36f   : > { %2902 = vmatprep.mubr.bf16.mxu0 %v10108_v48  ;;  %v11232_v32 = vpop.f32.mrb[160].mxu1 }
 0x370   : > { %v3260_v10 = vpop.f32.mrb[161].mxu1 }
 0x373   : > { %v11234_v49 = vpop.f32.mrb[162].mxu1 }
 0x374   : > { %v3341_v52 = vpack.c.bf16 %v11234_v49, %v11232_v32  ;;  %v3265_v21 = vpop.f32.mrb[163].mxu1 }
 0x376   : > { %7699 = vmatmul.mubr.msk.bf16.gmra.mrb[64].mxu0 %vm1453_vm2, %v2757_v60 }
 0x377   : > { %2912 = vmatprep.mubr.bf16.mxu0 %v10108_v48  ;;  %v3268_v9 = vpop.f32.mrb[164].mxu1 }
 0x378   : > { %v3270_v16 = vpop.f32.mrb[165].mxu1 }
 0x37b   : > { %v3273_v56 = vpop.f32.mrb[166].mxu1 }
 0x37c   : > { %v3342_v38 = vpack.c.bf16 %v3273_v56, %v3268_v9  ;;  %v3275_v40 = vpop.f32.mrb[167].mxu1 }
 0x37e   : > { %7700 = vmatmul.mubr.msk.bf16.gmra.mrb[68].mxu0 %vm1453_vm2, %v2758_v3 }
 0x37f   : > { %2922 = vmatprep.mubr.bf16.mxu0 %v10108_v48  ;;  %v3278_v7 = vpop.f32.mrb[168].mxu1 }
 0x380   : > { %v3280_v39 = vpop.f32.mrb[169].mxu1 }
 0x383   : > { %v3283_v24 = vpop.f32.mrb[170].mxu1 }
 0x384   : > { %v3343_v25 = vpack.c.bf16 %v3283_v24, %v3278_v7  ;;  %v3285_v41 = vpop.f32.mrb[171].mxu1 }
 0x386   : > { %7701 = vmatmul.mubr.msk.bf16.gmra.mrb[72].mxu0 %vm1453_vm2, %v2759_v14 }
 0x387   : > { %2932 = vmatprep.mubr.bf16.mxu0 %v10108_v48  ;;  %v3288_v60 = vpop.f32.mrb[172].mxu1 }
 0x388   : > { %v3290_v57 = vpop.f32.mrb[173].mxu1 }
 0x38b   : > { %v3293_v20 = vpop.f32.mrb[174].mxu1 }
 0x38c   : > { %v3344_v47 = vpack.c.bf16 %v3293_v20, %v3288_v60  ;;  %v3295_v33 = vpop.f32.mrb[175].mxu1 }
 0x38e   : > { %7702 = vmatmul.mubr.msk.bf16.gmra.mrb[76].mxu0 %vm1453_vm2, %v2760_v27 }
 0x38f   : > { %2942 = vmatprep.mubr.bf16.mxu0 %v10108_v48  ;;  %v3298_v3 = vpop.f32.mrb[176].mxu1 }
 0x390   : > { %v3300_v8 = vpop.f32.mrb[177].mxu1 }
 0x393   : > { %v3303_v50 = vpop.f32.mrb[178].mxu1 }
 0x394   : > { %v3345_v13 = vpack.c.bf16 %v3303_v50, %v3298_v3  ;;  %v3305_v12 = vpop.f32.mrb[179].mxu1 }
 0x396   : > { %7703 = vmatmul.mubr.msk.bf16.gmra.mrb[80].mxu0 %vm1453_vm2, %v2761_v43 }
 0x397   : > { %2952 = vmatprep.mubr.bf16.mxu0 %v10108_v48  ;;  %v3308_v14 = vpop.f32.mrb[180].mxu1 }
 0x398   : > { %v3310_v55 = vpop.f32.mrb[181].mxu1 }
 0x39b   : > { %v3313_v29 = vpop.f32.mrb[182].mxu1 }
 0x39c   : > { %v3346_v18 = vpack.c.bf16 %v3313_v29, %v3308_v14  ;;  %v3315_v34 = vpop.f32.mrb[183].mxu1 }
 0x39e   : > { %7704 = vmatmul.mubr.msk.bf16.gmra.mrb[84].mxu0 %vm1453_vm2, %v2762_v35  ;;  %v3676_v35 = vld [vmem:[#allocation7 + $0x8] sm:$0xff] }
 0x39f   : > { %2962 = vmatprep.mubr.bf16.mxu0 %v10108_v48  ;;  %v3318_v27 = vpop.f32.mrb[184].mxu1  ;;  %7748 = vmatprep.mubr.msk.f32.mxu1 %vm3699_vm3, %v3676_v35 }
 0x3a0   : > { %v3320_v51 = vpop.f32.mrb[185].mxu1 }
 0x3a3   : > { %v3323_v23 = vpop.f32.mrb[186].mxu1 }
 0x3a4   : > { %v3347_v37 = vpack.c.bf16 %v3323_v23, %v3318_v27  ;;  %v3325_v53 = vpop.f32.mrb[187].mxu1 }
 0x3a6   : > { %7705 = vmatmul.mubr.msk.bf16.gmra.mrb[88].mxu0 %vm1453_vm2, %v2763_v26  ;;  %v3619_v26 = vsub.s32 0, %v11314_v6 }
 0x3a7   : > { %2972 = vmatprep.mubr.bf16.mxu0 %v10108_v48  ;;  %v3328_v43 = vpop.f32.mrb[188].mxu1 }
 0x3a8   : > { %v3330_v17 = vpop.f32.mrb[189].mxu1 }
 0x3ab   : > { %v3333_v45 = vpop.f32.mrb[190].mxu1 }
 0x3ac   : > { %v3348_v54 = vpack.c.bf16 %v3333_v45, %v3328_v43  ;;  %v3335_v1 = vpop.f32.mrb[191].mxu1 }
 0x3ae   : > { %7706 = vmatmul.mubr.msk.bf16.gmra.mrb[92].mxu0 %vm1453_vm2, %v2764_v46  ;;  %v11323_v46 = vrot.slane %v3615_v62, %v3619_v26 }
 0x3af   : > { %3446 = vmatprep.mubr.bf16.mxu0 %v10108_v48 }
 0x3b6   : > { %7736 = vmatmul.mubr.msk.bf16.vlgmr.msra.gmra.mrb[48].mxu0 %vm1453_vm2, %v3337_v59 }
 0x3b7   : > { %3456 = vmatprep.mubr.bf16.mxu0 %v10108_v48 }
 0x3be   : > { %7737 = vmatmul.mubr.msk.bf16.gmra.mrb[52].mxu0 %vm1453_vm2, %v3338_v58 }
 0x3bf   : > { %3466 = vmatprep.mubr.bf16.mxu0 %v10108_v48 }
 0x3c6   : > { %7738 = vmatmul.mubr.msk.bf16.gmra.mrb[56].mxu0 %vm1453_vm2, %v3339_v11 }
 0x3c7   : > { %3476 = vmatprep.mubr.bf16.mxu0 %v10108_v48 }
 0x3ce   : > { %7739 = vmatmul.mubr.msk.bf16.gmra.mrb[60].mxu0 %vm1453_vm2, %v3340_v30 }
 0x3cf   : > { %3486 = vmatprep.mubr.bf16.mxu0 %v10108_v48 }
 0x3d6   : > { %7740 = vmatmul.mubr.msk.bf16.gmra.mrb[64].mxu0 %vm1453_vm2, %v3341_v52 }
 0x3d7   : > { %3496 = vmatprep.mubr.bf16.mxu0 %v10108_v48 }
 0x3de   : > { %7741 = vmatmul.mubr.msk.bf16.gmra.mrb[68].mxu0 %vm1453_vm2, %v3342_v38 }
 0x3df   : > { %3506 = vmatprep.mubr.bf16.mxu0 %v10108_v48 }
 0x3e6   : > { %7742 = vmatmul.mubr.msk.bf16.gmra.mrb[72].mxu0 %vm1453_vm2, %v3343_v25 }
 0x3e7   : > { %3516 = vmatprep.mubr.bf16.mxu0 %v10108_v48 }
 0x3ee   : > { %7743 = vmatmul.mubr.msk.bf16.gmra.mrb[76].mxu0 %vm1453_vm2, %v3344_v47 }
 0x3ef   : > { %3526 = vmatprep.mubr.bf16.mxu0 %v10108_v48 }
 0x3f6   : > { %7744 = vmatmul.mubr.msk.bf16.gmra.mrb[80].mxu0 %vm1453_vm2, %v3345_v13 }
 0x3f7   : > { %3536 = vmatprep.mubr.bf16.mxu0 %v10108_v48 }
 0x3fe   : > { %7745 = vmatmul.mubr.msk.bf16.gmra.mrb[84].mxu0 %vm1453_vm2, %v3346_v18 }
 0x3ff   : > { %3546 = vmatprep.mubr.bf16.mxu0 %v10108_v48 }
 0x406   : > { %7746 = vmatmul.mubr.msk.bf16.gmra.mrb[88].mxu0 %vm1453_vm2, %v3347_v37 }
 0x407   : > { %3556 = vmatprep.mubr.bf16.mxu0 %v10108_v48 }
 0x40e   : > { %7747 = vmatmul.mubr.msk.bf16.gmra.mrb[92].mxu0 %vm1453_vm2, %v3348_v54 }
 0x489   : > { %v3448_v4 = vpop.f32.mrb[48].mxu0 }
 0x48a   : > { %v3450_v59 = vpop.f32.mrb[49].mxu0  ;;  %v3627_v22 = vadd.f32 %v11323_v46, %v3448_v4 }
 0x48b   : > { %v3452_v31 = vpop.f32.mrb[50].mxu0  ;;  %v3628_v28 = vadd.f32 %v11327_v19, %v3450_v59 }
 0x48c   : > { %v3629_v58 = vadd.f32 %v11323_v46, %v3452_v31  ;;  %v3454_v5 = vpop.f32.mrb[51].mxu0 }
 0x48d   : > { %v3630_v11 = vadd.f32 %v11327_v19, %v3454_v5 }
 0x48e   : > { %v11333_v42 = vpack.c.bf16 %v3629_v58, %v3627_v22 }
 0x48f   : > { %v11335_v15 = vpack.c.bf16 %v3630_v11, %v3628_v28 }
 0x491   : > { %v3458_v44 = vpop.f32.mrb[52].mxu0  ;;  %8770 = vmatprep.subr.bf16.mxu1 %v11335_v15 }
 0x492   : > { %v3460_v36 = vpop.f32.mrb[53].mxu0  ;;  %8772 = vmatpush1.bf16.msra.mxu1 %v11333_v42  ;;  %v3631_v63 = vadd.f32 %v11323_v46, %v3458_v44 }
 0x493   : > { %v3462_v30 = vpop.f32.mrb[54].mxu0  ;;  %v3632_v49 = vadd.f32 %v11327_v19, %v3460_v36 }
 0x494   : > { %v3633_v32 = vadd.f32 %v11323_v46, %v3462_v30  ;;  %v3464_v10 = vpop.f32.mrb[55].mxu0 }
 0x495   : > { %v3634_v52 = vadd.f32 %v11327_v19, %v3464_v10 }
 0x496   : > { %v11343_v21 = vpack.c.bf16 %v3633_v32, %v3631_v63 }
 0x497   : > { %v11345_v9 = vpack.c.bf16 %v3634_v52, %v3632_v49 }
 0x499   : > { %v3468_v16 = vpop.f32.mrb[56].mxu0  ;;  %8774 = vmatprep.subr.bf16.mxu1 %v11345_v9 }
 0x49a   : > { %v3470_v56 = vpop.f32.mrb[57].mxu0  ;;  %8776 = vmatpush1.bf16.msra.mxu1 %v11343_v21  ;;  %v3635_v40 = vadd.f32 %v11323_v46, %v3468_v16 }
 0x49b   : > { %v3472_v38 = vpop.f32.mrb[58].mxu0  ;;  %v3636_v24 = vadd.f32 %v11327_v19, %v3470_v56 }
 0x49c   : > { %v3637_v7 = vadd.f32 %v11323_v46, %v3472_v38  ;;  %v3474_v39 = vpop.f32.mrb[59].mxu0 }
 0x49d   : > { %v3638_v25 = vadd.f32 %v11327_v19, %v3474_v39 }
 0x49e   : > { %v11353_v41 = vpack.c.bf16 %v3637_v7, %v3635_v40 }
 0x49f   : > { %v11355_v60 = vpack.c.bf16 %v3638_v25, %v3636_v24 }
 0x4a1   : > { %v3478_v57 = vpop.f32.mrb[60].mxu0  ;;  %8778 = vmatprep.subr.bf16.mxu1 %v11355_v60 }
 0x4a2   : > { %v3480_v20 = vpop.f32.mrb[61].mxu0  ;;  %8780 = vmatpush1.bf16.msra.mxu1 %v11353_v41  ;;  %v3639_v33 = vadd.f32 %v11323_v46, %v3478_v57 }
 0x4a3   : > { %v3482_v47 = vpop.f32.mrb[62].mxu0  ;;  %v3640_v50 = vadd.f32 %v11327_v19, %v3480_v20 }
 0x4a4   : > { %v3641_v3 = vadd.f32 %v11323_v46, %v3482_v47  ;;  %v3484_v8 = vpop.f32.mrb[63].mxu0 }
 0x4a5   : > { %v3642_v13 = vadd.f32 %v11327_v19, %v3484_v8 }
 0x4a6   : > { %v11363_v12 = vpack.c.bf16 %v3641_v3, %v3639_v33 }
 0x4a7   : > { %v11365_v14 = vpack.c.bf16 %v3642_v13, %v3640_v50 }
 0x4a9   : > { %v3488_v55 = vpop.f32.mrb[64].mxu0  ;;  %8782 = vmatprep.subr.bf16.mxu1 %v11365_v14 }
 0x4aa   : > { %v3490_v29 = vpop.f32.mrb[65].mxu0  ;;  %8784 = vmatpush1.bf16.msra.mxu1 %v11363_v12  ;;  %v3643_v34 = vadd.f32 %v11323_v46, %v3488_v55 }
 0x4ab   : > { %v3492_v18 = vpop.f32.mrb[66].mxu0  ;;  %v3644_v23 = vadd.f32 %v11327_v19, %v3490_v29 }
 0x4ac   : > { %v3645_v27 = vadd.f32 %v11323_v46, %v3492_v18  ;;  %v3494_v51 = vpop.f32.mrb[67].mxu0 }
 0x4ad   : > { %v3646_v37 = vadd.f32 %v11327_v19, %v3494_v51 }
 0x4ae   : > { %v11373_v53 = vpack.c.bf16 %v3645_v27, %v3643_v34 }
 0x4af   : > { %v11375_v43 = vpack.c.bf16 %v3646_v37, %v3644_v23 }
 0x4b1   : > { %v3498_v17 = vpop.f32.mrb[68].mxu0  ;;  %8786 = vmatprep.subr.bf16.mxu1 %v11375_v43 }
 0x4b2   : > { %v3500_v45 = vpop.f32.mrb[69].mxu0  ;;  %8788 = vmatpush1.bf16.msra.mxu1 %v11373_v53  ;;  %v3647_v1 = vadd.f32 %v11323_v46, %v3498_v17 }
 0x4b3   : > { %v3502_v54 = vpop.f32.mrb[70].mxu0  ;;  %v3648_v62 = vadd.f32 %v11327_v19, %v3500_v45 }
 0x4b4   : > { %v3649_v35 = vadd.f32 %v11323_v46, %v3502_v54  ;;  %v3504_v2 = vpop.f32.mrb[71].mxu0 }
 0x4b5   : > { %v3650_v4 = vadd.f32 %v11327_v19, %v3504_v2 }
 0x4b6   : > { %v11383_v59 = vpack.c.bf16 %v3649_v35, %v3647_v1 }
 0x4b7   : > { %v11385_v31 = vpack.c.bf16 %v3650_v4, %v3648_v62 }
 0x4b9   : > { %v3508_v22 = vpop.f32.mrb[72].mxu0  ;;  %8790 = vmatprep.subr.bf16.mxu1 %v11385_v31 }
 0x4ba   : > { %v3510_v58 = vpop.f32.mrb[73].mxu0  ;;  %8792 = vmatpush1.bf16.msra.mxu1 %v11383_v59  ;;  %v3651_v28 = vadd.f32 %v11323_v46, %v3508_v22 }
 0x4bb   : > { %v3512_v5 = vpop.f32.mrb[74].mxu0  ;;  %v3652_v36 = vadd.f32 %v11327_v19, %v3510_v58 }
 0x4bc   : > { %v3653_v11 = vadd.f32 %v11323_v46, %v3512_v5  ;;  %v3514_v44 = vpop.f32.mrb[75].mxu0 }
 0x4bd   : > { %v3654_v30 = vadd.f32 %v11327_v19, %v3514_v44 }
 0x4be   : > { %v11393_v63 = vpack.c.bf16 %v3653_v11, %v3651_v28 }
 0x4bf   : > { %v11395_v32 = vpack.c.bf16 %v3654_v30, %v3652_v36 }
 0x4c1   : > { %v3518_v10 = vpop.f32.mrb[76].mxu0  ;;  %8794 = vmatprep.subr.bf16.mxu1 %v11395_v32 }
 0x4c2   : > { %v3520_v49 = vpop.f32.mrb[77].mxu0  ;;  %8796 = vmatpush1.bf16.msra.mxu1 %v11393_v63  ;;  %v3655_v16 = vadd.f32 %v11323_v46, %v3518_v10 }
 0x4c3   : > { %v3522_v52 = vpop.f32.mrb[78].mxu0  ;;  %v3656_v40 = vadd.f32 %v11327_v19, %v3520_v49 }
 0x4c4   : > { %v3657_v56 = vadd.f32 %v11323_v46, %v3522_v52  ;;  %v3524_v38 = vpop.f32.mrb[79].mxu0 }
 0x4c5   : > { %v3658_v7 = vadd.f32 %v11327_v19, %v3524_v38 }
 0x4c6   : > { %v11403_v39 = vpack.c.bf16 %v3657_v56, %v3655_v16 }
 0x4c7   : > { %v11405_v24 = vpack.c.bf16 %v3658_v7, %v3656_v40  ;;  %v3675_v7 = vld [vmem:[#allocation7] sm:$0xff] }
 0x4c9   : > { %v3528_v25 = vpop.f32.mrb[80].mxu0  ;;  %8798 = vmatprep.subr.bf16.mxu1 %v11405_v24 }
 0x4ca   : > { %v3530_v57 = vpop.f32.mrb[81].mxu0  ;;  %8800 = vmatpush1.bf16.msra.mxu1 %v11403_v39  ;;  %v3659_v47 = vadd.f32 %v11323_v46, %v3528_v25  ;;  %v3678_v25 = vld [vmem:[#allocation7 + $0x18] sm:$0xff] }
 0x4cb   : > { %v3532_v20 = vpop.f32.mrb[82].mxu0  ;;  %v3660_v8 = vadd.f32 %v11327_v19, %v3530_v57  ;;  %v3679_v57 = vld [vmem:[#allocation7 + $0x20] sm:$0xff] }
 0x4cc   : > { %v3661_v33 = vadd.f32 %v11323_v46, %v3532_v20  ;;  %v3534_v3 = vpop.f32.mrb[83].mxu0  ;;  %v3682_v20 = vld [vmem:[#allocation7 + $0x38] sm:$0xff] }
 0x4cd   : > { %v3662_v50 = vadd.f32 %v11327_v19, %v3534_v3  ;;  %v4094_v3 = vld [vmem:[%s12766_s6] sm:$0xff] }
 0x4ce   : > { %v11413_v13 = vpack.c.bf16 %v3661_v33, %v3659_v47  ;;  %v3697_v47 = vld [vmem:[#allocation7 + $0xb0] sm:$0xff]  ;;  %v3874_v33 = vld [vmem:[#allocation8 + $0x8] sm:$0xff] }
 0x4cf   : > { %v11415_v55 = vpack.c.bf16 %v3662_v50, %v3660_v8  ;;  %v4095_v8 = vld [vmem:[%s12766_s6 + $0x8] sm:$0xff]  ;;  %v3873_v50 = vld [vmem:[#allocation8] sm:$0xff] }
 0x4d1   : > { %v3538_v29 = vpop.f32.mrb[84].mxu0  ;;  %8802 = vmatprep.subr.bf16.mxu1 %v11415_v55 }
 0x4d2   : > { %v3540_v18 = vpop.f32.mrb[85].mxu0  ;;  %8804 = vmatpush1.bf16.msra.mxu1 %v11413_v13  ;;  %v3663_v27 = vadd.f32 %v11323_v46, %v3538_v29  ;;  %v4096_v29 = vld [vmem:[%s12766_s6 + $0x10] sm:$0xff] }
 0x4d3   : > { %v3542_v34 = vpop.f32.mrb[86].mxu0  ;;  %v3664_v37 = vadd.f32 %v11327_v19, %v3540_v18  ;;  %v4097_v18 = vld [vmem:[%s12766_s6 + $0x18] sm:$0xff] }
 0x4d4   : > { %v3665_v51 = vadd.f32 %v11323_v46, %v3542_v34  ;;  %v3544_v23 = vpop.f32.mrb[87].mxu0  ;;  %v3875_v34 = vld [vmem:[#allocation8 + $0x10] sm:$0xff] }
 0x4d5   : > { %v3666_v17 = vadd.f32 %v11327_v19, %v3544_v23  ;;  %v3877_v23 = vld [vmem:[#allocation8 + $0x20] sm:$0xff] }
 0x4d6   : > { %v11423_v45 = vpack.c.bf16 %v3665_v51, %v3663_v27  ;;  %v8869_v27 = vpack.c.bf16 %v4097_v18, %v4096_v29  ;;  %v3878_v51 = vld [vmem:[#allocation8 + $0x28] sm:$0xff]  ;;  %v4122_v18 = vld [vmem:[%s12766_s6 + $0xe0] sm:$0xff] }
 0x4d7   : > { %v11425_v54 = vpack.c.bf16 %v3666_v17, %v3664_v37  ;;  %v3880_v37 = vld [vmem:[#allocation8 + $0x38] sm:$0xff]  ;;  %v3879_v17 = vld [vmem:[#allocation8 + $0x30] sm:$0xff] }
 0x4d9   : > { %v3548_v1 = vpop.f32.mrb[88].mxu0  ;;  %8806 = vmatprep.subr.bf16.mxu1 %v11425_v54 }
 0x4da   : > { %v3550_v35 = vpop.f32.mrb[89].mxu0  ;;  %8808 = vmatpush1.bf16.msra.mxu1 %v11423_v45  ;;  %v3667_v62 = vadd.f32 %v11323_v46, %v3548_v1  ;;  %v3884_v1 = vld [vmem:[#allocation8 + $0x58] sm:$0xff] }
 0x4db   : > { %v3552_v2 = vpop.f32.mrb[90].mxu0  ;;  %v3668_v58 = vadd.f32 %v11327_v19, %v3550_v35  ;;  %v3883_v35 = vld [vmem:[#allocation8 + $0x50] sm:$0xff] }
 0x4dc   : > { %v3669_v4 = vadd.f32 %v11323_v46, %v3552_v2  ;;  %v3554_v22 = vpop.f32.mrb[91].mxu0  ;;  %v3886_v2 = vld [vmem:[#allocation8 + $0x68] sm:$0xff] }
 0x4dd   : > { %v3670_v5 = vadd.f32 %v11327_v19, %v3554_v22  ;;  %v3887_v22 = vld [vmem:[#allocation8 + $0x70] sm:$0xff] }
 0x4de   : > { %v11433_v28 = vpack.c.bf16 %v3669_v4, %v3667_v62  ;;  %v3885_v62 = vld [vmem:[#allocation8 + $0x60] sm:$0xff]  ;;  %v3888_v4 = vld [vmem:[#allocation8 + $0x78] sm:$0xff] }
 0x4df   : > { %v11435_v11 = vpack.c.bf16 %v3670_v5, %v3668_v58  ;;  %v3890_v58 = vld [vmem:[#allocation8 + $0x88] sm:$0xff]  ;;  %v3889_v5 = vld [vmem:[#allocation8 + $0x80] sm:$0xff] }
 0x4e1   : > { %v3558_v44 = vpop.f32.mrb[92].mxu0  ;;  %8810 = vmatprep.subr.bf16.mxu1 %v11435_v11 }
 0x4e2   : > { %v3560_v36 = vpop.f32.mrb[93].mxu0  ;;  %8812 = vmatpush1.bf16.msra.mxu1 %v11433_v28  ;;  %v3671_v10 = vadd.f32 %v11323_v46, %v3558_v44  ;;  %v4098_v44 = vld [vmem:[%s12766_s6 + $0x20] sm:$0xff] }
 0x4e3   : > { %v3562_v30 = vpop.f32.mrb[94].mxu0  ;;  %v3672_v16 = vadd.f32 %v11327_v19, %v3560_v36  ;;  %v4099_v36 = vld [vmem:[%s12766_s6 + $0x28] sm:$0xff] }
 0x4e4   : > { %v3673_v49 = vadd.f32 %v11323_v46, %v3562_v30  ;;  %v3564_v52 = vpop.f32.mrb[95].mxu0  ;;  %v3677_v46 = vld [vmem:[#allocation7 + $0x10] sm:$0xff]  ;;  %v3894_v30 = vld [vmem:[#allocation8 + $0xa8] sm:$0xff] }
 0x4e5   : > { %v3674_v56 = vadd.f32 %v11327_v19, %v3564_v52  ;;  %v3680_v19 = vld [vmem:[#allocation7 + $0x28] sm:$0xff]  ;;  %v4100_v52 = vld [vmem:[%s12766_s6 + $0x30] sm:$0xff] }
 0x4e6   : > { %v11443_v38 = vpack.c.bf16 %v3673_v49, %v3671_v10  ;;  %v8872_v10 = vpack.c.bf16 %v4099_v36, %v4098_v44  ;;  %v3893_v49 = vld [vmem:[#allocation8 + $0xa0] sm:$0xff] }
 0x4e7   : > { %v11445_v40 = vpack.c.bf16 %v3674_v56, %v3672_v16  ;;  %v4101_v16 = vld [vmem:[%s12766_s6 + $0x38] sm:$0xff] }
 0x4e8   : > { %v3896_v56 = vld [vmem:[#allocation8 + $0xb8] sm:$0xff] }
 0x4e9   : > { %8814 = vmatprep.subr.bf16.mxu1 %v11445_v40 }
 0x4ea   : > { %8816 = vmatpush1.bf16.msra.mxu1 %v11443_v38 }
 0x4eb   : > { %8818 = vmatprep.subr.bf16.mxu1 %v11335_v15  ;;  %v3684_v15 = vld [vmem:[#allocation7 + $0x48] sm:$0xff] }
 0x4ed   : > { %3801 = vmatmul.mubr.f32.vlgmr.msra.gmra.mrb[192].mxu1 %v3675_v7  ;;  %v4102_v7 = vld [vmem:[%s12766_s6 + $0x40] sm:$0xff] }
 0x4ee   : > { %8820 = vmatpush1.bf16.msra.mxu1 %v11333_v42  ;;  %7749 = vmatprep.mubr.msk.f32.mxu1 %vm3699_vm3, %v3678_v25  ;;  %v3681_v42 = vld [vmem:[#allocation7 + $0x30] sm:$0xff]  ;;  %v4103_v25 = vld [vmem:[%s12766_s6 + $0x48] sm:$0xff] }
 0x4ef   : > { %8822 = vmatprep.subr.bf16.mxu1 %v11345_v9  ;;  %v3686_v9 = vld [vmem:[#allocation7 + $0x58] sm:$0xff] }
 0x4f1   : > { %3807 = vmatmul.mubr.f32.gmra.mrb[194].mxu1 %v3677_v46  ;;  %v8878_v46 = vpack.c.bf16 %v4103_v25, %v4102_v7 }
 0x4f2   : > { %8824 = vmatpush1.bf16.msra.mxu1 %v11343_v21  ;;  %7750 = vmatprep.mubr.msk.f32.mxu1 %vm3699_vm3, %v3680_v19  ;;  %v3683_v21 = vld [vmem:[#allocation7 + $0x40] sm:$0xff]  ;;  %v4104_v19 = vld [vmem:[%s12766_s6 + $0x50] sm:$0xff] }
 0x4f3   : > { %8826 = vmatprep.subr.bf16.mxu1 %v11355_v60  ;;  %v3688_v60 = vld [vmem:[#allocation7 + $0x68] sm:$0xff] }
 0x4f5   : > { %3813 = vmatmul.mubr.f32.gmra.mrb[196].mxu1 %v3679_v57  ;;  %v4105_v57 = vld [vmem:[%s12766_s6 + $0x58] sm:$0xff] }
 0x4f6   : > { %8828 = vmatpush1.bf16.msra.mxu1 %v11353_v41  ;;  %7751 = vmatprep.mubr.msk.f32.mxu1 %vm3699_vm3, %v3682_v20  ;;  %v3685_v41 = vld [vmem:[#allocation7 + $0x50] sm:$0xff]  ;;  %v8881_v20 = vpack.c.bf16 %v4105_v57, %v4104_v19 }
 0x4f7   : > { %8830 = vmatprep.subr.bf16.mxu1 %v11365_v14  ;;  %v3690_v14 = vld [vmem:[#allocation7 + $0x78] sm:$0xff] }
 0x4f9   : > { %3819 = vmatmul.mubr.f32.gmra.mrb[198].mxu1 %v3681_v42  ;;  %v4106_v42 = vld [vmem:[%s12766_s6 + $0x60] sm:$0xff] }
 0x4fa   : > { %8832 = vmatpush1.bf16.msra.mxu1 %v11363_v12  ;;  %7752 = vmatprep.mubr.msk.f32.mxu1 %vm3699_vm3, %v3684_v15  ;;  %v3687_v12 = vld [vmem:[#allocation7 + $0x60] sm:$0xff]  ;;  %v4107_v15 = vld [vmem:[%s12766_s6 + $0x68] sm:$0xff] }
 0x4fb   : > { %8834 = vmatprep.subr.bf16.mxu1 %v11375_v43  ;;  %v3692_v43 = vld [vmem:[#allocation7 + $0x88] sm:$0xff] }
 0x4fd   : > { %3825 = vmatmul.mubr.f32.gmra.mrb[200].mxu1 %v3683_v21  ;;  %v8884_v21 = vpack.c.bf16 %v4107_v15, %v4106_v42  ;;  %v4289_v42 = vld [vmem:[%s12767_s7 + $0x18] sm:$0xff] }
 0x4fe   : > { %8836 = vmatpush1.bf16.msra.mxu1 %v11373_v53  ;;  %7753 = vmatprep.mubr.msk.f32.mxu1 %vm3699_vm3, %v3686_v9  ;;  %v3689_v53 = vld [vmem:[#allocation7 + $0x70] sm:$0xff] }
 0x4ff   : > { %8838 = vmatprep.subr.bf16.mxu1 %v11385_v31  ;;  %v3694_v31 = vld [vmem:[#allocation7 + $0x98] sm:$0xff]  ;;  %v4108_v9 = vld [vmem:[%s12766_s6 + $0x70] sm:$0xff] }
 0x501   : > { %3831 = vmatmul.mubr.f32.gmra.mrb[202].mxu1 %v3685_v41  ;;  %v4109_v41 = vld [vmem:[%s12766_s6 + $0x78] sm:$0xff] }
 0x502   : > { %8840 = vmatpush1.bf16.msra.mxu1 %v11383_v59  ;;  %7754 = vmatprep.mubr.msk.f32.mxu1 %vm3699_vm3, %v3688_v60  ;;  %v3691_v59 = vld [vmem:[#allocation7 + $0x80] sm:$0xff]  ;;  %v8887_v60 = vpack.c.bf16 %v4109_v41, %v4108_v9 }
 0x503   : > { %8842 = vmatprep.subr.bf16.mxu1 %v11395_v32  ;;  %v3696_v32 = vld [vmem:[#allocation7 + $0xa8] sm:$0xff] }
 0x505   : > { %3837 = vmatmul.mubr.f32.gmra.mrb[204].mxu1 %v3687_v12  ;;  %v4110_v12 = vld [vmem:[%s12766_s6 + $0x80] sm:$0xff] }
 0x506   : > { %8844 = vmatpush1.bf16.msra.mxu1 %v11393_v63  ;;  %7755 = vmatprep.mubr.msk.f32.mxu1 %vm3699_vm3, %v3690_v14  ;;  %v3693_v63 = vld [vmem:[#allocation7 + $0x90] sm:$0xff]  ;;  %v4111_v14 = vld [vmem:[%s12766_s6 + $0x88] sm:$0xff] }
 0x507   : > { %8846 = vmatprep.subr.bf16.mxu1 %v11405_v24  ;;  %v3698_v24 = vld [vmem:[#allocation7 + $0xb8] sm:$0xff] }
 0x509   : > { %3843 = vmatmul.mubr.f32.gmra.mrb[206].mxu1 %v3689_v53  ;;  %v8890_v53 = vpack.c.bf16 %v4111_v14, %v4110_v12  ;;  %v4290_v12 = vld [vmem:[%s12767_s7 + $0x20] sm:$0xff]  ;;  %v4291_v14 = vld [vmem:[%s12767_s7 + $0x28] sm:$0xff] }
 0x50a   : > { %8848 = vmatpush1.bf16.msra.mxu1 %v11403_v39  ;;  %7756 = vmatprep.mubr.msk.f32.mxu1 %vm3699_vm3, %v3692_v43  ;;  %v3695_v39 = vld [vmem:[#allocation7 + $0xa0] sm:$0xff]  ;;  %v4112_v43 = vld [vmem:[%s12766_s6 + $0x90] sm:$0xff] }
 0x50b   : > { %8850 = vmatprep.subr.bf16.mxu1 %v11415_v55  ;;  %v3876_v55 = vld [vmem:[#allocation8 + $0x18] sm:$0xff] }
 0x50d   : > { %3849 = vmatmul.mubr.f32.gmra.mrb[208].mxu1 %v3691_v59  ;;  %v4113_v59 = vld [vmem:[%s12766_s6 + $0x98] sm:$0xff] }
 0x50e   : > { %8852 = vmatpush1.bf16.msra.mxu1 %v11413_v13  ;;  %7757 = vmatprep.mubr.msk.f32.mxu1 %vm3699_vm3, %v3694_v31  ;;  %v8866_v13 = vpack.c.bf16 %v4095_v8, %v4094_v3  ;;  %v8893_v31 = vpack.c.bf16 %v4113_v59, %v4112_v43  ;;  %v4118_v3 = vld [vmem:[%s12766_s6 + $0xc0] sm:$0xff]  ;;  %v4119_v8 = vld [vmem:[%s12766_s6 + $0xc8] sm:$0xff] }
 0x50f   : > { %8854 = vmatprep.subr.bf16.mxu1 %v11425_v54  ;;  %v3881_v54 = vld [vmem:[#allocation8 + $0x40] sm:$0xff] }
 0x511   : > { %3855 = vmatmul.mubr.f32.gmra.mrb[210].mxu1 %v3693_v63  ;;  %v4114_v63 = vld [vmem:[%s12766_s6 + $0xa0] sm:$0xff] }
 0x512   : > { %8856 = vmatpush1.bf16.msra.mxu1 %v11423_v45  ;;  %7758 = vmatprep.mubr.msk.f32.mxu1 %vm3699_vm3, %v3696_v32  ;;  %v3882_v45 = vld [vmem:[#allocation8 + $0x48] sm:$0xff] }
 0x513   : > { %8858 = vmatprep.subr.bf16.mxu1 %v11435_v11  ;;  %v3891_v11 = vld [vmem:[#allocation8 + $0x90] sm:$0xff]  ;;  %v4115_v32 = vld [vmem:[%s12766_s6 + $0xa8] sm:$0xff] }
 0x515   : > { %3861 = vmatmul.mubr.f32.gmra.mrb[212].mxu1 %v3695_v39  ;;  %v8896_v39 = vpack.c.bf16 %v4115_v32, %v4114_v63  ;;  %v8917_v63 = vpack.c.bf16 %v4291_v14, %v4290_v12  ;;  %v4292_v32 = vld [vmem:[%s12767_s7 + $0x30] sm:$0xff] }
 0x516   : > { %8860 = vmatpush1.bf16.msra.mxu1 %v11433_v28  ;;  %7759 = vmatprep.mubr.msk.f32.mxu1 %vm3699_vm3, %v3698_v24  ;;  %v3892_v28 = vld [vmem:[#allocation8 + $0x98] sm:$0xff]  ;;  %v4116_v24 = vld [vmem:[%s12766_s6 + $0xb0] sm:$0xff] }
 0x517   : > { %8862 = vmatprep.subr.bf16.mxu1 %v11445_v40  ;;  %v3895_v40 = vld [vmem:[#allocation8 + $0xb0] sm:$0xff] }
 0x519   : > { %3867 = vmatmul.mubr.f32.gmra.mrb[214].mxu1 %v3697_v47  ;;  %v4117_v47 = vld [vmem:[%s12766_s6 + $0xb8] sm:$0xff] }
 0x51a   : > { %8864 = vmatpush1.bf16.msra.mxu1 %v11443_v38  ;;  %7760 = vmatprep.mubr.msk.f32.mxu1 %vm3699_vm3, %v3874_v33  ;;  %v8875_v38 = vpack.c.bf16 %v4101_v16, %v4100_v52  ;;  %v8899_v33 = vpack.c.bf16 %v4117_v47, %v4116_v24 }
 0x51b   : > { %8865 = vmatprep.subr.bf16.mxu1 %v10107_v0 }
 0x51d   : > { %3998 = vmatmul.mubr.f32.vlgmr.msra.gmra.mrb[216].mxu1 %v3873_v50  ;;  %v8902_v50 = vpack.c.bf16 %v4119_v8, %v4118_v3 }
 0x51e   : > { %7761 = vmatprep.mubr.msk.f32.mxu1 %vm3699_vm3, %v3876_v55  ;;  %8867 = vmatpush1.bf16.msra.mxu1 %v8866_v13  ;;  %v4120_v13 = vld [vmem:[%s12766_s6 + $0xd0] sm:$0xff]  ;;  %v4121_v55 = vld [vmem:[%s12766_s6 + $0xd8] sm:$0xff] }
 0x51f   : > { %8868 = vmatprep.subr.bf16.mxu1 %v10107_v0  ;;  %v8905_v29 = vpack.c.bf16 %v4121_v55, %v4120_v13  ;;  %v4295_v13 = vld [vmem:[%s12767_s7 + $0x48] sm:$0xff] }
 0x521   : > { %4004 = vmatmul.mubr.f32.gmra.mrb[218].mxu1 %v3875_v34  ;;  %v4123_v34 = vld [vmem:[%s12766_s6 + $0xe8] sm:$0xff] }
 0x522   : > { %7762 = vmatprep.mubr.msk.f32.mxu1 %vm3699_vm3, %v3878_v51  ;;  %8870 = vmatpush1.bf16.msra.mxu1 %v8869_v27  ;;  %v8908_v27 = vpack.c.bf16 %v4123_v34, %v4122_v18 }
 0x523   : > { %8871 = vmatprep.subr.bf16.mxu1 %v10107_v0 }
 0x525   : > { %4010 = vmatmul.mubr.f32.gmra.mrb[220].mxu1 %v3877_v23 }
 0x526   : > { %7763 = vmatprep.mubr.msk.f32.mxu1 %vm3699_vm3, %v3880_v37  ;;  %8873 = vmatpush1.bf16.msra.mxu1 %v8872_v10 }
 0x527   : > { %8874 = vmatprep.subr.bf16.mxu1 %v10107_v0 }
 0x529   : > { %4016 = vmatmul.mubr.f32.gmra.mrb[222].mxu1 %v3879_v17 }
 0x52a   : > { %7764 = vmatprep.mubr.msk.f32.mxu1 %vm3699_vm3, %v3882_v45  ;;  %8876 = vmatpush1.bf16.msra.mxu1 %v8875_v38  ;;  %v4286_v38 = vld [vmem:[%s12767_s7] sm:$0xff] }
 0x52b   : > { %8877 = vmatprep.subr.bf16.mxu1 %v10107_v0 }
 0x52d   : > { %4022 = vmatmul.mubr.f32.gmra.mrb[224].mxu1 %v3881_v54 }
 0x52e   : > { %7765 = vmatprep.mubr.msk.f32.mxu1 %vm3699_vm3, %v3884_v1  ;;  %8879 = vmatpush1.bf16.msra.mxu1 %v8878_v46 }
 0x52f   : > { %8880 = vmatprep.subr.bf16.mxu1 %v10107_v0 }
 0x531   : > { %4028 = vmatmul.mubr.f32.gmra.mrb[226].mxu1 %v3883_v35 }
 0x532   : > { %7766 = vmatprep.mubr.msk.f32.mxu1 %vm3699_vm3, %v3886_v2  ;;  %8882 = vmatpush1.bf16.msra.mxu1 %v8881_v20  ;;  %v4288_v20 = vld [vmem:[%s12767_s7 + $0x10] sm:$0xff] }
 0x533   : > { %8883 = vmatprep.subr.bf16.mxu1 %v10107_v0 }
 0x535   : > { %4034 = vmatmul.mubr.f32.gmra.mrb[228].mxu1 %v3885_v62 }
 0x536   : > { %7767 = vmatprep.mubr.msk.f32.mxu1 %vm3699_vm3, %v3888_v4  ;;  %8885 = vmatpush1.bf16.msra.mxu1 %v8884_v21 }
 0x537   : > { %8886 = vmatprep.subr.bf16.mxu1 %v10107_v0 }
 0x539   : > { %4040 = vmatmul.mubr.f32.gmra.mrb[230].mxu1 %v3887_v22 }
 0x53a   : > { %7768 = vmatprep.mubr.msk.f32.mxu1 %vm3699_vm3, %v3890_v58  ;;  %8888 = vmatpush1.bf16.msra.mxu1 %v8887_v60  ;;  %v8914_v60 = vpack.c.bf16 %v4289_v42, %v4288_v20 }
 0x53b   : > { %8889 = vmatprep.subr.bf16.mxu1 %v10107_v0 }
 0x53d   : > { %4046 = vmatmul.mubr.f32.gmra.mrb[232].mxu1 %v3889_v5 }
 0x53e   : > { %7769 = vmatprep.mubr.msk.f32.mxu1 %vm3699_vm3, %v3892_v28  ;;  %8891 = vmatpush1.bf16.msra.mxu1 %v8890_v53 }
 0x53f   : > { %8892 = vmatprep.subr.bf16.mxu1 %v10107_v0 }
 0x541   : > { %4052 = vmatmul.mubr.f32.gmra.mrb[234].mxu1 %v3891_v11 }
 0x542   : > { %7770 = vmatprep.mubr.msk.f32.mxu1 %vm3699_vm3, %v3894_v30  ;;  %8894 = vmatpush1.bf16.msra.mxu1 %v8893_v31 }
 0x543   : > { %8895 = vmatprep.subr.bf16.mxu1 %v10107_v0 }
 0x545   : > { %4058 = vmatmul.mubr.f32.gmra.mrb[236].mxu1 %v3893_v49 }
 0x546   : > { %7771 = vmatprep.mubr.msk.f32.mxu1 %vm3699_vm3, %v3896_v56  ;;  %8897 = vmatpush1.bf16.msra.mxu1 %v8896_v39  ;;  %v4293_v39 = vld [vmem:[%s12767_s7 + $0x38] sm:$0xff] }
 0x547   : > { %8898 = vmatprep.subr.bf16.mxu1 %v10107_v0  ;;  %v8920_v8 = vpack.c.bf16 %v4293_v39, %v4292_v32 }
 0x549   : > { %4064 = vmatmul.mubr.f32.gmra.mrb[238].mxu1 %v3895_v40  ;;  %v4287_v40 = vld [vmem:[%s12767_s7 + $0x8] sm:$0xff] }
 0x54a   : > { %8900 = vmatpush1.bf16.msra.mxu1 %v8899_v33  ;;  %v8911_v57 = vpack.c.bf16 %v4287_v40, %v4286_v38 }
 0x54b   : > { %8901 = vmatprep.subr.bf16.mxu1 %v10107_v0 }
 0x54e   : > { %8903 = vmatpush1.bf16.msra.mxu1 %v8902_v50  ;;  %v4294_v50 = vld [vmem:[%s12767_s7 + $0x40] sm:$0xff] }
 0x54f   : > { %8904 = vmatprep.subr.bf16.mxu1 %v10107_v0 }
 0x552   : > { %8906 = vmatpush1.bf16.msra.mxu1 %v8905_v29 }
 0x553   : > { %8907 = vmatprep.subr.bf16.mxu1 %v10107_v0 }
 0x556   : > { %8909 = vmatpush1.bf16.msra.mxu1 %v8908_v27  ;;  %v8923_v27 = vpack.c.bf16 %v4295_v13, %v4294_v50 }
 0x557   : > { %8910 = vmatprep.subr.bf16.mxu1 %v10107_v0 }
 0x5c0   : > { %v3802_v51 = vpop.f32.mrb[192].mxu1 }
 0x5c1   : > { %v3804_v23 = vpop.f32.mrb[193].mxu1 }
 0x5c4   : > { %v3808_v37 = vpop.f32.mrb[194].mxu1 }
 0x5c5   : > { %v3810_v17 = vpop.f32.mrb[195].mxu1 }
 0x5c8   : > { %v3814_v45 = vpop.f32.mrb[196].mxu1 }
 0x5c9   : > { %v3816_v54 = vpop.f32.mrb[197].mxu1 }
 0x5cc   : > { %v3820_v1 = vpop.f32.mrb[198].mxu1 }
 0x5cd   : > { %v3822_v35 = vpop.f32.mrb[199].mxu1 }
 0x5d0   : > { %v3826_v2 = vpop.f32.mrb[200].mxu1 }
 0x5d1   : > { %v11602_v62 = vpop.f32.mrb[201].mxu1 }
 0x5d4   : > { %v11604_v4 = vpop.f32.mrb[202].mxu1 }
 0x5d5   : > { %v11606_v22 = vpop.f32.mrb[203].mxu1 }
 0x5d8   : > { %v11608_v58 = vpop.f32.mrb[204].mxu1 }
 0x5d9   : > { %v11610_v5 = vpop.f32.mrb[205].mxu1 }
 0x5dc   : > { %v11612_v28 = vpop.f32.mrb[206].mxu1 }
 0x5dd   : > { %v11614_v11 = vpop.f32.mrb[207].mxu1 }
 0x5e0   : > { %v11616_v44 = vpop.f32.mrb[208].mxu1 }
 0x5e1   : > { %v11618_v36 = vpop.f32.mrb[209].mxu1 }
 0x5e4   : > { %v11620_v30 = vpop.f32.mrb[210].mxu1 }
 0x5e5   : > { %v11622_v10 = vpop.f32.mrb[211].mxu1 }
 0x5e8   : > { %v11624_v49 = vpop.f32.mrb[212].mxu1 }
 0x5e9   : > { %v11626_v52 = vpop.f32.mrb[213].mxu1 }
 0x5ec   : > { %v11628_v16 = vpop.f32.mrb[214].mxu1 }
 0x5ed   : > { %v11630_v56 = vpop.f32.mrb[215].mxu1 }
 0x5f0   : > { %v3999_v7 = vpop.f32.mrb[216].mxu1 }
 0x5f1   : > { %v11638_v25 = vmax.f32 %v3802_v51, %v3999_v7  ;;  %v4001_v46 = vpop.f32.mrb[217].mxu1  ;;  %v4296_v51 = vld [vmem:[%s12767_s7 + $0x50] sm:$0xff] }
 0x5f2   : > { %v11640_v19 = vmax.f32 %v3804_v23, %v4001_v46  ;;  %v4297_v23 = vld [vmem:[%s12767_s7 + $0x58] sm:$0xff]  ;;  %v4300_v7 = vld [vmem:[%s12767_s7 + $0x70] sm:$0xff] }
 0x5f3   : > { %v4301_v46 = vld [vmem:[%s12767_s7 + $0x78] sm:$0xff] }
 0x5f4   : > { %v4005_v15 = vpop.f32.mrb[218].mxu1  ;;  %7772 = vmatprep.mubr.msk.f32.mxu1 %vm4124_vm4, %v11640_v19  ;;  %v8932_v42 = vpack.c.bf16 %v4301_v46, %v4300_v7 }
 0x5f5   : > { %v11650_v21 = vmax.f32 %v3808_v37, %v4005_v15  ;;  %v4007_v9 = vpop.f32.mrb[219].mxu1  ;;  %4226 = vmatmul.mubr.f32.vlgmr.msra.gmra.mrb[240].mxu1 %v11638_v25  ;;  %v4302_v15 = vld [vmem:[%s12767_s7 + $0x80] sm:$0xff] }
 0x5f6   : > { %v11653_v41 = vmax.f32 %v3810_v17, %v4007_v9  ;;  %8912 = vmatpush1.bf16.msra.mxu1 %v8911_v57  ;;  %v4303_v9 = vld [vmem:[%s12767_s7 + $0x88] sm:$0xff] }
 0x5f7   : > { %8913 = vmatprep.subr.bf16.mxu1 %v10107_v0  ;;  %v8935_v14 = vpack.c.bf16 %v4303_v9, %v4302_v15 }
 0x5f8   : > { %v4011_v53 = vpop.f32.mrb[220].mxu1  ;;  %7773 = vmatprep.mubr.msk.f32.mxu1 %vm4124_vm4, %v11653_v41 }
 0x5f9   : > { %v11664_v43 = vmax.f32 %v3814_v45, %v4011_v53  ;;  %v4013_v59 = vpop.f32.mrb[221].mxu1  ;;  %4231 = vmatmul.mubr.f32.gmra.mrb[242].mxu1 %v11650_v21  ;;  %v4304_v53 = vld [vmem:[%s12767_s7 + $0x90] sm:$0xff] }
 0x5fa   : > { %v11667_v31 = vmax.f32 %v3816_v54, %v4013_v59  ;;  %8915 = vmatpush1.bf16.msra.mxu1 %v8914_v60  ;;  %v4305_v59 = vld [vmem:[%s12767_s7 + $0x98] sm:$0xff] }
 0x5fb   : > { %8916 = vmatprep.subr.bf16.mxu1 %v10107_v0  ;;  %v8938_v39 = vpack.c.bf16 %v4305_v59, %v4304_v53 }
 0x5fc   : > { %v4017_v24 = vpop.f32.mrb[222].mxu1  ;;  %7774 = vmatprep.mubr.msk.f32.mxu1 %vm4124_vm4, %v11667_v31 }
 0x5fd   : > { %v11678_v47 = vmax.f32 %v3820_v1, %v4017_v24  ;;  %v4019_v33 = vpop.f32.mrb[223].mxu1  ;;  %4236 = vmatmul.mubr.f32.gmra.mrb[244].mxu1 %v11664_v43  ;;  %v8926_v1 = vpack.c.bf16 %v4297_v23, %v4296_v51  ;;  %v4306_v24 = vld [vmem:[%s12767_s7 + $0xa0] sm:$0xff] }
 0x5fe   : > { %v11681_v3 = vmax.f32 %v3822_v35, %v4019_v33  ;;  %8918 = vmatpush1.bf16.msra.mxu1 %v8917_v63  ;;  %v4298_v35 = vld [vmem:[%s12767_s7 + $0x60] sm:$0xff]  ;;  %v4307_v33 = vld [vmem:[%s12767_s7 + $0xa8] sm:$0xff] }
 0x5ff   : > { %8919 = vmatprep.subr.bf16.mxu1 %v10107_v0  ;;  %v8941_v13 = vpack.c.bf16 %v4307_v33, %v4306_v24 }
 0x600   : > { %v4023_v55 = vpop.f32.mrb[224].mxu1  ;;  %7775 = vmatprep.mubr.msk.f32.mxu1 %vm4124_vm4, %v11681_v3 }
 0x601   : > { %v11692_v29 = vmax.f32 %v3826_v2, %v4023_v55  ;;  %v4025_v18 = vpop.f32.mrb[225].mxu1  ;;  %4241 = vmatmul.mubr.f32.gmra.mrb[246].mxu1 %v11678_v47  ;;  %v4299_v2 = vld [vmem:[%s12767_s7 + $0x68] sm:$0xff]  ;;  %v4308_v55 = vld [vmem:[%s12767_s7 + $0xb0] sm:$0xff] }
 0x602   : > { %v11696_v34 = vmax.f32 %v11602_v62, %v4025_v18  ;;  %8921 = vmatpush1.bf16.msra.mxu1 %v8920_v8  ;;  %v8929_v40 = vpack.c.bf16 %v4299_v2, %v4298_v35  ;;  %v4309_v18 = vld [vmem:[%s12767_s7 + $0xb8] sm:$0xff]  ;;  %v4314_v2 = vld [vmem:[%s12767_s7 + $0xe0] sm:$0xff] }
 0x603   : > { %8922 = vmatprep.subr.bf16.mxu1 %v10107_v0  ;;  %v8944_v23 = vpack.c.bf16 %v4309_v18, %v4308_v55 }
 0x604   : > { %v4029_v37 = vpop.f32.mrb[226].mxu1  ;;  %7776 = vmatprep.mubr.msk.f32.mxu1 %vm4124_vm4, %v11696_v34 }
 0x605   : > { %v11708_v17 = vmax.f32 %v11604_v4, %v4029_v37  ;;  %v4031_v45 = vpop.f32.mrb[227].mxu1  ;;  %4246 = vmatmul.mubr.f32.gmra.mrb[248].mxu1 %v11692_v29  ;;  %v4310_v37 = vld [vmem:[%s12767_s7 + $0xc0] sm:$0xff] }
 0x606   : > { %v11712_v54 = vmax.f32 %v11606_v22, %v4031_v45  ;;  %8924 = vmatpush1.bf16.msra.mxu1 %v8923_v27  ;;  %v4311_v45 = vld [vmem:[%s12767_s7 + $0xc8] sm:$0xff] }
 0x607   : > { %8925 = vmatprep.subr.bf16.mxu1 %v10107_v0 }
 0x608   : > { %v4035_v62 = vpop.f32.mrb[228].mxu1  ;;  %7777 = vmatprep.mubr.msk.f32.mxu1 %vm4124_vm4, %v11712_v54 }
 0x609   : > { %v11724_v4 = vmax.f32 %v11608_v58, %v4035_v62  ;;  %v4037_v22 = vpop.f32.mrb[229].mxu1  ;;  %4251 = vmatmul.mubr.f32.gmra.mrb[250].mxu1 %v11708_v17 }
 0x60a   : > { %v11728_v38 = vmax.f32 %v11610_v5, %v4037_v22  ;;  %8927 = vmatpush1.bf16.msra.mxu1 %v8926_v1  ;;  %v4313_v1 = vld [vmem:[%s12767_s7 + $0xd8] sm:$0xff] }
 0x60b   : > { %8928 = vmatprep.subr.bf16.mxu1 %v10107_v0 }
 0x60c   : > { %v4041_v58 = vpop.f32.mrb[230].mxu1  ;;  %7778 = vmatprep.mubr.msk.f32.mxu1 %vm4124_vm4, %v11728_v38 }
 0x60d   : > { %v11740_v57 = vmax.f32 %v11612_v28, %v4041_v58  ;;  %v4043_v5 = vpop.f32.mrb[231].mxu1  ;;  %4256 = vmatmul.mubr.f32.gmra.mrb[252].mxu1 %v11724_v4 }
 0x60e   : > { %v11744_v20 = vmax.f32 %v11614_v11, %v4043_v5  ;;  %8930 = vmatpush1.bf16.msra.mxu1 %v8929_v40 }
 0x60f   : > { %8931 = vmatprep.subr.bf16.mxu1 %v10107_v0 }
 0x610   : > { %v4047_v28 = vpop.f32.mrb[232].mxu1  ;;  %7779 = vmatprep.mubr.msk.f32.mxu1 %vm4124_vm4, %v11744_v20 }
 0x611   : > { %v11756_v60 = vmax.f32 %v11616_v44, %v4047_v28  ;;  %v4049_v11 = vpop.f32.mrb[233].mxu1  ;;  %4261 = vmatmul.mubr.f32.gmra.mrb[254].mxu1 %v11740_v57 }
 0x612   : > { %v11760_v12 = vmax.f32 %v11618_v36, %v4049_v11  ;;  %8933 = vmatpush1.bf16.msra.mxu1 %v8932_v42 }
 0x613   : > { %8934 = vmatprep.subr.bf16.mxu1 %v10107_v0 }
 0x614   : > { %v4053_v44 = vpop.f32.mrb[234].mxu1  ;;  %7780 = vmatprep.mubr.msk.f32.mxu1 %vm4124_vm4, %v11760_v12 }
 0x615   : > { %v11772_v63 = vmax.f32 %v11620_v30, %v4053_v44  ;;  %v4055_v36 = vpop.f32.mrb[235].mxu1  ;;  %4266 = vmatmul.mubr.f32.gmra.mrb[0].mxu1 %v11756_v60 }
 0x616   : > { %v4089_v32 = vmax.f32 %v11622_v10, %v4055_v36  ;;  %8936 = vmatpush1.bf16.msra.mxu1 %v8935_v14 }
 0x617   : > { %8937 = vmatprep.subr.bf16.mxu1 %v10107_v0 }
 0x618   : > { %v4059_v8 = vpop.f32.mrb[236].mxu1  ;;  %7781 = vmatprep.mubr.msk.f32.mxu1 %vm4124_vm4, %v4089_v32 }
 0x619   : > { %v4090_v30 = vmax.f32 %v11624_v49, %v4059_v8  ;;  %v4061_v50 = vpop.f32.mrb[237].mxu1  ;;  %4271 = vmatmul.mubr.f32.gmra.mrb[2].mxu1 %v11772_v63 }
 0x61a   : > { %v4091_v10 = vmax.f32 %v11626_v52, %v4061_v50  ;;  %8939 = vmatpush1.bf16.msra.mxu1 %v8938_v39 }
 0x61b   : > { %8940 = vmatprep.subr.bf16.mxu1 %v10107_v0 }
 0x61c   : > { %v4065_v27 = vpop.f32.mrb[238].mxu1  ;;  %7782 = vmatprep.mubr.msk.f32.mxu1 %vm4124_vm4, %v4091_v10 }
 0x61d   : > { %v4092_v49 = vmax.f32 %v11628_v16, %v4065_v27  ;;  %v4067_v51 = vpop.f32.mrb[239].mxu1  ;;  %4276 = vmatmul.mubr.f32.gmra.mrb[4].mxu1 %v4090_v30  ;;  %v8947_v16 = vpack.c.bf16 %v4311_v45, %v4310_v37 }
 0x61e   : > { %v4093_v52 = vmax.f32 %v11630_v56, %v4067_v51  ;;  %8942 = vmatpush1.bf16.msra.mxu1 %v8941_v13  ;;  %v4312_v56 = vld [vmem:[%s12767_s7 + $0xd0] sm:$0xff] }
 0x61f   : > { %8943 = vmatprep.subr.bf16.mxu1 %v10107_v0  ;;  %v8950_v35 = vpack.c.bf16 %v4313_v1, %v4312_v56 }
 0x620   : > { %7783 = vmatprep.mubr.msk.f32.mxu1 %vm4124_vm4, %v4093_v52 }
 0x621   : > { %4281 = vmatmul.mubr.f32.gmra.mrb[6].mxu1 %v4092_v49 }
 0x622   : > { %8945 = vmatpush1.bf16.msra.mxu1 %v8944_v23  ;;  %7784 = vmatprep.mubr.msk.f32.mxu1 %vm4124_vm4, %v11640_v19  ;;  %v4315_v19 = vld [vmem:[%s12767_s7 + $0xe8] sm:$0xff] }
 0x623   : > { %8946 = vmatprep.subr.bf16.mxu1 %v10107_v0  ;;  %v8953_v62 = vpack.c.bf16 %v4315_v19, %v4314_v2 }
 0x626   : > { %8948 = vmatpush1.bf16.msra.mxu1 %v8947_v16 }
 0x627   : > { %8949 = vmatprep.subr.bf16.mxu1 %v10107_v0 }
 0x62a   : > { %8951 = vmatpush1.bf16.msra.mxu1 %v8950_v35 }
 0x62b   : > { %8952 = vmatprep.subr.bf16.mxu1 %v10107_v0 }
 0x62e   : > { %8954 = vmatpush1.bf16.msra.mxu1 %v8953_v62 }
 0x631   : > { %4381 = vmatmul.mubr.f32.vlgmr.msra.gmra.mrb[8].mxu1 %v11638_v25  ;;  %v4465_v25 = vld [vmem:[%s12768_s8] sm:$0xff] }
 0x632   : > { %7785 = vmatprep.mubr.msk.f32.mxu1 %vm4124_vm4, %v11653_v41  ;;  %8291 = vmatprep.mubr.msk.f32.mxu0 %vm838_vm0, %v4465_v25 }
 0x635   : > { %4386 = vmatmul.mubr.f32.gmra.mrb[10].mxu1 %v11650_v21 }
 0x636   : > { %7786 = vmatprep.mubr.msk.f32.mxu1 %vm4124_vm4, %v11667_v31 }
 0x639   : > { %4391 = vmatmul.mubr.f32.gmra.mrb[12].mxu1 %v11664_v43 }
 0x63a   : > { %7787 = vmatprep.mubr.msk.f32.mxu1 %vm4124_vm4, %v11681_v3 }
 0x63d   : > { %4396 = vmatmul.mubr.f32.gmra.mrb[14].mxu1 %v11678_v47 }
 0x63e   : > { %7788 = vmatprep.mubr.msk.f32.mxu1 %vm4124_vm4, %v11696_v34 }
 0x641   : > { %4401 = vmatmul.mubr.f32.gmra.mrb[16].mxu1 %v11692_v29 }
 0x642   : > { %7789 = vmatprep.mubr.msk.f32.mxu1 %vm4124_vm4, %v11712_v54 }
 0x645   : > { %4406 = vmatmul.mubr.f32.gmra.mrb[18].mxu1 %v11708_v17 }
 0x646   : > { %7790 = vmatprep.mubr.msk.f32.mxu1 %vm4124_vm4, %v11728_v38 }
 0x649   : > { %4411 = vmatmul.mubr.f32.gmra.mrb[20].mxu1 %v11724_v4 }
 0x64a   : > { %7791 = vmatprep.mubr.msk.f32.mxu1 %vm4124_vm4, %v11744_v20 }
 0x64d   : > { %4416 = vmatmul.mubr.f32.gmra.mrb[22].mxu1 %v11740_v57 }
 0x64e   : > { %7792 = vmatprep.mubr.msk.f32.mxu1 %vm4124_vm4, %v11760_v12 }
 0x651   : > { %4421 = vmatmul.mubr.f32.gmra.mrb[24].mxu1 %v11756_v60 }
 0x652   : > { %7793 = vmatprep.mubr.msk.f32.mxu1 %vm4124_vm4, %v4089_v32 }
 0x655   : > { %4426 = vmatmul.mubr.f32.gmra.mrb[26].mxu1 %v11772_v63 }
 0x656   : > { %7794 = vmatprep.mubr.msk.f32.mxu1 %vm4124_vm4, %v4091_v10 }
 0x659   : > { %4431 = vmatmul.mubr.f32.gmra.mrb[28].mxu1 %v4090_v30 }
 0x65a   : > { %7795 = vmatprep.mubr.msk.f32.mxu1 %vm4124_vm4, %v4093_v52 }
 0x65d   : > { %4436 = vmatmul.mubr.f32.gmra.mrb[30].mxu1 %v4092_v49 }
 0x65e   : > { %4906 = vmatprep.mubr.bf16.mxu1 %v10108_v48 }
 0x6c8   : > { %v4227_v21 = vpop.f32.mrb[240].mxu1 }
 0x6c9   : > { %v4229_v41 = vpop.f32.mrb[241].mxu1 }
 0x6cc   : > { %v4232_v43 = vpop.f32.mrb[242].mxu1 }
 0x6cd   : > { %v4234_v31 = vpop.f32.mrb[243].mxu1 }
 0x6d0   : > { %v4237_v47 = vpop.f32.mrb[244].mxu1 }
 0x6d1   : > { %v4239_v3 = vpop.f32.mrb[245].mxu1 }
 0x6d2   : > { %v9617_v3 = vld [vmem:[%s12769_s9 + $0x7c] ss:$8 sps:$4 sm:$0xff]  }
 0x6d3   : > { %4874 = vmatprep.subr.bf16.mxu1 %v9617_v3  ;;  %v9633_v3 = vld [vmem:[%s12769_s9 + $0xd8] ss:$8 sps:$4 sm:$0xff]  }
 0x6d4   : > { %v4242_v29 = vpop.f32.mrb[246].mxu1 }
 0x6d5   : > { %v4244_v34 = vpop.f32.mrb[247].mxu1 }
 0x6d6   : > { %v9620_v34 = vld [vmem:[%s12769_s9 + $0x8c] ss:$8 sps:$4 sm:$0xff]  }
 0x6d8   : > { %v4247_v17 = vpop.f32.mrb[248].mxu1 }
 0x6d9   : > { %v4249_v54 = vpop.f32.mrb[249].mxu1 }
 0x6dc   : > { %v4252_v4 = vpop.f32.mrb[250].mxu1 }
 0x6dd   : > { %v4254_v22 = vpop.f32.mrb[251].mxu1 }
 0x6e0   : > { %v4257_v38 = vpop.f32.mrb[252].mxu1 }
 0x6e1   : > { %v4259_v40 = vpop.f32.mrb[253].mxu1 }
 0x6e2   : > { %v9623_v40 = vld [vmem:[%s12769_s9 + $0x9c] ss:$8 sps:$4 sm:$0xff]  }
 0x6e4   : > { %v4262_v7 = vpop.f32.mrb[254].mxu1 }
 0x6e5   : > { %v4264_v46 = vpop.f32.mrb[255].mxu1 }
 0x6e8   : > { %v11856_v58 = vpop.f32.mrb[0].mxu1 }
 0x6e9   : > { %v4269_v57 = vpop.f32.mrb[1].mxu1 }
 0x6ec   : > { %v11858_v5 = vpop.f32.mrb[2].mxu1 }
 0x6ed   : > { %v4274_v20 = vpop.f32.mrb[3].mxu1 }
 0x6ee   : > { %v9626_v20 = vld [vmem:[%s12769_s9 + $0xac] ss:$8 sps:$4 sm:$0xff]  }
 0x6f0   : > { %v11860_v42 = vpop.f32.mrb[4].mxu1 }
 0x6f1   : > { %v4279_v15 = vpop.f32.mrb[5].mxu1 }
 0x6f4   : > { %v11862_v9 = vpop.f32.mrb[6].mxu1 }
 0x6f5   : > { %v4284_v28 = vpop.f32.mrb[7].mxu1 }
 0x704   : > { %v4382_v60 = vpop.f32.mrb[8].mxu1 }
 0x705   : > { %v4441_v11 = vmax.f32 %v4227_v21, %v4382_v60  ;;  %v4384_v12 = vpop.f32.mrb[9].mxu1 }
 0x707   : > { %v4453_v44 = vmax.f32 %v4441_v11, 0.0 }
 0x708   : > { %v4387_v14 = vpop.f32.mrb[10].mxu1 }
 0x709   : > { %v4442_v53 = vmax.f32 %v4232_v43, %v4387_v14  ;;  %v4389_v59 = vpop.f32.mrb[11].mxu1  ;;  %v9629_v14 = vld [vmem:[%s12769_s9 + $0xbc] ss:$8 sps:$4 sm:$0xff]  }
 0x70a   : > { %v4466_v59 = vld [vmem:[%s12768_s8 + $0x8] sm:$0xff] }
 0x70b   : > { %v4454_v63 = vmax.f32 %v4442_v53, 0.0 }
 0x70c   : > { %v4392_v36 = vpop.f32.mrb[12].mxu1 }
 0x70d   : > { %v11864_v32 = vpack.c.bf16 %v4454_v63, %v4453_v44  ;;  %v4443_v39 = vmax.f32 %v4237_v47, %v4392_v36  ;;  %v4394_v24 = vpop.f32.mrb[13].mxu1  ;;  %v9615_v47 = vld [vmem:[%s12769_s9 + $0x78] ss:$8 sps:$4 sm:$0xff]   ;;  %v4467_v44 = vld [vmem:[%s12768_s8 + $0x10] sm:$0xff] }
 0x70e   : > { %4875 = vmatpush1.bf16.msra.mxu1 %v9615_v47  ;;  %v4468_v63 = vld [vmem:[%s12768_s8 + $0x18] sm:$0xff]  ;;  %v4469_v36 = vld [vmem:[%s12768_s8 + $0x20] sm:$0xff]  ;;  %v4471_v24 = vld [vmem:[%s12768_s8 + $0x30] sm:$0xff] }
 0x70f   : > { %8956 = vmatprep.subr.bf16.mxu0 %v11864_v32  ;;  %v4455_v50 = vmax.f32 %v4443_v39, 0.0  ;;  %4876 = vmatprep.subr.bf16.mxu1 %v9620_v34  ;;  %v4470_v39 = vld [vmem:[%s12768_s8 + $0x28] sm:$0xff]  ;;  %v7983_v34 = vld [vmem:[%s12768_s8 + $0x110] sm:$0xff] }
 0x710   : > { %v4397_v33 = vpop.f32.mrb[14].mxu1  ;;  %8958 = vmatpush3.bf16.msra.mxu0 %v11864_v32  ;;  %v9630_v47 = vld [vmem:[%s12769_s9 + $0xc8] ss:$8 sps:$4 sm:$0xff]  }
 0x711   : > { %v4444_v8 = vmax.f32 %v4242_v29, %v4397_v33  ;;  %v4399_v30 = vpop.f32.mrb[15].mxu1  ;;  %v4472_v33 = vld [vmem:[%s12768_s8 + $0x38] sm:$0xff] }
 0x712   : > { %v7805_v30 = vld [vmem:[%s12768_s8 + $0x48] sm:$0xff] }
 0x713   : > { %v4456_v10 = vmax.f32 %v4444_v8, 0.0  ;;  %v7804_v8 = vld [vmem:[%s12768_s8 + $0x40] sm:$0xff] }
 0x714   : > { %v4402_v13 = vpop.f32.mrb[16].mxu1 }
 0x715   : > { %v11868_v55 = vpack.c.bf16 %v4456_v10, %v4455_v50  ;;  %v4445_v18 = vmax.f32 %v4247_v17, %v4402_v13  ;;  %v4404_v27 = vpop.f32.mrb[17].mxu1  ;;  %v7806_v50 = vld [vmem:[%s12768_s8 + $0x50] sm:$0xff]  ;;  %v7807_v10 = vld [vmem:[%s12768_s8 + $0x58] sm:$0xff]  ;;  %v7808_v13 = vld [vmem:[%s12768_s8 + $0x60] sm:$0xff] }
 0x716   : > { %v7810_v27 = vld [vmem:[%s12768_s8 + $0x70] sm:$0xff] }
 0x717   : > { %8960 = vmatprep.subr.bf16.mxu0 %v11868_v55  ;;  %v4457_v23 = vmax.f32 %v4445_v18, 0.0  ;;  %v7809_v18 = vld [vmem:[%s12768_s8 + $0x68] sm:$0xff] }
 0x718   : > { %v4407_v49 = vpop.f32.mrb[18].mxu1  ;;  %8962 = vmatpush3.bf16.msra.mxu0 %v11868_v55 }
 0x719   : > { %v4446_v51 = vmax.f32 %v4252_v4, %v4407_v49  ;;  %v4409_v52 = vpop.f32.mrb[19].mxu1  ;;  %v9618_v4 = vld [vmem:[%s12769_s9 + $0x88] ss:$8 sps:$4 sm:$0xff]   ;;  %v7811_v49 = vld [vmem:[%s12768_s8 + $0x78] sm:$0xff] }
 0x71a   : > { %4877 = vmatpush1.bf16.msra.mxu1 %v9618_v4  ;;  %v7878_v52 = vld [vmem:[%s12768_s8 + $0x88] sm:$0xff] }
 0x71b   : > { %v4458_v37 = vmax.f32 %v4446_v51, 0.0  ;;  %4878 = vmatprep.subr.bf16.mxu1 %v9623_v40  ;;  %v7877_v51 = vld [vmem:[%s12768_s8 + $0x80] sm:$0xff]  ;;  %v7986_v4 = vld [vmem:[%s12768_s8 + $0x128] sm:$0xff]  ;;  %v7988_v40 = vld [vmem:[%s12768_s8 + $0x138] sm:$0xff] }
 0x71c   : > { %v4412_v45 = vpop.f32.mrb[20].mxu1 }
 0x71d   : > { %v11872_v16 = vpack.c.bf16 %v4458_v37, %v4457_v23  ;;  %v4447_v56 = vmax.f32 %v4257_v38, %v4412_v45  ;;  %v4414_v1 = vpop.f32.mrb[21].mxu1  ;;  %v7879_v23 = vld [vmem:[%s12768_s8 + $0x90] sm:$0xff]  ;;  %v7880_v37 = vld [vmem:[%s12768_s8 + $0x98] sm:$0xff]  ;;  %v7881_v45 = vld [vmem:[%s12768_s8 + $0xa0] sm:$0xff] }
 0x71e   : > { %v7883_v1 = vld [vmem:[%s12768_s8 + $0xb0] sm:$0xff] }
 0x71f   : > { %8964 = vmatprep.subr.bf16.mxu0 %v11872_v16  ;;  %v4459_v62 = vmax.f32 %v4447_v56, 0.0  ;;  %v7882_v56 = vld [vmem:[%s12768_s8 + $0xa8] sm:$0xff] }
 0x720   : > { %v4417_v35 = vpop.f32.mrb[22].mxu1  ;;  %8966 = vmatpush3.bf16.msra.mxu0 %v11872_v16 }
 0x721   : > { %v4448_v2 = vmax.f32 %v4262_v7, %v4417_v35  ;;  %v4419_v19 = vpop.f32.mrb[23].mxu1  ;;  %v7884_v35 = vld [vmem:[%s12768_s8 + $0xb8] sm:$0xff] }
 0x722   : > { %v7930_v19 = vld [vmem:[%s12768_s8 + $0xc8] sm:$0xff] }
 0x723   : > { %v4460_v25 = vmax.f32 %v4448_v2, 0.0  ;;  %v7929_v2 = vld [vmem:[%s12768_s8 + $0xc0] sm:$0xff] }
 0x724   : > { %v4422_v21 = vpop.f32.mrb[24].mxu1 }
 0x725   : > { %v11876_v41 = vpack.c.bf16 %v4460_v25, %v4459_v62  ;;  %v4449_v43 = vmax.f32 %v11856_v58, %v4422_v21  ;;  %v4424_v31 = vpop.f32.mrb[25].mxu1  ;;  %v7931_v62 = vld [vmem:[%s12768_s8 + $0xd0] sm:$0xff]  ;;  %v7932_v25 = vld [vmem:[%s12768_s8 + $0xd8] sm:$0xff]  ;;  %v7933_v21 = vld [vmem:[%s12768_s8 + $0xe0] sm:$0xff] }
 0x726   : > { %v7981_v31 = vld [vmem:[%s12768_s8 + $0x100] sm:$0xff] }
 0x727   : > { %8968 = vmatprep.subr.bf16.mxu0 %v11876_v41  ;;  %v4461_v22 = vmax.f32 %v4449_v43, 0.0  ;;  %v7935_v43 = vld [vmem:[%s12768_s8 + $0xf0] sm:$0xff] }
 0x728   : > { %v4427_v29 = vpop.f32.mrb[26].mxu1  ;;  %8970 = vmatpush3.bf16.msra.mxu0 %v11876_v41 }
 0x729   : > { %v4450_v17 = vmax.f32 %v11858_v5, %v4427_v29  ;;  %v4429_v54 = vpop.f32.mrb[27].mxu1  ;;  %v9621_v5 = vld [vmem:[%s12769_s9 + $0x98] ss:$8 sps:$4 sm:$0xff]   ;;  %v9635_v29 = vld [vmem:[%s12769_s9 + $0xdc] ss:$8 sps:$4 sm:$0xff]  }
 0x72a   : > { %4879 = vmatpush1.bf16.msra.mxu1 %v9621_v5  ;;  %v7985_v54 = vld [vmem:[%s12768_s8 + $0x120] sm:$0xff] }
 0x72b   : > { %v4462_v38 = vmax.f32 %v4450_v17, 0.0  ;;  %4880 = vmatprep.subr.bf16.mxu1 %v9626_v20  ;;  %v7984_v17 = vld [vmem:[%s12768_s8 + $0x118] sm:$0xff] }
 0x72c   : > { %v4432_v7 = vpop.f32.mrb[28].mxu1 }
 0x72d   : > { %v11897_v46 = vpack.c.bf16 %v4462_v38, %v4461_v22  ;;  %v4451_v58 = vmax.f32 %v11860_v42, %v4432_v7  ;;  %v4434_v57 = vpop.f32.mrb[29].mxu1  ;;  %v9624_v42 = vld [vmem:[%s12769_s9 + $0xa8] ss:$8 sps:$4 sm:$0xff]  }
 0x72e   : > { %4881 = vmatpush1.bf16.msra.mxu1 %v9624_v42  ;;  %v7987_v22 = vld [vmem:[%s12768_s8 + $0x130] sm:$0xff]  ;;  %v7834_v38 = vld [vmem:[%s12769_s9 + $0xe8] sm:$0xff] }
 0x72f   : > { %8972 = vmatprep.subr.bf16.mxu0 %v11897_v46  ;;  %v4463_v11 = vmax.f32 %v4451_v58, 0.0  ;;  %4882 = vmatprep.subr.bf16.mxu1 %v9629_v14  ;;  %v7850_v7 = vcombine.high %v7834_v38, %v7834_v38  ;;  %v9640_v57 = vld [vmem:[%s12769_s9 + $0x4] ss:$8 sps:$4 sm:$0xff]  }
 0x730   : > { %v4437_v15 = vpop.f32.mrb[30].mxu1  ;;  %8974 = vmatpush3.bf16.msra.mxu0 %v11897_v46 }
 0x731   : > { %v4452_v28 = vmax.f32 %v11862_v9, %v4437_v15  ;;  %v4439_v60 = vpop.f32.mrb[31].mxu1  ;;  %v9627_v9 = vld [vmem:[%s12769_s9 + $0xb8] ss:$8 sps:$4 sm:$0xff]  }
 0x732   : > { %4883 = vmatpush1.bf16.msra.mxu1 %v9627_v9 }
 0x733   : > { %v4464_v12 = vmax.f32 %v4452_v28, 0.0 }
 0x735   : > { %v11915_v53 = vpack.c.bf16 %v4464_v12, %v4463_v11 }
 0x737   : > { %8976 = vmatprep.subr.bf16.mxu0 %v11915_v53 }
 0x738   : > { %8978 = vmatpush3.bf16.msra.mxu0 %v11915_v53 }
 0x739   : > { %8980 = vmatprep.subr.bf16.mxu0 %v11864_v32 }
 0x73b   : > { %8292 = vmatmul.mubr.msk.f32.vlgmr.msra.gmra.mrb[96].mxu0 %vm838_vm0, %v4466_v59 }
 0x73c   : > { %8982 = vmatpush3.bf16.msra.mxu0 %v11864_v32  ;;  %8294 = vmatprep.mubr.msk.f32.mxu0 %vm838_vm0, %v4467_v44 }
 0x73d   : > { %8984 = vmatprep.subr.bf16.mxu0 %v11868_v55 }
 0x73f   : > { %8295 = vmatmul.mubr.msk.f32.gmra.mrb[98].mxu0 %vm838_vm0, %v4468_v63 }
 0x740   : > { %8986 = vmatpush3.bf16.msra.mxu0 %v11868_v55  ;;  %8297 = vmatprep.mubr.msk.f32.mxu0 %vm838_vm0, %v4469_v36  ;;  %v9638_v36 = vld [vmem:[%s12769_s9] ss:$8 sps:$4 sm:$0xff]  }
 0x741   : > { %8988 = vmatprep.subr.bf16.mxu0 %v11872_v16 }
 0x743   : > { %8298 = vmatmul.mubr.msk.f32.gmra.mrb[100].mxu0 %vm838_vm0, %v4470_v39 }
 0x744   : > { %8990 = vmatpush3.bf16.msra.mxu0 %v11872_v16  ;;  %8300 = vmatprep.mubr.msk.f32.mxu0 %vm838_vm0, %v4471_v24  ;;  %v9643_v24 = vld [vmem:[%s12769_s9 + $0x14] ss:$8 sps:$4 sm:$0xff]  }
 0x745   : > { %8992 = vmatprep.subr.bf16.mxu0 %v11876_v41 }
 0x747   : > { %8301 = vmatmul.mubr.msk.f32.gmra.mrb[102].mxu0 %vm838_vm0, %v4472_v33 }
 0x748   : > { %8994 = vmatpush3.bf16.msra.mxu0 %v11876_v41  ;;  %8327 = vmatprep.mubr.msk.f32.mxu0 %vm838_vm0, %v7804_v8  ;;  %v9641_v8 = vld [vmem:[%s12769_s9 + $0x10] ss:$8 sps:$4 sm:$0xff]  }
 0x749   : > { %8996 = vmatprep.subr.bf16.mxu0 %v11897_v46 }
 0x74c   : > { %8998 = vmatpush3.bf16.msra.mxu0 %v11897_v46 }
 0x74d   : > { %9000 = vmatprep.subr.bf16.mxu0 %v11915_v53 }
 0x750   : > { %9002 = vmatpush3.bf16.msra.mxu0 %v11915_v53 }
 0x751   : > { %9004 = vmatprep.subr.bf16.mxu0 %v11864_v32 }
 0x753   : > { %8328 = vmatmul.mubr.msk.f32.vlgmr.msra.gmra.mrb[104].mxu0 %vm838_vm0, %v7805_v30 }
 0x754   : > { %9006 = vmatpush3.bf16.msra.mxu0 %v11864_v32  ;;  %8330 = vmatprep.mubr.msk.f32.mxu0 %vm838_vm0, %v7806_v50 }
 0x755   : > { %9008 = vmatprep.subr.bf16.mxu0 %v11868_v55 }
 0x757   : > { %8331 = vmatmul.mubr.msk.f32.gmra.mrb[106].mxu0 %vm838_vm0, %v7807_v10  ;;  %v9646_v10 = vld [vmem:[%s12769_s9 + $0x24] ss:$8 sps:$4 sm:$0xff]  }
 0x758   : > { %9010 = vmatpush3.bf16.msra.mxu0 %v11868_v55  ;;  %8333 = vmatprep.mubr.msk.f32.mxu0 %vm838_vm0, %v7808_v13 }
 0x759   : > { %9012 = vmatprep.subr.bf16.mxu0 %v11872_v16 }
 0x75b   : > { %8334 = vmatmul.mubr.msk.f32.gmra.mrb[108].mxu0 %vm838_vm0, %v7809_v18  ;;  %v9644_v18 = vld [vmem:[%s12769_s9 + $0x20] ss:$8 sps:$4 sm:$0xff]  }
 0x75c   : > { %9014 = vmatpush3.bf16.msra.mxu0 %v11872_v16  ;;  %8336 = vmatprep.mubr.msk.f32.mxu0 %vm838_vm0, %v7810_v27 }
 0x75d   : > { %9016 = vmatprep.subr.bf16.mxu0 %v11876_v41 }
 0x75f   : > { %8337 = vmatmul.mubr.msk.f32.gmra.mrb[110].mxu0 %vm838_vm0, %v7811_v49  ;;  %v9649_v49 = vld [vmem:[%s12769_s9 + $0x34] ss:$8 sps:$4 sm:$0xff]  }
 0x760   : > { %9018 = vmatpush3.bf16.msra.mxu0 %v11876_v41  ;;  %8363 = vmatprep.mubr.msk.f32.mxu0 %vm838_vm0, %v7877_v51 }
 0x761   : > { %9020 = vmatprep.subr.bf16.mxu0 %v11897_v46 }
 0x764   : > { %9022 = vmatpush3.bf16.msra.mxu0 %v11897_v46 }
 0x765   : > { %9024 = vmatprep.subr.bf16.mxu0 %v11915_v53 }
 0x768   : > { %9026 = vmatpush3.bf16.msra.mxu0 %v11915_v53 }
 0x769   : > { %9028 = vmatprep.subr.bf16.mxu0 %v11864_v32 }
 0x76b   : > { %8364 = vmatmul.mubr.msk.f32.vlgmr.msra.gmra.mrb[112].mxu0 %vm838_vm0, %v7878_v52 }
 0x76c   : > { %9030 = vmatpush3.bf16.msra.mxu0 %v11864_v32  ;;  %8366 = vmatprep.mubr.msk.f32.mxu0 %vm838_vm0, %v7879_v23  ;;  %v9647_v23 = vld [vmem:[%s12769_s9 + $0x30] ss:$8 sps:$4 sm:$0xff]  }
 0x76d   : > { %9032 = vmatprep.subr.bf16.mxu0 %v11868_v55 }
 0x76f   : > { %8367 = vmatmul.mubr.msk.f32.gmra.mrb[114].mxu0 %vm838_vm0, %v7880_v37 }
 0x770   : > { %9034 = vmatpush3.bf16.msra.mxu0 %v11868_v55  ;;  %8369 = vmatprep.mubr.msk.f32.mxu0 %vm838_vm0, %v7881_v45  ;;  %v9652_v45 = vld [vmem:[%s12769_s9 + $0x44] ss:$8 sps:$4 sm:$0xff]  }
 0x771   : > { %9036 = vmatprep.subr.bf16.mxu0 %v11872_v16 }
 0x773   : > { %8370 = vmatmul.mubr.msk.f32.gmra.mrb[116].mxu0 %vm838_vm0, %v7882_v56 }
 0x774   : > { %9038 = vmatpush3.bf16.msra.mxu0 %v11872_v16  ;;  %8372 = vmatprep.mubr.msk.f32.mxu0 %vm838_vm0, %v7883_v1  ;;  %v9650_v1 = vld [vmem:[%s12769_s9 + $0x40] ss:$8 sps:$4 sm:$0xff]  }
 0x775   : > { %9040 = vmatprep.subr.bf16.mxu0 %v11876_v41 }
 0x777   : > { %8373 = vmatmul.mubr.msk.f32.gmra.mrb[118].mxu0 %vm838_vm0, %v7884_v35  ;;  %v9655_v35 = vld [vmem:[%s12769_s9 + $0x54] ss:$8 sps:$4 sm:$0xff]  }
 0x778   : > { %9042 = vmatpush3.bf16.msra.mxu0 %v11876_v41  ;;  %8399 = vmatprep.mubr.msk.f32.mxu0 %vm838_vm0, %v7929_v2  ;;  %v9653_v2 = vld [vmem:[%s12769_s9 + $0x50] ss:$8 sps:$4 sm:$0xff]  }
 0x779   : > { %9044 = vmatprep.subr.bf16.mxu0 %v11897_v46 }
 0x77c   : > { %9046 = vmatpush3.bf16.msra.mxu0 %v11897_v46 }
 0x77d   : > { %9048 = vmatprep.subr.bf16.mxu0 %v11915_v53 }
 0x780   : > { %9050 = vmatpush3.bf16.msra.mxu0 %v11915_v53 }
 0x781   : > { %9052 = vmatprep.subr.bf16.mxu0 %v11864_v32 }
 0x783   : > { %8400 = vmatmul.mubr.msk.f32.vlgmr.msra.gmra.mrb[120].mxu0 %vm838_vm0, %v7930_v19  ;;  %v9658_v19 = vld [vmem:[%s12769_s9 + $0x64] ss:$8 sps:$4 sm:$0xff]  }
 0x784   : > { %9054 = vmatpush3.bf16.msra.mxu0 %v11864_v32  ;;  %8402 = vmatprep.mubr.msk.f32.mxu0 %vm838_vm0, %v7931_v62  ;;  %v7934_v32 = vld [vmem:[%s12768_s8 + $0xe8] sm:$0xff]  ;;  %v4620_v62 = vld [vmem:[%s12769_s9 + $0x70] sm:$0xff] }
 0x785   : > { %9056 = vmatprep.subr.bf16.mxu0 %v11868_v55 }
 0x787   : > { %8403 = vmatmul.mubr.msk.f32.gmra.mrb[122].mxu0 %vm838_vm0, %v7932_v25 }
 0x788   : > { %9058 = vmatpush3.bf16.msra.mxu0 %v11868_v55  ;;  %8405 = vmatprep.mubr.msk.f32.mxu0 %vm838_vm0, %v7933_v21  ;;  %v7936_v55 = vld [vmem:[%s12768_s8 + $0xf8] sm:$0xff]  ;;  %v9656_v21 = vld [vmem:[%s12769_s9 + $0x60] ss:$8 sps:$4 sm:$0xff]  }
 0x789   : > { %9060 = vmatprep.subr.bf16.mxu0 %v11872_v16 }
 0x78b   : > { %8406 = vmatmul.mubr.msk.f32.gmra.mrb[124].mxu0 %vm838_vm0, %v7934_v32 }
 0x78c   : > { %9062 = vmatpush3.bf16.msra.mxu0 %v11872_v16  ;;  %8408 = vmatprep.mubr.msk.f32.mxu0 %vm838_vm0, %v7935_v43  ;;  %v9632_v16 = vld [vmem:[%s12769_s9 + $0xcc] ss:$8 sps:$4 sm:$0xff]   ;;  %v7871_v43 = vcombine.high %v4620_v62, %v4620_v62 }
 0x78d   : > { %9064 = vmatprep.subr.bf16.mxu0 %v11876_v41  ;;  %4884 = vmatprep.subr.bf16.mxu1 %v9632_v16 }
 0x78e   : > { %4885 = vmatpush1.bf16.msra.mxu1 %v9630_v47 }
 0x78f   : > { %8409 = vmatmul.mubr.msk.f32.gmra.mrb[126].mxu0 %vm838_vm0, %v7936_v55  ;;  %4886 = vmatprep.subr.bf16.mxu1 %v9635_v29  ;;  %v7870_v55 = vcombine.low %v4620_v62, %v4620_v62  ;;  %v9663_v29 = vld [vmem:[%s12769_s9 + $0xf4] ss:$8 sps:$4 sm:$0xff]  }
 0x790   : > { %9066 = vmatpush3.bf16.msra.mxu0 %v11876_v41  ;;  %8435 = vmatprep.mubr.msk.f32.mxu0 %vm838_vm0, %v7981_v31  ;;  %v7982_v41 = vld [vmem:[%s12768_s8 + $0x108] sm:$0xff] }
 0x791   : > { %9068 = vmatprep.subr.bf16.mxu0 %v11897_v46 }
 0x792   : > { %4887 = vmatpush1.bf16.msra.mxu1 %v9633_v3  ;;  %v5035_v3 = vsel %vm4867_vm5, %v7870_v55, 0 }
 0x793   : > { %7851 = vmatprep.subr.msk.bf16.mxu1 %vm4867_vm5, %v7850_v7 }
 0x794   : > { %9070 = vmatpush3.bf16.msra.mxu0 %v11897_v46  ;;  %v7849_v46 = vcombine.low %v7834_v38, %v7834_v38 }
 0x795   : > { %9072 = vmatprep.subr.bf16.mxu0 %v11915_v53 }
 0x796   : > { %v4869_v58 = vsel %vm4867_vm5, %v7849_v46, 0  ;;  %v9669_v46 = vld [vmem:[%s12769_s9 + $0x114] ss:$8 sps:$4 sm:$0xff]  }
 0x797   : > { %4889 = vmatpush1.bf16.msra.mxu1 %v4869_v58 }
 0x798   : > { %9074 = vmatpush3.bf16.msra.mxu0 %v11915_v53  ;;  %5040 = vmatprep.subr.bf16.mxu1 %v9640_v57  ;;  %v9667_v57 = vld [vmem:[%s12769_s9 + $0x110] ss:$8 sps:$4 sm:$0xff]  }
 0x79b   : > { %8436 = vmatmul.mubr.msk.f32.vlgmr.msra.gmra.mrb[128].mxu0 %vm838_vm0, %v7982_v41 }
 0x79c   : > { %8438 = vmatprep.mubr.msk.f32.mxu0 %vm838_vm0, %v7983_v34 }
 0x79f   : > { %8439 = vmatmul.mubr.msk.f32.gmra.mrb[130].mxu0 %vm838_vm0, %v7984_v17  ;;  %v9661_v17 = vld [vmem:[%s12769_s9 + $0xf0] ss:$8 sps:$4 sm:$0xff]  }
 0x7a0   : > { %8441 = vmatprep.mubr.msk.f32.mxu0 %vm838_vm0, %v7985_v54 }
 0x7a3   : > { %8442 = vmatmul.mubr.msk.f32.gmra.mrb[132].mxu0 %vm838_vm0, %v7986_v4  ;;  %v9666_v4 = vld [vmem:[%s12769_s9 + $0x104] ss:$8 sps:$4 sm:$0xff]  }
 0x7a4   : > { %8444 = vmatprep.mubr.msk.f32.mxu0 %vm838_vm0, %v7987_v22 }
 0x7a7   : > { %8445 = vmatmul.mubr.msk.f32.gmra.mrb[134].mxu0 %vm838_vm0, %v7988_v40  ;;  %v9664_v40 = vld [vmem:[%s12769_s9 + $0x100] ss:$8 sps:$4 sm:$0xff]  }
 0x80e   : > { %v12146_v5 = vpop.f32.mrb[96].mxu0 }
 0x80f   : > { %v12148_v20 = vpop.f32.mrb[97].mxu0 }
 0x810   : > { %v4602_v15 = vpack.c.bf16 %v12146_v5, %v12148_v20  ;;  %v9672_v5 = vld [vmem:[%s12769_s9 + $0x124] ss:$8 sps:$4 sm:$0xff]   ;;  %v9670_v20 = vld [vmem:[%s12769_s9 + $0x120] ss:$8 sps:$4 sm:$0xff]  }
 0x812   : > { %v12152_v28 = vpop.f32.mrb[98].mxu0 }
 0x813   : > { %v12154_v60 = vpop.f32.mrb[99].mxu0 }
 0x814   : > { %v4603_v42 = vpack.c.bf16 %v12152_v28, %v12154_v60  ;;  %v9673_v28 = vld [vmem:[%s12769_s9 + $0x130] ss:$8 sps:$4 sm:$0xff]  }
 0x816   : > { %v12158_v11 = vpop.f32.mrb[100].mxu0 }
 0x817   : > { %v12160_v12 = vpop.f32.mrb[101].mxu0 }
 0x818   : > { %v4604_v14 = vpack.c.bf16 %v12158_v11, %v12160_v12  ;;  %v7907_v12 = vld [vmem:[%s12769_s9 + $0x160] sm:$0xff] }
 0x81a   : > { %v12164_v53 = vpop.f32.mrb[102].mxu0 }
 0x81b   : > { %v12166_v9 = vpop.f32.mrb[103].mxu0 }
 0x81c   : > { %v4605_v59 = vpack.c.bf16 %v12164_v53, %v12166_v9  ;;  %v9684_v9 = vld [vmem:[%s12769_s9 + $0x168] ss:$8 sps:$4 sm:$0xff]  }
 0x826   : > { %v8329_v44 = vpop.f32.mrb[104].mxu0 }
 0x827   : > { %v4720_v63 = vpop.f32.mrb[105].mxu0 }
 0x828   : > { %v4759_v39 = vpack.c.bf16 %v8329_v44, %v4720_v63 }
 0x82a   : > { %7852 = vmatmul.mubr.msk.bf16.vlgmr.msra.gmra.mrb[32].mxu1 %vm4854_vm6, %v4759_v39  ;;  %v8332_v33 = vpop.f32.mrb[106].mxu0  ;;  %v9676_v39 = vld [vmem:[%s12769_s9 + $0x140] ss:$8 sps:$4 sm:$0xff]  }
 0x82b   : > { %5041 = vmatpush1.bf16.msra.mxu1 %v9638_v36  ;;  %v4730_v30 = vpop.f32.mrb[107].mxu0  ;;  %4916 = vmatprep.mubr.bf16.mxu1 %v10108_v48 }
 0x82c   : > { %5042 = vmatprep.subr.bf16.mxu1 %v9643_v24  ;;  %v4760_v50 = vpack.c.bf16 %v8332_v33, %v4730_v30  ;;  %v9681_v33 = vld [vmem:[%s12769_s9 + $0x154] ss:$8 sps:$4 sm:$0xff]  }
 0x82e   : > { %v8335_v13 = vpop.f32.mrb[108].mxu0 }
 0x82f   : > { %5043 = vmatpush1.bf16.msra.mxu1 %v9641_v8  ;;  %v4740_v27 = vpop.f32.mrb[109].mxu0  ;;  %v9679_v8 = vld [vmem:[%s12769_s9 + $0x150] ss:$8 sps:$4 sm:$0xff]  }
 0x830   : > { %5044 = vmatprep.subr.bf16.mxu1 %v9646_v10  ;;  %v4761_v51 = vpack.c.bf16 %v8335_v13, %v4740_v27  ;;  %v7922_v10 = vcombine.low %v7907_v12, %v7907_v12 }
 0x832   : > { %7853 = vmatmul.mubr.msk.bf16.gmra.mrb[36].mxu1 %vm4854_vm6, %v4760_v50  ;;  %v8338_v52 = vpop.f32.mrb[110].mxu0  ;;  %v7923_v50 = vcombine.high %v7907_v12, %v7907_v12  ;;  %v10109_v12 = vmov 0.0  }
 0x833   : > { %5045 = vmatpush1.bf16.msra.mxu1 %v9644_v18  ;;  %4926 = vmatprep.mubr.bf16.mxu1 %v10108_v48  ;;  %v4750_v37 = vpop.f32.mrb[111].mxu0 }
 0x834   : > { %5046 = vmatprep.subr.bf16.mxu1 %v9649_v49  ;;  %v4762_v56 = vpack.c.bf16 %v8338_v52, %v4750_v37  ;;  %v5359_v49 = vsel %vm4867_vm5, %v7922_v10, 0  ;;  %v9687_v52 = vld [vmem:[%s12769_s9 + $0x178] ss:$8 sps:$4 sm:$0xff]   ;;  %6241 = vmatprep.mubr.f32.mxu0 %v10109_v12 }
 0x835   : > { %v6500_v10 = vld [vmem:[#allocation14 + $0x18] sm:$0xff] }
 0x837   : > { %5047 = vmatpush1.bf16.msra.mxu1 %v9647_v23  ;;  %v9692_v23 = vld [vmem:[%s12769_s9 + $0x18c] ss:$8 sps:$4 sm:$0xff]  }
 0x838   : > { %5048 = vmatprep.subr.bf16.mxu1 %v9652_v45  ;;  %v9690_v45 = vld [vmem:[%s12769_s9 + $0x188] ss:$8 sps:$4 sm:$0xff]  }
 0x83a   : > { %7854 = vmatmul.mubr.msk.bf16.gmra.mrb[40].mxu1 %vm4854_vm6, %v4761_v51  ;;  %v9686_v51 = vld [vmem:[%s12769_s9 + $0x16c] ss:$8 sps:$4 sm:$0xff]  }
 0x83b   : > { %5049 = vmatpush1.bf16.msra.mxu1 %v9650_v1  ;;  %4936 = vmatprep.mubr.bf16.mxu1 %v10108_v48  ;;  %v9695_v1 = vld [vmem:[%s12769_s9 + $0x19c] ss:$8 sps:$4 sm:$0xff]  }
 0x83c   : > { %5050 = vmatprep.subr.bf16.mxu1 %v9655_v35 }
 0x83e   : > { %v12215_v25 = vpop.f32.mrb[112].mxu0 }
 0x83f   : > { %5051 = vmatpush1.bf16.msra.mxu1 %v9653_v2  ;;  %v12220_v32 = vpop.f32.mrb[113].mxu0 }
 0x840   : > { %5052 = vmatprep.subr.bf16.mxu1 %v9658_v19  ;;  %v5251_v31 = vpack.c.bf16 %v12215_v25, %v12220_v32  ;;  %v9693_v19 = vld [vmem:[%s12769_s9 + $0x198] ss:$8 sps:$4 sm:$0xff]   ;;  %v9698_v25 = vld [vmem:[%s12769_s9 + $0x1ac] ss:$8 sps:$4 sm:$0xff]  }
 0x842   : > { %7855 = vmatmul.mubr.msk.bf16.gmra.mrb[44].mxu1 %vm4854_vm6, %v4762_v56  ;;  %v12225_v47 = vpop.f32.mrb[114].mxu0 }
 0x843   : > { %5053 = vmatpush1.bf16.msra.mxu1 %v9656_v21  ;;  %5072 = vmatprep.mubr.bf16.mxu1 %v10108_v48  ;;  %v12228_v16 = vpop.f32.mrb[115].mxu0 }
 0x844   : > { %7872 = vmatprep.subr.msk.bf16.mxu1 %vm4867_vm5, %v7871_v43  ;;  %v5252_v41 = vpack.c.bf16 %v12225_v47, %v12228_v16  ;;  %v9696_v43 = vld [vmem:[%s12769_s9 + $0x1a8] ss:$8 sps:$4 sm:$0xff]  }
 0x846   : > { %v12237_v34 = vpop.f32.mrb[116].mxu0 }
 0x847   : > { %5055 = vmatpush1.bf16.msra.mxu1 %v5035_v3  ;;  %v12242_v54 = vpop.f32.mrb[117].mxu0  ;;  %v9699_v3 = vld [vmem:[%s12769_s9 + $0x1b8] ss:$8 sps:$4 sm:$0xff]  }
 0x848   : > { %5364 = vmatprep.subr.bf16.mxu1 %v9663_v29  ;;  %v5253_v22 = vpack.c.bf16 %v12237_v34, %v12242_v54  ;;  %v9702_v54 = vld [vmem:[%s12769_s9 + $0x1c8] ss:$8 sps:$4 sm:$0xff]  }
 0x84a   : > { %7873 = vmatmul.mubr.msk.bf16.vlgmr.msra.gmra.mrb[32].mxu1 %vm4854_vm6, %v4602_v15  ;;  %v12253_v38 = vpop.f32.mrb[118].mxu0  ;;  %v9675_v15 = vld [vmem:[%s12769_s9 + $0x134] ss:$8 sps:$4 sm:$0xff]  }
 0x84b   : > { %5365 = vmatpush1.bf16.msra.mxu1 %v9661_v17  ;;  %5082 = vmatprep.mubr.bf16.mxu1 %v10108_v48  ;;  %v12259_v7 = vpop.f32.mrb[119].mxu0  ;;  %v7959_v17 = vld [vmem:[%s12769_s9 + $0x1d8] sm:$0xff] }
 0x84c   : > { %5366 = vmatprep.subr.bf16.mxu1 %v9666_v4  ;;  %v5254_v58 = vpack.c.bf16 %v12253_v38, %v12259_v7  ;;  %v7975_v4 = vcombine.high %v7959_v17, %v7959_v17  ;;  %v9712_v38 = vld [vmem:[%s12769_s9 + $0x1f4] ss:$8 sps:$4 sm:$0xff]   ;;  %v9710_v7 = vld [vmem:[%s12769_s9 + $0x1f0] ss:$8 sps:$4 sm:$0xff]  }
 0x84f   : > { %5367 = vmatpush1.bf16.msra.mxu1 %v9664_v40 }
 0x850   : > { %5368 = vmatprep.subr.bf16.mxu1 %v9669_v46  ;;  %v9709_v46 = vld [vmem:[%s12769_s9 + $0x1e4] ss:$8 sps:$4 sm:$0xff]  }
 0x852   : > { %7874 = vmatmul.mubr.msk.bf16.gmra.mrb[36].mxu1 %vm4854_vm6, %v4603_v42  ;;  %v9678_v42 = vld [vmem:[%s12769_s9 + $0x144] ss:$8 sps:$4 sm:$0xff]  }
 0x853   : > { %5369 = vmatpush1.bf16.msra.mxu1 %v9667_v57  ;;  %5092 = vmatprep.mubr.bf16.mxu1 %v10108_v48  ;;  %v9707_v57 = vld [vmem:[%s12769_s9 + $0x1e0] ss:$8 sps:$4 sm:$0xff]  }
 0x854   : > { %5370 = vmatprep.subr.bf16.mxu1 %v9672_v5  ;;  %v9713_v5 = vld [vmem:[%s12769_s9 + $0x200] ss:$8 sps:$4 sm:$0xff]  }
 0x856   : > { %v12283_v44 = vpop.f32.mrb[120].mxu0 }
 0x857   : > { %5371 = vmatpush1.bf16.msra.mxu1 %v9670_v20  ;;  %v12288_v60 = vpop.f32.mrb[121].mxu0  ;;  %v9718_v20 = vld [vmem:[%s12769_s9 + $0x214] ss:$8 sps:$4 sm:$0xff]  }
 0x858   : > { %5372 = vmatprep.subr.bf16.mxu1 %v9675_v15  ;;  %v5591_v63 = vpack.c.bf16 %v12283_v44, %v12288_v60  ;;  %v9716_v15 = vld [vmem:[%s12769_s9 + $0x210] ss:$8 sps:$4 sm:$0xff]   ;;  %v9721_v44 = vld [vmem:[%s12769_s9 + $0x224] ss:$8 sps:$4 sm:$0xff]   ;;  %v9724_v60 = vld [vmem:[%s12769_s9 + $0x234] ss:$8 sps:$4 sm:$0xff]  }
 0x85a   : > { %7875 = vmatmul.mubr.msk.bf16.gmra.mrb[40].mxu1 %vm4854_vm6, %v4604_v14  ;;  %v12299_v36 = vpop.f32.mrb[122].mxu0 }
 0x85b   : > { %5373 = vmatpush1.bf16.msra.mxu1 %v9673_v28  ;;  %5102 = vmatprep.mubr.bf16.mxu1 %v10108_v48  ;;  %v12305_v24 = vpop.f32.mrb[123].mxu0  ;;  %v9719_v28 = vld [vmem:[%s12769_s9 + $0x220] ss:$8 sps:$4 sm:$0xff]  }
 0x85c   : > { %5374 = vmatprep.subr.bf16.mxu1 %v9678_v42  ;;  %v5592_v11 = vpack.c.bf16 %v12299_v36, %v12305_v24  ;;  %v9722_v42 = vld [vmem:[%s12769_s9 + $0x230] ss:$8 sps:$4 sm:$0xff]  }
 0x85d   : > { %v8011_v36 = vld [vmem:[%s12769_s9 + $0x250] sm:$0xff] }
 0x85e   : > { %v12315_v14 = vpop.f32.mrb[124].mxu0  ;;  %v8027_v24 = vcombine.high %v8011_v36, %v8011_v36 }
 0x85f   : > { %5375 = vmatpush1.bf16.msra.mxu1 %v9676_v39  ;;  %v12320_v30 = vpop.f32.mrb[125].mxu0  ;;  %v9725_v39 = vld [vmem:[%s12769_s9 + $0x240] ss:$8 sps:$4 sm:$0xff]  }
 0x860   : > { %5376 = vmatprep.subr.bf16.mxu1 %v9681_v33  ;;  %v5593_v13 = vpack.c.bf16 %v12315_v14, %v12320_v30  ;;  %v8026_v33 = vcombine.low %v8011_v36, %v8011_v36  ;;  %v6497_v14 = vld [vmem:[#allocation14] sm:$0xff] }
 0x862   : > { %7876 = vmatmul.mubr.msk.bf16.gmra.mrb[44].mxu1 %vm4854_vm6, %v4605_v59  ;;  %v12328_v18 = vpop.f32.mrb[126].mxu0  ;;  %v9689_v59 = vld [vmem:[%s12769_s9 + $0x17c] ss:$8 sps:$4 sm:$0xff]  }
 0x863   : > { %5377 = vmatpush1.bf16.msra.mxu1 %v9679_v8  ;;  %5396 = vmatprep.mubr.bf16.mxu1 %v10108_v48  ;;  %v12331_v27 = vpop.f32.mrb[127].mxu0  ;;  %v6498_v8 = vld [vmem:[#allocation14 + $0x8] sm:$0xff] }
 0x864   : > { %7924 = vmatprep.subr.msk.bf16.mxu1 %vm4867_vm5, %v7923_v50  ;;  %v5594_v53 = vpack.c.bf16 %v12328_v18, %v12331_v27  ;;  %v9138_v30 = vpack.c.bf16 %v6498_v8, %v6497_v14  ;;  %v6499_v50 = vld [vmem:[#allocation14 + $0x10] sm:$0xff]  ;;  %v6501_v18 = vld [vmem:[#allocation14 + $0x20] sm:$0xff]  ;;  %v6502_v27 = vld [vmem:[#allocation14 + $0x28] sm:$0xff] }
 0x867   : > { %5379 = vmatpush1.bf16.msra.mxu1 %v5359_v49  ;;  %v9144_v49 = vpack.c.bf16 %v6502_v27, %v6501_v18  ;;  %v6379_v18 = vld [vmem:[#allocation13] sm:$0xff]  ;;  %v6380_v27 = vld [vmem:[#allocation13 + $0x8] sm:$0xff] }
 0x868   : > { %5704 = vmatprep.subr.bf16.mxu1 %v9686_v51  ;;  %v6504_v51 = vld [vmem:[#allocation14 + $0x38] sm:$0xff] }
 0x86a   : > { %7925 = vmatmul.mubr.msk.bf16.vlgmr.msra.gmra.mrb[32].mxu1 %vm4854_vm6, %v5251_v31  ;;  %v9701_v31 = vld [vmem:[%s12769_s9 + $0x1bc] ss:$8 sps:$4 sm:$0xff]  }
 0x86b   : > { %5705 = vmatpush1.bf16.msra.mxu1 %v9684_v9  ;;  %5406 = vmatprep.mubr.bf16.mxu1 %v10108_v48  ;;  %v6505_v9 = vld [vmem:[#allocation14 + $0x40] sm:$0xff] }
 0x86c   : > { %5706 = vmatprep.subr.bf16.mxu1 %v9689_v59  ;;  %v6506_v59 = vld [vmem:[#allocation14 + $0x48] sm:$0xff] }
 0x86e   : > { %v12357_v37 = vpop.f32.mrb[128].mxu0 }
 0x86f   : > { %5707 = vmatpush1.bf16.msra.mxu1 %v9687_v52  ;;  %v12362_v56 = vpop.f32.mrb[129].mxu0  ;;  %v9150_v52 = vpack.c.bf16 %v6506_v59, %v6505_v9  ;;  %v6267_v9 = vld [vmem:[#allocation11 + $0x8] sm:$0xff] }
 0x870   : > { %5708 = vmatprep.subr.bf16.mxu1 %v9692_v23  ;;  %v5931_v35 = vpack.c.bf16 %v12357_v37, %v12362_v56  ;;  %v6507_v23 = vld [vmem:[#allocation14 + $0x50] sm:$0xff]  ;;  %v6508_v37 = vld [vmem:[#allocation14 + $0x58] sm:$0xff]  ;;  %v6509_v56 = vld [vmem:[#allocation14 + $0x60] sm:$0xff] }
 0x872   : > { %7926 = vmatmul.mubr.msk.bf16.gmra.mrb[36].mxu1 %vm4854_vm6, %v5252_v41  ;;  %v12373_v2 = vpop.f32.mrb[130].mxu0  ;;  %v9704_v41 = vld [vmem:[%s12769_s9 + $0x1cc] ss:$8 sps:$4 sm:$0xff]  }
 0x873   : > { %5709 = vmatpush1.bf16.msra.mxu1 %v9690_v45  ;;  %5416 = vmatprep.mubr.bf16.mxu1 %v10108_v48  ;;  %v12379_v62 = vpop.f32.mrb[131].mxu0  ;;  %v9153_v45 = vpack.c.bf16 %v6508_v37, %v6507_v23  ;;  %v6384_v23 = vld [vmem:[#allocation13 + $0x28] sm:$0xff]  ;;  %v6268_v37 = vld [vmem:[#allocation11 + $0x10] sm:$0xff] }
 0x874   : > { %5710 = vmatprep.subr.bf16.mxu1 %v9695_v1  ;;  %v5932_v21 = vpack.c.bf16 %v12373_v2, %v12379_v62  ;;  %v6510_v1 = vld [vmem:[#allocation14 + $0x68] sm:$0xff]  ;;  %v6133_v2 = vld [vmem:[%s12770_s10] sm:$0x3] }
 0x876   : > { %v12386_v32 = vpop.f32.mrb[132].mxu0 }
 0x877   : > { %5711 = vmatpush1.bf16.msra.mxu1 %v9693_v19  ;;  %v12391_v55 = vpop.f32.mrb[133].mxu0  ;;  %v6138_v19 = vrot.slane %v6133_v2, %v3619_v26 }
 0x878   : > { %5712 = vmatprep.subr.bf16.mxu1 %v9698_v25  ;;  %v5933_v47 = vpack.c.bf16 %v12386_v32, %v12391_v55  ;;  %v6142_v25 = vrot.slane %v6133_v2, %v3623_v61 }
 0x87a   : > { %7927 = vmatmul.mubr.msk.bf16.gmra.mrb[40].mxu1 %vm4854_vm6, %v5253_v22  ;;  %v12402_v16 = vpop.f32.mrb[134].mxu0  ;;  %v7974_v22 = vcombine.low %v7959_v17, %v7959_v17 }
 0x87b   : > { %5713 = vmatpush1.bf16.msra.mxu1 %v9696_v43  ;;  %5426 = vmatprep.mubr.bf16.mxu1 %v10108_v48  ;;  %v12408_v29 = vpop.f32.mrb[135].mxu0 }
 0x87c   : > { %5714 = vmatprep.subr.bf16.mxu1 %v9701_v31  ;;  %v5934_v34 = vpack.c.bf16 %v12402_v16, %v12408_v29  ;;  %v5699_v40 = vsel %vm4867_vm5, %v7974_v22, 0 }
 0x87f   : > { %5715 = vmatpush1.bf16.msra.mxu1 %v9699_v3 }
 0x880   : > { %5716 = vmatprep.subr.bf16.mxu1 %v9704_v41 }
 0x882   : > { %7928 = vmatmul.mubr.msk.bf16.gmra.mrb[44].mxu1 %vm4854_vm6, %v5254_v58  ;;  %v9715_v58 = vld [vmem:[%s12769_s9 + $0x204] ss:$8 sps:$4 sm:$0xff]  }
 0x883   : > { %5717 = vmatpush1.bf16.msra.mxu1 %v9702_v54  ;;  %5736 = vmatprep.mubr.bf16.mxu1 %v10108_v48 }
 0x884   : > { %7976 = vmatprep.subr.msk.bf16.mxu1 %vm4867_vm5, %v7975_v4 }
 0x887   : > { %5719 = vmatpush1.bf16.msra.mxu1 %v5699_v40 }
 0x888   : > { %6044 = vmatprep.subr.bf16.mxu1 %v9709_v46 }
 0x88a   : > { %7977 = vmatmul.mubr.msk.bf16.vlgmr.msra.gmra.mrb[32].mxu1 %vm4854_vm6, %v5591_v63  ;;  %v9727_v63 = vld [vmem:[%s12769_s9 + $0x244] ss:$8 sps:$4 sm:$0xff]  }
 0x88b   : > { %6045 = vmatpush1.bf16.msra.mxu1 %v9707_v57  ;;  %5746 = vmatprep.mubr.bf16.mxu1 %v10108_v48 }
 0x88c   : > { %6046 = vmatprep.subr.bf16.mxu1 %v9712_v38 }
 0x88f   : > { %6047 = vmatpush1.bf16.msra.mxu1 %v9710_v7 }
 0x890   : > { %6048 = vmatprep.subr.bf16.mxu1 %v9715_v58 }
 0x892   : > { %7978 = vmatmul.mubr.msk.bf16.gmra.mrb[36].mxu1 %vm4854_vm6, %v5592_v11  ;;  %v6039_v11 = vsel %vm4867_vm5, %v8026_v33, 0 }
 0x893   : > { %6049 = vmatpush1.bf16.msra.mxu1 %v9713_v5  ;;  %5756 = vmatprep.mubr.bf16.mxu1 %v10108_v48 }
 0x894   : > { %6050 = vmatprep.subr.bf16.mxu1 %v9718_v20 }
 0x897   : > { %6051 = vmatpush1.bf16.msra.mxu1 %v9716_v15 }
 0x898   : > { %6052 = vmatprep.subr.bf16.mxu1 %v9721_v44 }
 0x89a   : > { %7979 = vmatmul.mubr.msk.bf16.gmra.mrb[40].mxu1 %vm4854_vm6, %v5593_v13  ;;  %v9141_v13 = vpack.c.bf16 %v6500_v10, %v6499_v50  ;;  %v6162_v50 = vld [vmem:[#allocation10 + $0x8] sm:$0xff]  ;;  %v6163_v10 = vld [vmem:[#allocation10 + $0x10] sm:$0xff] }
 0x89b   : > { %6053 = vmatpush1.bf16.msra.mxu1 %v9719_v28  ;;  %5766 = vmatprep.mubr.bf16.mxu1 %v10108_v48 }
 0x89c   : > { %6054 = vmatprep.subr.bf16.mxu1 %v9724_v60 }
 0x89f   : > { %6055 = vmatpush1.bf16.msra.mxu1 %v9722_v42 }
 0x8a0   : > { %6056 = vmatprep.subr.bf16.mxu1 %v9727_v63 }
 0x8a2   : > { %7980 = vmatmul.mubr.msk.bf16.gmra.mrb[44].mxu1 %vm4854_vm6, %v5594_v53 }
 0x8a3   : > { %6057 = vmatpush1.bf16.msra.mxu1 %v9725_v39  ;;  %6076 = vmatprep.mubr.bf16.mxu1 %v10108_v48 }
 0x8a4   : > { %8028 = vmatprep.subr.msk.bf16.mxu1 %vm4867_vm5, %v8027_v24 }
 0x8a7   : > { %6059 = vmatpush1.bf16.msra.mxu1 %v6039_v11 }
 0x8a8   : > { %9137 = vmatprep.subr.bf16.mxu1 %v10107_v0 }
 0x8aa   : > { %8029 = vmatmul.mubr.msk.bf16.vlgmr.msra.gmra.mrb[32].mxu1 %vm4854_vm6, %v5931_v35  ;;  %v9156_v35 = vpack.c.bf16 %v6510_v1, %v6509_v56  ;;  %v6385_v56 = vld [vmem:[#allocation13 + $0x30] sm:$0xff]  ;;  %v6386_v1 = vld [vmem:[#allocation13 + $0x38] sm:$0xff] }
 0x8ab   : > { %6086 = vmatprep.mubr.bf16.mxu1 %v10108_v48  ;;  %9139 = vmatpush1.bf16.msra.mxu1 %v9138_v30  ;;  %v6161_v30 = vld [vmem:[#allocation10] sm:$0xff]  ;;  %v9117_v2 = vpack.c.bf16 %v6386_v1, %v6385_v56 }
 0x8ac   : > { %9140 = vmatprep.subr.bf16.mxu1 %v10107_v0 }
 0x8af   : > { %9142 = vmatpush1.bf16.msra.mxu1 %v9141_v13  ;;  %v6164_v13 = vld [vmem:[#allocation10 + $0x18] sm:$0xff] }
 0x8b0   : > { %9143 = vmatprep.subr.bf16.mxu1 %v10107_v0 }
 0x8b2   : > { %8030 = vmatmul.mubr.msk.bf16.gmra.mrb[36].mxu1 %vm4854_vm6, %v5932_v21 }
 0x8b3   : > { %6096 = vmatprep.mubr.bf16.mxu1 %v10108_v48  ;;  %9145 = vmatpush1.bf16.msra.mxu1 %v9144_v49  ;;  %v6266_v49 = vld [vmem:[#allocation11] sm:$0xff] }
 0x8b4   : > { %9146 = vmatprep.subr.bf16.mxu1 %v10107_v0 }
 0x8ba   : > { %8031 = vmatmul.mubr.msk.bf16.gmra.mrb[40].mxu1 %vm4854_vm6, %v5933_v47 }
 0x8bb   : > { %6106 = vmatprep.mubr.bf16.mxu1 %v10108_v48  ;;  %v6503_v48 = vld [vmem:[#allocation14 + $0x30] sm:$0xff] }
 0x8bc   : > { %v9147_v53 = vpack.c.bf16 %v6504_v51, %v6503_v48  ;;  %v9108_v48 = vpack.c.bf16 %v6380_v27, %v6379_v18  ;;  %v6381_v51 = vld [vmem:[#allocation13 + $0x10] sm:$0xff] }
 0x8be   : > { %9148 = vmatpush1.bf16.msra.mxu1 %v9147_v53  ;;  %v6382_v53 = vld [vmem:[#allocation13 + $0x18] sm:$0xff] }
 0x8bf   : > { %9149 = vmatprep.subr.bf16.mxu1 %v10107_v0  ;;  %v9111_v59 = vpack.c.bf16 %v6382_v53, %v6381_v51 }
 0x8c2   : > { %8032 = vmatmul.mubr.msk.bf16.gmra.mrb[44].mxu1 %vm4854_vm6, %v5934_v34 }
 0x8c3   : > { %9151 = vmatpush1.bf16.msra.mxu1 %v9150_v52  ;;  %v6383_v52 = vld [vmem:[#allocation13 + $0x20] sm:$0xff] }
 0x8c4   : > { %9152 = vmatprep.subr.bf16.mxu1 %v10107_v0 }
 0x8c7   : > { %9154 = vmatpush1.bf16.msra.mxu1 %v9153_v45  ;;  %v9114_v45 = vpack.c.bf16 %v6384_v23, %v6383_v52 }
 0x8c8   : > { %9155 = vmatprep.subr.bf16.mxu1 %v10107_v0 }
 0x8cb   : > { %9157 = vmatpush1.bf16.msra.mxu1 %v9156_v35  ;;  %v6269_v35 = vld [vmem:[#allocation11 + $0x18] sm:$0xff] }
 0x8cc   : > { %9158 = vmatprep.subr.bf16.mxu1 %v10107_v0 }
 0x97d   : > { %v6078_v62 = vpop.f32.mrb[32].mxu1 }
 0x97e   : > { %v6080_v21 = vpop.f32.mrb[33].mxu1  ;;  %v6145_v43 = vadd.f32 %v6138_v19, %v6078_v62  ;;  %v6388_v62 = vld [vmem:[#allocation13 + $0x48] sm:$0xff] }
 0x97f   : > { %v6082_v32 = vpop.f32.mrb[34].mxu1  ;;  %v6146_v47 = vadd.f32 %v6142_v25, %v6080_v21  ;;  %v6389_v21 = vld [vmem:[#allocation13 + $0x50] sm:$0xff] }
 0x980   : > { %v6147_v55 = vadd.f32 %v6138_v19, %v6082_v32  ;;  %v6084_v31 = vpop.f32.mrb[35].mxu1  ;;  %v6390_v32 = vld [vmem:[#allocation13 + $0x58] sm:$0xff] }
 0x981   : > { %v6148_v16 = vadd.f32 %v6142_v25, %v6084_v31  ;;  %v6392_v31 = vld [vmem:[#allocation13 + $0x68] sm:$0xff] }
 0x982   : > { %v9077_v3 = vpack.c.bf16 %v6147_v55, %v6145_v43  ;;  %v9123_v43 = vpack.c.bf16 %v6390_v32, %v6389_v21  ;;  %v6391_v55 = vld [vmem:[#allocation13 + $0x60] sm:$0xff] }
 0x983   : > { %v9075_v29 = vpack.c.bf16 %v6148_v16, %v6146_v47  ;;  %v9126_v47 = vpack.c.bf16 %v6392_v31, %v6391_v55  ;;  %v6393_v16 = vld [vmem:[#allocation13 + $0x70] sm:$0xff] }
 0x985   : > { %v6088_v41 = vpop.f32.mrb[36].mxu1  ;;  %9076 = vmatprep.subr.bf16.mxu0 %v9075_v29 }
 0x986   : > { %v6090_v34 = vpop.f32.mrb[37].mxu1  ;;  %9078 = vmatpush1.bf16.msra.mxu0 %v9077_v3  ;;  %v6149_v54 = vadd.f32 %v6138_v19, %v6088_v41 }
 0x987   : > { %v6092_v17 = vpop.f32.mrb[38].mxu1  ;;  %v6150_v22 = vadd.f32 %v6142_v25, %v6090_v34  ;;  %v6512_v34 = vld [vmem:[#allocation14 + $0x78] sm:$0xff] }
 0x988   : > { %v6151_v26 = vadd.f32 %v6138_v19, %v6092_v17  ;;  %v6094_v4 = vpop.f32.mrb[39].mxu1 }
 0x989   : > { %v6152_v6 = vadd.f32 %v6142_v25, %v6094_v4  ;;  %v6513_v4 = vld [vmem:[#allocation14 + $0x80] sm:$0xff] }
 0x98a   : > { %v9081_v61 = vpack.c.bf16 %v6151_v26, %v6149_v54  ;;  %v6395_v54 = vld [vmem:[#allocation13 + $0x80] sm:$0xff]  ;;  %v6396_v26 = vld [vmem:[#allocation13 + $0x88] sm:$0xff] }
 0x98b   : > { %v9079_v40 = vpack.c.bf16 %v6152_v6, %v6150_v22  ;;  %v9132_v22 = vpack.c.bf16 %v6396_v26, %v6395_v54  ;;  %v6514_v6 = vld [vmem:[#allocation14 + $0x88] sm:$0xff]  ;;  %v6610_v54 = vld [vmem:[#allocation16] sm:$0xff] }
 0x98c   : > { %v6696_v26 = vld [vmem:[#allocation16 + $0x8] sm:$0xff] }
 0x98d   : > { %v6098_v46 = vpop.f32.mrb[40].mxu1  ;;  %9080 = vmatprep.subr.bf16.mxu0 %v9079_v40 }
 0x98e   : > { %v6100_v57 = vpop.f32.mrb[41].mxu1  ;;  %9082 = vmatpush1.bf16.msra.mxu0 %v9081_v61  ;;  %v6153_v7 = vadd.f32 %v6138_v19, %v6098_v46  ;;  %v6398_v46 = vld [vmem:[#allocation13 + $0x98] sm:$0xff] }
 0x98f   : > { %v6102_v38 = vpop.f32.mrb[42].mxu1  ;;  %v6154_v20 = vadd.f32 %v6142_v25, %v6100_v57  ;;  %v6515_v57 = vld [vmem:[#allocation14 + $0x90] sm:$0xff] }
 0x990   : > { %v6155_v58 = vadd.f32 %v6138_v19, %v6102_v38  ;;  %v6104_v5 = vpop.f32.mrb[43].mxu1 }
 0x991   : > { %v6156_v15 = vadd.f32 %v6142_v25, %v6104_v5 }
 0x992   : > { %v9085_v44 = vpack.c.bf16 %v6155_v58, %v6153_v7  ;;  %v6516_v7 = vld [vmem:[#allocation14 + $0x98] sm:$0xff] }
 0x993   : > { %v9083_v28 = vpack.c.bf16 %v6156_v15, %v6154_v20  ;;  %v9165_v58 = vpack.c.bf16 %v6516_v7, %v6515_v57  ;;  %v9737_v57 = vld [vmem:[%s12853_s20 + $0x10] sm:$0xff]   ;;  %v9739_v7 = vld [vmem:[%s12853_s20 + $0x20] sm:$0xff]  }
 0x995   : > { %v6108_v60 = vpop.f32.mrb[44].mxu1  ;;  %9084 = vmatprep.subr.bf16.mxu0 %v9083_v28 }
 0x996   : > { %v6110_v42 = vpop.f32.mrb[45].mxu1  ;;  %9086 = vmatpush1.bf16.msra.mxu0 %v9085_v44  ;;  %v6157_v36 = vadd.f32 %v6138_v19, %v6108_v60 }
 0x997   : > { %v6112_v63 = vpop.f32.mrb[46].mxu1  ;;  %v6158_v33 = vadd.f32 %v6142_v25, %v6110_v42 }
 0x998   : > { %v6159_v39 = vadd.f32 %v6138_v19, %v6112_v63  ;;  %v6114_v24 = vpop.f32.mrb[47].mxu1  ;;  %v6387_v19 = vld [vmem:[#allocation13 + $0x40] sm:$0xff] }
 0x999   : > { %v6160_v11 = vadd.f32 %v6142_v25, %v6114_v24  ;;  %v9120_v25 = vpack.c.bf16 %v6388_v62, %v6387_v19 }
 0x99a   : > { %v9089_v14 = vpack.c.bf16 %v6159_v39, %v6157_v36 }
 0x99b   : > { %v9087_v8 = vpack.c.bf16 %v6160_v11, %v6158_v33 }
 0x99d   : > { %9088 = vmatprep.subr.bf16.mxu0 %v9087_v8 }
 0x99e   : > { %9090 = vmatpush1.bf16.msra.mxu0 %v9089_v14 }
 0x99f   : > { %9092 = vmatprep.subr.bf16.mxu0 %v9075_v29  ;;  %v6511_v29 = vld [vmem:[#allocation14 + $0x70] sm:$0xff] }
 0x9a0   : > { %v9159_v17 = vpack.c.bf16 %v6512_v34, %v6511_v29 }
 0x9a1   : > { %8033 = vmatmul.mubr.msk.f32.vlgmr.msra.gmra.mrb[136].mxu0 %vm3699_vm3, %v6161_v30 }
 0x9a2   : > { %9094 = vmatpush1.bf16.msra.mxu0 %v9077_v3  ;;  %6247 = vmatprep.mubr.f32.mxu0 %v10109_v12  ;;  %v6394_v3 = vld [vmem:[#allocation13 + $0x78] sm:$0xff] }
 0x9a3   : > { %9096 = vmatprep.subr.bf16.mxu0 %v9079_v40  ;;  %v9129_v41 = vpack.c.bf16 %v6394_v3, %v6393_v16  ;;  %9160 = vmatpush1.bf16.msra.mxu1 %v9159_v17  ;;  %v6397_v40 = vld [vmem:[#allocation13 + $0x90] sm:$0xff] }
 0x9a4   : > { %9161 = vmatprep.subr.bf16.mxu1 %v10107_v0  ;;  %v9135_v38 = vpack.c.bf16 %v6398_v46, %v6397_v40  ;;  %v9735_v40 = vld [vmem:[%s12853_s20] sm:$0xff]   ;;  %v9736_v46 = vld [vmem:[%s12853_s20 + $0x8] sm:$0xff]  }
 0x9a5   : > { %8034 = vmatmul.mubr.msk.f32.gmra.mrb[138].mxu0 %vm3699_vm3, %v6162_v50 }
 0x9a6   : > { %9098 = vmatpush1.bf16.msra.mxu0 %v9081_v61  ;;  %6253 = vmatprep.mubr.f32.mxu0 %v10109_v12  ;;  %v9162_v61 = vpack.c.bf16 %v6514_v6, %v6513_v4  ;;  %v9730_v4 = vld [vmem:[%s12853_s20 + $0x28] sm:$0xff]   ;;  %v9732_v6 = vld [vmem:[%s12853_s20 + $0x38] sm:$0xff]  }
 0x9a7   : > { %9100 = vmatprep.subr.bf16.mxu0 %v9083_v28 }
 0x9a8   : > { %9163 = vmatpush1.bf16.msra.mxu1 %v9162_v61  ;;  %v9733_v61 = vld [vmem:[%s12853_s20 + $0x40] sm:$0xff]  }
 0x9a9   : > { %8035 = vmatmul.mubr.msk.f32.gmra.mrb[140].mxu0 %vm3699_vm3, %v6163_v10  ;;  %9164 = vmatprep.subr.bf16.mxu1 %v10107_v0 }
 0x9aa   : > { %9102 = vmatpush1.bf16.msra.mxu0 %v9085_v44  ;;  %6259 = vmatprep.mubr.f32.mxu0 %v10109_v12 }
 0x9ab   : > { %9104 = vmatprep.subr.bf16.mxu0 %v9087_v8 }
 0x9ac   : > { %9166 = vmatpush1.bf16.msra.mxu1 %v9165_v58  ;;  %v9734_v58 = vld [vmem:[%s12853_s20 + $0x48] sm:$0xff]  }
 0x9ad   : > { %8036 = vmatmul.mubr.msk.f32.gmra.mrb[142].mxu0 %vm3699_vm3, %v6164_v13  ;;  %8483 = vmatprep.subr.bf16.mxu1 %v10109_v12 }
 0x9ae   : > { %9106 = vmatpush1.bf16.msra.mxu0 %v9089_v14  ;;  %6346 = vmatprep.mubr.f32.mxu0 %v10109_v12 }
 0x9af   : > { %9107 = vmatprep.subr.bf16.mxu0 %v10107_v0 }
 0x9b1   : > { %8037 = vmatmul.mubr.msk.f32.vlgmr.msra.gmra.mrb[144].mxu0 %vm3699_vm3, %v6266_v49 }
 0x9b2   : > { %6352 = vmatprep.mubr.f32.mxu0 %v10109_v12  ;;  %9109 = vmatpush1.bf16.msra.mxu0 %v9108_v48 }
 0x9b3   : > { %9110 = vmatprep.subr.bf16.mxu0 %v10107_v0 }
 0x9b5   : > { %8038 = vmatmul.mubr.msk.f32.gmra.mrb[146].mxu0 %vm3699_vm3, %v6267_v9 }
 0x9b6   : > { %6358 = vmatprep.mubr.f32.mxu0 %v10109_v12  ;;  %9112 = vmatpush1.bf16.msra.mxu0 %v9111_v59 }
 0x9b7   : > { %9113 = vmatprep.subr.bf16.mxu0 %v10107_v0 }
 0x9b9   : > { %8039 = vmatmul.mubr.msk.f32.gmra.mrb[148].mxu0 %vm3699_vm3, %v6268_v37 }
 0x9ba   : > { %6364 = vmatprep.mubr.f32.mxu0 %v10109_v12  ;;  %9115 = vmatpush1.bf16.msra.mxu0 %v9114_v45 }
 0x9bb   : > { %9116 = vmatprep.subr.bf16.mxu0 %v10107_v0 }
 0x9bd   : > { %8040 = vmatmul.mubr.msk.f32.gmra.mrb[150].mxu0 %vm3699_vm3, %v6269_v35 }
 0x9be   : > { %9118 = vmatpush1.bf16.msra.mxu0 %v9117_v2 }
 0x9bf   : > { %9119 = vmatprep.subr.bf16.mxu0 %v10107_v0 }
 0x9c2   : > { %9121 = vmatpush1.bf16.msra.mxu0 %v9120_v25 }
 0x9c3   : > { %9122 = vmatprep.subr.bf16.mxu0 %v10107_v0 }
 0x9c6   : > { %9124 = vmatpush1.bf16.msra.mxu0 %v9123_v43 }
 0x9c7   : > { %9125 = vmatprep.subr.bf16.mxu0 %v10107_v0 }
 0x9ca   : > { %9127 = vmatpush1.bf16.msra.mxu0 %v9126_v47 }
 0x9cb   : > { %9128 = vmatprep.subr.bf16.mxu0 %v10107_v0 }
 0x9ce   : > { %9130 = vmatpush1.bf16.msra.mxu0 %v9129_v41 }
 0x9cf   : > { %9131 = vmatprep.subr.bf16.mxu0 %v10107_v0 }
 0x9d2   : > { %9133 = vmatpush1.bf16.msra.mxu0 %v9132_v22  ;;  %v9731_v22 = vld [vmem:[%s12853_s20 + $0x30] sm:$0xff]  }
 0x9d3   : > { %9134 = vmatprep.subr.bf16.mxu0 %v10107_v0 }
 0x9d6   : > { %9136 = vmatpush1.bf16.msra.mxu0 %v9135_v38  ;;  %v9738_v38 = vld [vmem:[%s12853_s20 + $0x18] sm:$0xff]  }
 0x9d7   : > { %9167 = vmatprep.subr.bf16.mxu0 %v10107_v0 }
 0xa74   : > { %v6243_v5 = vpop.f32.mrb[136].mxu0 }
 0xa75   : > { %v6245_v20 = vpop.f32.mrb[137].mxu0 }
 0xa78   : > { %v6249_v15 = vpop.f32.mrb[138].mxu0 }
 0xa79   : > { %v6251_v44 = vpop.f32.mrb[139].mxu0 }
 0xa7c   : > { %v6255_v28 = vpop.f32.mrb[140].mxu0 }
 0xa7d   : > { %v6257_v60 = vpop.f32.mrb[141].mxu0 }
 0xa80   : > { %v6261_v42 = vpop.f32.mrb[142].mxu0 }
 0xa81   : > { %v6263_v63 = vpop.f32.mrb[143].mxu0 }
 0xa84   : > { %v6348_v36 = vpop.f32.mrb[144].mxu0 }
 0xa85   : > { %v6371_v39 = vmax.f32 %v6243_v5, %v6348_v36  ;;  %v6350_v24 = vpop.f32.mrb[145].mxu0  ;;  %v9743_v36 = vld [vmem:[%s12853_s20 + $0x60] sm:$0xff]  }
 0xa86   : > { %v6372_v33 = vmax.f32 %v6245_v20, %v6350_v24  ;;  %v9740_v20 = vld [vmem:[%s12853_s20 + $0x50] sm:$0xff]   ;;  %v7091_v24 = vld [vmem:[#allocation16 + $0x18] sm:$0xff] }
 0xa88   : > { %v6354_v11 = vpop.f32.mrb[146].mxu0  ;;  %8041 = vmatprep.mubr.msk.f32.mxu0 %vm6399_vm7, %v6372_v33  ;;  %8045 = vmatprep.mubr.msk.f32.mxu1 %vm6399_vm7, %v6372_v33  ;;  %v9742_v33 = vld [vmem:[%s12853_s20 + $0x78] sm:$0xff]  }
 0xa89   : > { %v6373_v14 = vmax.f32 %v6249_v15, %v6354_v11  ;;  %v6356_v8 = vpop.f32.mrb[147].mxu0  ;;  %6477 = vmatmul.mubr.f32.vlgmr.msra.gmra.mrb[152].mxu0 %v6371_v39  ;;  %6582 = vmatmul.mubr.f32.vlgmr.msra.gmra.mrb[48].mxu1 %v6371_v39  ;;  %v6930_v39 = vld [vmem:[#allocation16 + $0x10] sm:$0xff]  ;;  %v9744_v11 = vld [vmem:[%s12853_s20 + $0x80] sm:$0xff]  }
 0xa8a   : > { %v6374_v30 = vmax.f32 %v6251_v44, %v6356_v8  ;;  %8484 = vmatpush3.bf16.msra.mxu1 %v9735_v40  ;;  %v9747_v8 = vld [vmem:[%s12853_s20 + $0x70] sm:$0xff]  }
 0xa8b   : > { %8485 = vmatprep.subr.bf16.mxu1 %v10109_v12 }
 0xa8c   : > { %v6360_v50 = vpop.f32.mrb[148].mxu0  ;;  %8042 = vmatprep.mubr.msk.f32.mxu0 %vm6399_vm7, %v6374_v30  ;;  %8046 = vmatprep.mubr.msk.f32.mxu1 %vm6399_vm7, %v6374_v30  ;;  %v9748_v30 = vld [vmem:[%s12853_s20 + $0x90] sm:$0xff]  }
 0xa8d   : > { %v6375_v10 = vmax.f32 %v6255_v28, %v6360_v50  ;;  %v6362_v13 = vpop.f32.mrb[149].mxu0  ;;  %6482 = vmatmul.mubr.f32.gmra.mrb[154].mxu0 %v6373_v14  ;;  %6587 = vmatmul.mubr.f32.gmra.mrb[50].mxu1 %v6373_v14  ;;  %v9741_v28 = vld [vmem:[%s12853_s20 + $0x58] sm:$0xff]   ;;  %v9746_v14 = vld [vmem:[%s12853_s20 + $0x88] sm:$0xff]  }
 0xa8e   : > { %v6376_v18 = vmax.f32 %v6257_v60, %v6362_v13  ;;  %8486 = vmatpush3.bf16.msra.mxu1 %v9736_v46  ;;  %v9749_v50 = vld [vmem:[%s12853_s20 + $0x98] sm:$0xff]  }
 0xa8f   : > { %8487 = vmatprep.subr.bf16.mxu1 %v10109_v12 }
 0xa90   : > { %v6366_v27 = vpop.f32.mrb[150].mxu0  ;;  %8043 = vmatprep.mubr.msk.f32.mxu0 %vm6399_vm7, %v6376_v18  ;;  %8047 = vmatprep.mubr.msk.f32.mxu1 %vm6399_vm7, %v6376_v18 }
 0xa91   : > { %v6377_v49 = vmax.f32 %v6261_v42, %v6366_v27  ;;  %v6368_v48 = vpop.f32.mrb[151].mxu0  ;;  %6487 = vmatmul.mubr.f32.gmra.mrb[156].mxu0 %v6375_v10  ;;  %6592 = vmatmul.mubr.f32.gmra.mrb[52].mxu1 %v6375_v10 }
 0xa92   : > { %v6378_v51 = vmax.f32 %v6263_v63, %v6368_v48  ;;  %8488 = vmatpush3.bf16.msra.mxu1 %v9737_v57 }
 0xa93   : > { %8489 = vmatprep.subr.bf16.mxu1 %v10109_v12 }
 0xa94   : > { %8044 = vmatprep.mubr.msk.f32.mxu0 %vm6399_vm7, %v6378_v51  ;;  %8048 = vmatprep.mubr.msk.f32.mxu1 %vm6399_vm7, %v6378_v51 }
 0xa95   : > { %6492 = vmatmul.mubr.f32.gmra.mrb[158].mxu0 %v6377_v49  ;;  %6597 = vmatmul.mubr.f32.gmra.mrb[54].mxu1 %v6377_v49 }
 0xa96   : > { %8455 = vmatprep.mubr.msk.f32.mxu0 %vm10110_vm8, %v10109_v12  ;;  %8493 = vmatprep.mubr.msk.bf16.mxu1 %vm10110_vm8, %v10109_v12 }
 0xa97   : > { %8490 = vmatpush3.bf16.msra.mxu1 %v9738_v38 }
 0xa98   : > { %8491 = vmatprep.subr.bf16.mxu1 %v10109_v12 }
 0xa9b   : > { %8492 = vmatpush3.bf16.msra.mxu1 %v9739_v7 }
 0xa9c   : > { %8508 = vmatprep.subr.bf16.mxu1 %v10109_v12 }
 0xb5c   : > { %v6478_v53 = vpop.f32.mrb[152].mxu0  ;;  %v6583_v9 = vpop.f32.mrb[48].mxu1 }
 0xb5d   : > { %v6602_v59 = vmax.f32 %v6478_v53, %v6583_v9  ;;  %v6480_v52 = vpop.f32.mrb[153].mxu0  ;;  %v6585_v23 = vpop.f32.mrb[49].mxu1 }
 0xb5f   : > { %v6606_v2 = vmax.f32 %v6602_v59, 0.0 }
 0xb60   : > { %v6483_v37 = vpop.f32.mrb[154].mxu0  ;;  %v6588_v45 = vpop.f32.mrb[50].mxu1 }
 0xb61   : > { %v6603_v56 = vmax.f32 %v6483_v37, %v6588_v45  ;;  %v6485_v1 = vpop.f32.mrb[155].mxu0  ;;  %v6590_v35 = vpop.f32.mrb[51].mxu1 }
 0xb62   : > { %v9750_v1 = vld [vmem:[%s12854_s22] sm:$0xff]   ;;  %v9751_v35 = vld [vmem:[%s12855_s16 + $0x8] sm:$0xff]   ;;  %s7541_s22 = sshll.u32 %s752_s18, 3 }
 0xb63   : > { %v6607_v19 = vmax.f32 %v6603_v56, 0.0  ;;  %s754_s27 = scalar_lea.vmem [#allocation17], %s7541_s22 }
 0xb64   : > { %v6488_v62 = vpop.f32.mrb[156].mxu0  ;;  %v6593_v25 = vpop.f32.mrb[52].mxu1  ;;  %s7372_s19 = sshll.u32 %s754_s27, 4  ;;  %s12719_s19 = int_to_ptr.vmem [resolvable:$true] %s7372_s19 }
 0xb65   : > { %v12568_v21 = vpack.c.bf16 %v6607_v19, %v6606_v2  ;;  %v6604_v32 = vmax.f32 %v6488_v62, %v6593_v25  ;;  %v6490_v43 = vpop.f32.mrb[157].mxu0  ;;  %v6595_v55 = vpop.f32.mrb[53].mxu1  ;;  %v9752_v2 = vld [vmem:[%s12855_s16 + $0x10] sm:$0xff]   ;;  %v9753_v19 = vld [vmem:[%s12855_s16 + $0x18] ss:$0 sps:$4 sm:$0x11]   ;;  %p10017_p6 = scmp.lt.s32.totalorder %s12719_s19, %s10015_s17 }
 0xb66   : > { %v7302_v62 = vsel %vm7300_vm10, %v9753_v19, 0 }
 0xb67   : > { %9169 = vmatpush3.bf16.msra.mxu0 %v12568_v21  ;;  %v6608_v41 = vmax.f32 %v6604_v32, 0.0 }
 0xb68   : > { %v6493_v31 = vpop.f32.mrb[158].mxu0  ;;  %v6598_v47 = vpop.f32.mrb[54].mxu1  ;;  %9170 = vmatprep.subr.bf16.mxu0 %v10107_v0 }
 0xb69   : > { %v6605_v16 = vmax.f32 %v6493_v31, %v6598_v47  ;;  %v6495_v3 = vpop.f32.mrb[159].mxu0  ;;  %v6600_v29 = vpop.f32.mrb[55].mxu1  ;;  %v8107_v47 = vld [vmem:[%s12856_s0] ss:$0 sm:$0xff]  ;;  %s10010_s0 = scalar_lea.vmem %s12719_s19, 128 }
 0xb6a   : > { %p10011_p8 = scmp.ne.s32.totalorder %s12719_s19, %s10010_s0  ;;  %p10018_p9 = scmp.lt.s32.totalorder %s10016_s24, %s10010_s0 }
 0xb6b   : > { %v6609_v34 = vmax.f32 %v6605_v16, 0.0 }
 0xb6c   : > { %p10012_p5 = pnand %p10011_p8, %p12861_p11  ;;  %p10019_p10 = por %p10018_p9, %p10017_p6 }
 0xb6d   : > { %v12572_v17 = vpack.c.bf16 %v6609_v34, %v6608_v41 }
 0xb6e   : > { %p10013_p0 = pneg %p10012_p5 }
 0xb6f   : > { %9172 = vmatpush3.bf16.msra.mxu0 %v12572_v17 }
 0xb70   : > { %9173 = vmatprep.subr.bf16.mxu0 %v10107_v0  ;;  %p10020_p13 = pnand %p10019_p10, %p10013_p0 }
 0xb72   : > { %8456 = vmatmul.mubr.msk.f32.vlgmr.msra.gmra.mrb[160].mxu0 %vm6399_vm7, %v6610_v54  ;;  %v8108_v54 = vld [vmem:[%s12857_s4] ss:$0 sm:$0xff] }
 0xb73   : > { %9175 = vmatpush3.bf16.msra.mxu0 %v12568_v21  ;;  %8466 = vmatprep.mubr.msk.f32.mxu0 %vm10110_vm8, %v10109_v12 }
 0xb74   : > { %9176 = vmatprep.subr.bf16.mxu0 %v10107_v0 }
 0xb77   : > { %9178 = vmatpush3.bf16.msra.mxu0 %v12572_v17 }
 0xb78   : > { %8469 = vmatprep.subr.bf16.mxu0 %v10109_v12 }
 0xb7a   : > { %8467 = vmatmul.mubr.msk.f32.vlgmr.msra.gmra.mrb[162].mxu0 %vm6399_vm7, %v6696_v26 }
 0xb7b   : > { %8470 = vmatpush3.bf16.msra.mxu0 %v9730_v4  ;;  %8479 = vmatprep.mubr.msk.bf16.mxu0 %vm10110_vm8, %v10109_v12 }
 0xb7c   : > { %8471 = vmatprep.subr.bf16.mxu0 %v10109_v12 }
 0xb7f   : > { %8472 = vmatpush3.bf16.msra.mxu0 %v9731_v22 }
 0xb80   : > { %8473 = vmatprep.subr.bf16.mxu0 %v10109_v12 }
 0xb83   : > { %8474 = vmatpush3.bf16.msra.mxu0 %v9732_v6 }
 0xb84   : > { %8475 = vmatprep.subr.bf16.mxu0 %v10109_v12 }
 0xb87   : > { %8476 = vmatpush3.bf16.msra.mxu0 %v9733_v61 }
 0xb88   : > { %8477 = vmatprep.subr.bf16.mxu0 %v10109_v12 }
 0xb8b   : > { %8478 = vmatpush3.bf16.msra.mxu0 %v9734_v58 }
 0xb8c   : > { %9179 = vmatprep.subr.bf16.mxu0 %v10107_v0 }
 0xc45   : > { %v6680_v5 = vpop.f32.mrb[160].mxu0 }
 0xc46   : > { %v6684_v15 = vpack.c.bf16 %v6680_v5, %v6680_v5  ;;  %v8457_v44 = vpop.f32.mrb[161].mxu0 }
 0xc48   : > { %8494 = vmatmul.mubr.msk.bf16.vlgmr.msra.gmra.mrb[56].mxu1 %vm6812_vm9, %v6684_v15 }
 0xc49   : > { %8509 = vmatpush3.bf16.msra.mxu1 %v9740_v20  ;;  %8518 = vmatprep.mubr.msk.bf16.mxu1 %vm10110_vm8, %v10109_v12 }
 0xc4a   : > { %8510 = vmatprep.subr.bf16.mxu1 %v10109_v12 }
 0xc4d   : > { %v6766_v60 = vpop.f32.mrb[162].mxu0  ;;  %8511 = vmatpush3.bf16.msra.mxu1 %v9741_v28 }
 0xc4e   : > { %v6770_v42 = vpack.c.bf16 %v6766_v60, %v6766_v60  ;;  %v8468_v63 = vpop.f32.mrb[163].mxu0  ;;  %8512 = vmatprep.subr.bf16.mxu1 %v10109_v12 }
 0xc50   : > { %8480 = vmatmul.mubr.msk.bf16.vlgmr.msra.gmra.mrb[164].mxu0 %vm6812_vm9, %v6770_v42 }
 0xc51   : > { %9181 = vmatpush3.bf16.msra.mxu0 %v12568_v21  ;;  %8505 = vmatprep.mubr.msk.f32.mxu0 %vm10110_vm8, %v10109_v12 }
 0xc52   : > { %9182 = vmatprep.subr.bf16.mxu0 %v10107_v0  ;;  %8513 = vmatpush3.bf16.msra.mxu1 %v9743_v36 }
 0xc53   : > { %8514 = vmatprep.subr.bf16.mxu1 %v10109_v12 }
 0xc55   : > { %9184 = vmatpush3.bf16.msra.mxu0 %v12572_v17 }
 0xc56   : > { %9185 = vmatprep.subr.bf16.mxu0 %v10107_v0 }
 0xc58   : > { %8506 = vmatmul.mubr.msk.f32.vlgmr.msra.gmra.mrb[168].mxu0 %vm6399_vm7, %v6930_v39 }
 0xc59   : > { %9187 = vmatpush3.bf16.msra.mxu0 %v12568_v21  ;;  %8530 = vmatprep.mubr.msk.f32.mxu0 %vm10110_vm8, %v10109_v12 }
 0xc5a   : > { %9188 = vmatprep.subr.bf16.mxu0 %v10107_v0  ;;  %v9745_v0 = vld [vmem:[%s12853_s20 + $0x68] sm:$0xff]  }
 0xc5b   : > { %8515 = vmatpush3.bf16.msra.mxu1 %v9745_v0 }
 0xc5c   : > { %8516 = vmatprep.subr.bf16.mxu1 %v10109_v12 }
 0xc5d   : > { %9190 = vmatpush3.bf16.msra.mxu0 %v12572_v17 }
 0xc5e   : > { %8533 = vmatprep.subr.bf16.mxu0 %v10109_v12 }
 0xc5f   : > { %8517 = vmatpush3.bf16.msra.mxu1 %v9747_v8 }
 0xc60   : > { %8531 = vmatmul.mubr.msk.f32.vlgmr.msra.gmra.mrb[170].mxu0 %vm6399_vm7, %v7091_v24  ;;  %8547 = vmatprep.subr.bf16.mxu1 %v10109_v12 }
 0xc61   : > { %8534 = vmatpush3.bf16.msra.mxu0 %v9742_v33  ;;  %8543 = vmatprep.mubr.msk.bf16.mxu0 %vm10110_vm8, %v10109_v12 }
 0xc62   : > { %8535 = vmatprep.subr.bf16.mxu0 %v10109_v12 }
 0xc65   : > { %8536 = vmatpush3.bf16.msra.mxu0 %v9744_v11 }
 0xc66   : > { %8537 = vmatprep.subr.bf16.mxu0 %v10109_v12 }
 0xc69   : > { %8538 = vmatpush3.bf16.msra.mxu0 %v9746_v14 }
 0xc6a   : > { %8539 = vmatprep.subr.bf16.mxu0 %v10109_v12 }
 0xc6d   : > { %8540 = vmatpush3.bf16.msra.mxu0 %v9748_v30 }
 0xc6e   : > { %8541 = vmatprep.subr.bf16.mxu0 %v10109_v12 }
 0xc71   : > { %8542 = vmatpush3.bf16.msra.mxu0 %v9749_v50 }
 0xd1b   : > { %v6923_v10 = vpop.f32.mrb[56].mxu1 }
 0xd1c   : > { %v8495_v13 = vpop.f32.mrb[57].mxu1 }
 0xd1d   : > { %v6926_v18 = vpop.f32.mrb[58].mxu1 }
 0xd1e   : > { %v8496_v27 = vpop.f32.mrb[59].mxu1 }
 0xd23   : > { %v6850_v49 = vpop.f32.mrb[164].mxu0 }
 0xd24   : > { %v8481_v48 = vpop.f32.mrb[165].mxu0  ;;  %v6924_v51 = vadd.f32 %v6923_v10, %v6850_v49 }
 0xd25   : > { %v6853_v53 = vpop.f32.mrb[166].mxu0 }
 0xd26   : > { %v8482_v9 = vpop.f32.mrb[167].mxu0 }
 0xd2b   : > { %v7000_v59 = vpop.f32.mrb[168].mxu0 }
 0xd2c   : > { %v7004_v52 = vpack.c.bf16 %v7000_v59, %v7000_v59  ;;  %v8507_v23 = vpop.f32.mrb[169].mxu0 }
 0xd2e   : > { %8519 = vmatmul.mubr.msk.bf16.vlgmr.msra.gmra.mrb[60].mxu1 %vm6812_vm9, %v7004_v52 }
 0xd2f   : > { %8555 = vmatprep.mubr.msk.bf16.mxu1 %vm10110_vm8, %v10109_v12  ;;  %8548 = vmatpush3.bf16.msra.mxu1 %v9750_v1 }
 0xd30   : > { %8549 = vmatprep.subr.bf16.mxu1 %v10109_v12 }
 0xd33   : > { %v7161_v37 = vpop.f32.mrb[170].mxu0  ;;  %8550 = vmatpush3.bf16.msra.mxu1 %v9751_v35 }
 0xd34   : > { %v7165_v45 = vpack.c.bf16 %v7161_v37, %v7161_v37  ;;  %v8532_v56 = vpop.f32.mrb[171].mxu0  ;;  %8551 = vmatprep.subr.bf16.mxu1 %v10109_v12 }
 0xd36   : > { %8544 = vmatmul.mubr.msk.bf16.vlgmr.msra.gmra.mrb[172].mxu0 %vm6812_vm9, %v7165_v45 }
 0xd37   : > { %8552 = vmatpush3.bf16.msra.mxu1 %v9752_v2 }
 0xd38   : > { %8553 = vmatprep.subr.bf16.mxu1 %v10109_v12 }
 0xd3b   : > { %8554 = vmatpush3.bf16.msra.mxu1 %v7302_v62 }
 0xe01   : > { %v7083_v25 = vpop.f32.mrb[60].mxu1 }
 0xe02   : > { %v7089_v21 = vadd.f32 %v7083_v25, %v6924_v51  ;;  %v8520_v32 = vpop.f32.mrb[61].mxu1 }
 0xe03   : > { %v7086_v43 = vpop.f32.mrb[62].mxu1 }
 0xe04   : > { %v8521_v55 = vpop.f32.mrb[63].mxu1 }
 0xe09   : > { %v7244_v31 = vpop.f32.mrb[172].mxu0 }
 0xe0a   : > { %v7250_v16 = vadd.f32 %v7244_v31, %v7089_v21  ;;  %v8545_v3 = vpop.f32.mrb[173].mxu0 }
 0xe0b   : > { %v7247_v12 = vpop.f32.mrb[174].mxu0 }
 0xe0c   : > { %v7258_v29 = vadd.f32 %v8107_v47, %v7250_v16  ;;  %v8546_v41 = vpop.f32.mrb[175].mxu0 }
 0xe0e   : > { %v7259_v34 = vmax.f32 %v7258_v29, 0.0 }
 0xe10   : > { %v7260_v17 = vpack.c.bf16 %v7259_v34, %v7259_v34 }
 0xe12   : > { %8556 = vmatmul.mubr.msk.bf16.vlgmr.msra.gmra.mrb[64].mxu1 %vm7296_vm11, %v7260_v17 }
 0xee5   : > { %v7338_v26 = vpop.f32.mrb[64].mxu1 }
 0xee6   : > { %v7339_v4 = vadd.f32 %v8108_v54, %v7338_v26  ;;  %v8557_v22 = vpop.f32.mrb[65].mxu1 }
 0xee7   : > { %v7341_v6 = vpop.f32.mrb[66].mxu1 }
 0xee8   : > { %v8558_v61 = vpop.f32.mrb[67].mxu1  ;;  %v7345_v40 = vsel %vm7344_vm12, %v7339_v4, -inf }
 0xee9   : > { %7346 = vmax.xlane.f32.xlu0 %v7345_v40 }
 0xf76   : > { %v7347_v46 = vpop.xlane.xlu0 %7346 }
 0xf77   : > { %v7348_v57 = vsub.f32 %v7339_v4, %v7347_v46 }
 0xf79   : > { %v7349_v38 = vmul.f32 1.442695, %v7348_v57 }
 0xf7b   : > { %9754 = vpow2.f32 %v7349_v38 }
 0xf85   : > { %v9755_v7 = vpop.eup %9754 }
 0xf86   : > { %v7351_v58 = vsel %vm7344_vm12, %v9755_v7, 0.0 }
 0xf87   : > { %7352 = vadd.xlane.f32.xlu0 %v7351_v58 }
0x1014   : > { %v7353_v5 = vpop.xlane.xlu0 %7352 }
0x1015   : > { %9756 = vlog2.f32 %v7353_v5 }
0x101f   : > { %v9757_v20 = vpop.eup %9756 }
0x1020   : > { %v7355_v15 = vmul.f32 0.6931472, %v9757_v20 }
0x1022   : > { %v7356_v44 = vsub.f32 %v7348_v57, %v7355_v15 }
0x1024   : > { %7357 = vst.msk [vmem:[%s754_s27] sm:$0xff] %vm7344_vm12, %v7356_v44 }
0x1025   : > { %10023 = shalt.err (!%p10020_p13)
}
0x1026   : > { %s10024_s4 = scalar_lea.hbm %s12717_s30, 128  ;;  %s10028_s22 = scalar_lea.hbm %s12860_s21, 256 }
0x1027   : > { %p10025_p12 = scmp.ne.s32.totalorder %s12717_s30, %s10024_s4  ;;  %p10029_p3 = scmp.lt.u32.totalorder %s12717_s30, %s12860_s21 }
0x1028   : > { %p10030_p4 = scmp.lt.u32.totalorder %s10028_s22, %s10024_s4  ;;  %p10032_p8 = scmp.lt.u32.totalorder %s10024_s4, %s12717_s30 }
0x1029   : > { %p10026_p1 = pnand %p10025_p12, %p12861_p11 }
0x102a   : > { %p10031_p7 = por %p10030_p4, %p10029_p3 }
0x102b   : > { %p10027_p2 = pneg %p10026_p1 }
0x102c   : > { %p10033_p5 = por %p10032_p8, %p10031_p7 }
0x102e   : > { %p10034_p0 = pnand %p10033_p5, %p10027_p2 }
0x1030   : > { %10037 = shalt.err (!%p10034_p0)
}
0x1031   : > { %9483 = dma.vmem_to_hbm [thread:$0]  (%p12861_p11), %s12719_s19, 128, %s12717_s30, %s7359_s25  }
0x1032 PF: > { %s12862_s26 = sld [smem:[#allocation27_spill]]  ;;  %s12863_s3 = sld [smem:[#allocation24_spill]] }
0x1033   : > { %s12864_s0 = sld [smem:[#allocation31_spill]] }
0x1038   : > { %p9535_p6 = scmp.ge.s32.totalorder %s12862_s26, 2  ;;  %s7384_s2 = sand.u32 1, %s12863_s3  }
0x1039   : > { %p12865_p9 = scmp.ne.s32.totalorder %s12864_s0, 0  ;;  %s7385_s17 = scalar_lea.sflag [#allocation4], %s7384_s2 }
0x103b   : > { %p9514_p10 = pnand %p9535_p6, %p12865_p9 }
0x103d   : > { %10075 = dma.done.wait (!%p9514_p10), %s7385_s17, 128  }
0x103e   : > { %10077 = vsyncadd (!%p9514_p10), %s7385_s17, 4294967168  ;;  %s12866_s24 = sld [smem:[#allocation28_spill]]  ;;  %s12867_s1 = sld [smem:[#allocation25_spill]] }
0x103f   : > { %s12868_s22 = sld [smem:[#allocation26_spill]]  ;;  %s12869_s23 = sld [smem:[#allocation29_spill]] }
0x1044   : > { %p35_p13 = scmp.ge.s32.totalorder %s12866_s24, 4  }
0x1046   :  { %37 = sbr.rel (!%p35_p13) target bundleno = 20 (0x14), region = 194 }
0x104d   :  { %7390 = vsyncpa [#allocation3], 1 }
0x104e   :  { %7392 = vsyncpa [#allocation3 + $0x1], 1 }
0x104f   :  { %7393 = vsyncpa [#allocation6], 1 }
0x1050   :  { %7394 = vsyncpa [#allocation9], 1 }
0x1051   :  { %7395 = vsyncpa [#allocation12], 1 }
0x1052   :  { %7396 = vsyncpa [#allocation15], 1 }
0x1053   :  { %7397 = vsyncpa [#allocation4], 1 }
0x1054   :  { %7399 = vsyncpa [#allocation4 + $0x1], 1 }

</bundles_post_ra>
